<compile_context>
chip_gen: v7x
topology: tpu7x:2x2x1
jax: 0.10.0
libtpu: 0.0.40
codegen_flags: <defaults>
</compile_context>

<pallas_src>
import jax
import jax.numpy as jnp
from jax.experimental import pallas as pl
from jax.experimental.pallas import tpu as pltpu

_SQRT_2_OVER_PI = 0.7978845608028654  # gelu_fast / gelu_pytorch_tanh constant


def _gelu_tanh(x):
    # torch.nn.functional.gelu(x, approximate="tanh")
    return 0.5 * x * (1.0 + jnp.tanh(_SQRT_2_OVER_PI * (x + 0.044715 * x * x * x)))


def _round_up(a, b):
    return (a + b - 1) // b * b


def _vmem_capacity_bytes():
    try:
        return int(pltpu.get_tpu_info().vmem_capacity_bytes)
    except Exception:
        return 128 * 1024 * 1024  # v5e/v6e default


# ============================ fused MLP kernel ============================

def _phi_mlp_kernel(x_ref, w1_ref, b1_ref, w2_ref, b2_ref, o_ref, acc_ref):
    """One (tm, hidden) output tile; grid axis 1 walks the INNER dimension.

    For each INNER tile: h = gelu_tanh(x @ W1[:, kk] + b1[kk]) on MXU/EUP, then
    contract against W2[kk, :] into the f32 VMEM accumulator.  The accumulator
    is initialized with (first partial + b2) — no zero-fill pass — and the
    finalize step only casts to the output dtype.
    """
    k = pl.program_id(1)

    # fc1 tile: (tm, hidden)bf16 @ (hidden, tk)bf16 -> f32
    h = jnp.dot(x_ref[...], w1_ref[...], preferred_element_type=jnp.float32)
    # bias + tanh-GELU in f32 (tanh goes to the EUP)
    h = _gelu_tanh(h + b1_ref[...])
    # fc2 partial contraction: (tm, tk) @ (tk, hidden) -> f32
    partial = jnp.dot(h.astype(w2_ref.dtype), w2_ref[...],
                      preferred_element_type=jnp.float32)

    @pl.when(k == 0)
    def _():
        acc_ref[...] = partial + b2_ref[...]

    @pl.when(k > 0)
    def _():
        acc_ref[...] += partial

    @pl.when(k == pl.num_programs(1) - 1)
    def _():
        o_ref[...] = acc_ref[...].astype(o_ref.dtype)


def phi_mlp(hidden_states, fc1_w, fc1_b, fc2_w, fc2_b, *,
            tm=None, tk=None, compute_dtype=jnp.bfloat16, out_dtype=None):
    """Fused PhiMLP forward: fc2(gelu_tanh(fc1(x))).

    hidden_states: (tokens, hidden)  — token-major ("varlen") layout.
    fc1_w: (hidden, inner), fc1_b: (inner,)   (weights stored (in, out) for x @ W)
    fc2_w: (inner, hidden), fc2_b: (hidden,)

    fc1_w / fc2_w should already be in `compute_dtype` (cast once at weight-load
    time); the wrapper only casts as a fallback.
    """
    m, hidden = hidden_states.shape
    hidden2, inner = fc1_w.shape
    assert hidden == hidden2
    assert fc2_w.shape == (inner, hidden)
    assert fc1_b.shape == (inner,) and fc2_b.shape == (hidden,)
    assert hidden % 128 == 0, "hidden must be lane-dense (multiple of 128)"
    assert inner % 128 == 0, "inner must be a multiple of 128"
    out_dtype = out_dtype or hidden_states.dtype

    # bf16 packs 2 rows per sublane -> align token tiles to 16 rows.
    row_align = 16 if jnp.dtype(compute_dtype).itemsize == 2 else 8

    # Generation-aware VMEM budget (v7x: 64 MiB/TC, v5e/v6e: 128 MiB).
    vmem_cap = _vmem_capacity_bytes()
    vmem_limit = int(min(96 * 1024 * 1024, max(32 * 1024 * 1024, 0.70 * vmem_cap)))

    # INNER reduction tile: prefer 512 (deeper MXU K, 1 KB-contiguous W1 rows).
    if tk is None:
        tk = 512 if inner % 512 == 0 else (256 if inner % 256 == 0 else 128)
    tk = min(tk, inner)
    assert tk % 128 == 0 and inner % tk == 0, "inner must be a multiple of tk"

    # Token tile: default 512 (arithmetic-intensity knob), clamp to batch.
    if tm is None:
        tm = 512
    tm = max(row_align, min(_round_up(tm, row_align), _round_up(m, row_align)))

    cbytes = jnp.dtype(compute_dtype).itemsize
    obytes = jnp.dtype(out_dtype).itemsize

    def _vmem_use(tm_, tk_):
        # Pallas double-buffers every pipelined input/output block.
        dbl = 2 * (tm_ * hidden * cbytes       # x tile
                   + hidden * tk_ * cbytes     # fc1_w tile
                   + tk_ * 4                   # fc1_b tile
                   + tk_ * hidden * cbytes     # fc2_w tile
                   + hidden * 4                # fc2_b
                   + tm_ * hidden * obytes)    # out tile
        return dbl + tm_ * hidden * 4          # f32 accumulator scratch

    # Shrink tm, then tk, until the tiles fit the VMEM budget.
    while _vmem_use(tm, tk) > vmem_limit and tm > row_align:
        tm = max(row_align, _round_up(tm // 2, row_align))
    while _vmem_use(tm, tk) > vmem_limit and tk > 128:
        tk = max(128, tk // 2)
        while inner % tk:
            tk -= 128

    m_pad = _round_up(m, tm)

    # Only cast / pad when actually needed (avoid extra HBM passes per call).
    x = hidden_states if hidden_states.dtype == compute_dtype \
        else hidden_states.astype(compute_dtype)
    if m_pad != m:
        x = jnp.pad(x, ((0, m_pad - m), (0, 0)))
    w1 = fc1_w if fc1_w.dtype == compute_dtype else fc1_w.astype(compute_dtype)
    w2 = fc2_w if fc2_w.dtype == compute_dtype else fc2_w.astype(compute_dtype)
    b1 = fc1_b.astype(jnp.float32).reshape(1, inner)
    b2 = fc2_b.astype(jnp.float32).reshape(1, hidden)

    grid = (m_pad // tm, inner // tk)

    bytes_accessed = (
        m_pad * hidden * cbytes          # x
        + hidden * inner * cbytes        # fc1_w
        + inner * 4                      # fc1_b
        + inner * hidden * cbytes        # fc2_w
        + hidden * 4                     # fc2_b
        + m_pad * hidden * obytes        # out
    )

    out = pl.pallas_call(
        _phi_mlp_kernel,
        grid=grid,
        in_specs=[
            pl.BlockSpec((tm, hidden), lambda i, k: (i, 0)),   # x tile
            pl.BlockSpec((hidden, tk), lambda i, k: (0, k)),   # fc1_w tile
            pl.BlockSpec((1, tk),      lambda i, k: (0, k)),   # fc1_b tile
            pl.BlockSpec((tk, hidden), lambda i, k: (k, 0)),   # fc2_w tile
            pl.BlockSpec((1, hidden),  lambda i, k: (0, 0)),   # fc2_b
        ],
        out_specs=pl.BlockSpec((tm, hidden), lambda i, k: (i, 0)),
        out_shape=jax.ShapeDtypeStruct((m_pad, hidden), out_dtype),
        scratch_shapes=[pltpu.VMEM((tm, hidden), jnp.float32)],
        compiler_params=pltpu.CompilerParams(
            dimension_semantics=("parallel", "arbitrary"),
            vmem_limit_bytes=vmem_limit,
        ),
        cost_estimate=pl.CostEstimate(
            flops=4 * m_pad * hidden * inner,   # two matmuls
            transcendentals=m_pad * inner,      # tanh in GELU
            bytes_accessed=bytes_accessed,
        ),
    )(x, w1, b1, w2, b2)

    return out[:m]


# ============================ pure-JAX reference ============================

def ref_phi_mlp(hidden_states, fc1_w, fc1_b, fc2_w, fc2_b):
    x = hidden_states.astype(jnp.float32)
    h = x @ fc1_w.astype(jnp.float32) + fc1_b.astype(jnp.float32)
    h = _gelu_tanh(h)
    return h @ fc2_w.astype(jnp.float32) + fc2_b.astype(jnp.float32)


# ============================ test harness ============================

if __name__ == "__main__":
    # Small Phi-like MLP: hidden=128, inner=4*hidden=512, tokens=256.
    TOKENS, HIDDEN = 256, 128
    INNER = 4 * HIDDEN

    key = jax.random.PRNGKey(0)
    kx, k1, kb1, k2, kb2 = jax.random.split(key, 5)

    # Weights are stored in bf16 ONCE (weight-load time), as the wrapper expects;
    # the f32 reference then sees exactly the values the bf16 MXU sees.
    x = jax.random.normal(kx, (TOKENS, HIDDEN), dtype=jnp.float32).astype(jnp.bfloat16)
    fc1_w = (0.02 * jax.random.normal(k1, (HIDDEN, INNER), dtype=jnp.float32)).astype(jnp.bfloat16)
    fc1_b = 0.02 * jax.random.normal(kb1, (INNER,), dtype=jnp.float32)
    fc2_w = (0.02 * jax.random.normal(k2, (INNER, HIDDEN), dtype=jnp.float32)).astype(jnp.bfloat16)
    fc2_b = 0.02 * jax.random.normal(kb2, (HIDDEN,), dtype=jnp.float32)

    out = phi_mlp(x, fc1_w, fc1_b, fc2_w, fc2_b, out_dtype=jnp.float32)
    out = jax.block_until_ready(out)
    assert out.shape == (TOKENS, HIDDEN)

    ref = ref_phi_mlp(x, fc1_w, fc1_b, fc2_w, fc2_b)
    max_err = float(jnp.max(jnp.abs(out.astype(jnp.float32) - ref)))
    assert max_err < 1e-2, f"mismatch vs reference: {max_err}"

    print("KERNEL_OK")
</pallas_src>

<mosaic_0001>
module attributes {stable_mosaic.version = 11 : i64} {
  func.func @_phi_mlp_kernel(%arg0: i32, %arg1: i32, %arg2: memref<256x128xbf16, #tpu.memory_space<vmem>>, %arg3: memref<128x512xbf16, #tpu.memory_space<vmem>>, %arg4: memref<1x512xf32, #tpu.memory_space<vmem>>, %arg5: memref<512x128xbf16, #tpu.memory_space<vmem>>, %arg6: memref<1x128xf32, #tpu.memory_space<vmem>>, %arg7: memref<256x128xf32, #tpu.memory_space<vmem>>, %arg8: memref<256x128xf32, #tpu.memory_space<vmem>>) attributes {dimension_semantics = [#tpu.dimension_semantics<parallel>, #tpu.dimension_semantics<arbitrary>], iteration_bounds = array<i64: 1, 1>, scalar_prefetch = 0 : i64, scratch_operands = 1 : i64, tpu.core_type = #tpu.core_type<tc>, window_params = [{transform_indices = @transform_0, window_bounds = array<i64: 256, 128>}, {transform_indices = @transform_1, window_bounds = array<i64: 128, 512>}, {transform_indices = @transform_2, window_bounds = array<i64: 1, 512>}, {transform_indices = @transform_3, window_bounds = array<i64: 512, 128>}, {pipeline_mode = #tpu.pipeline_mode<synchronous>, transform_indices = @transform_4, window_bounds = array<i64: 1, 128>}, {transform_indices = @transform_5, window_bounds = array<i64: 256, 128>}]} {
    %c0 = arith.constant 0 : index
    %c0_0 = arith.constant 0 : index
    %0 = vector.load %arg2[%c0, %c0_0] : memref<256x128xbf16, #tpu.memory_space<vmem>>, vector<256x128xbf16>
    %c0_1 = arith.constant 0 : index
    %c0_2 = arith.constant 0 : index
    %1 = vector.load %arg3[%c0_1, %c0_2] : memref<128x512xbf16, #tpu.memory_space<vmem>>, vector<128x512xbf16>
    %cst = arith.constant dense<0.000000e+00> : vector<256x512xf32>
    %2 = tpu.matmul %0, %1, %cst {dimension_numbers = #tpu.dot_dimension_numbers<[1], [0], [0], [1], [0, 0, 1, 1], [], []>} : vector<256x128xbf16>, vector<128x512xbf16>, vector<256x512xf32> -> vector<256x512xf32>
    %c0_3 = arith.constant 0 : index
    %c0_4 = arith.constant 0 : index
    %3 = vector.load %arg4[%c0_3, %c0_4] : memref<1x512xf32, #tpu.memory_space<vmem>>, vector<1x512xf32>
    %4 = vector.broadcast %3 : vector<1x512xf32> to vector<256x512xf32>
    %5 = arith.addf %2, %4 : vector<256x512xf32>
    %cst_5 = arith.constant 5.000000e-01 : f32
    %6 = vector.broadcast %cst_5 : f32 to vector<256x512xf32>
    %7 = arith.mulf %6, %5 : vector<256x512xf32>
    %cst_6 = arith.constant 4.471500e-02 : f32
    %8 = vector.broadcast %cst_6 : f32 to vector<256x512xf32>
    %9 = arith.mulf %8, %5 : vector<256x512xf32>
    %10 = arith.mulf %9, %5 : vector<256x512xf32>
    %11 = arith.mulf %10, %5 : vector<256x512xf32>
    %12 = arith.addf %5, %11 : vector<256x512xf32>
    %cst_7 = arith.constant 0.797884583 : f32
    %13 = vector.broadcast %cst_7 : f32 to vector<256x512xf32>
    %14 = arith.mulf %13, %12 : vector<256x512xf32>
    %15 = math.tanh %14 : vector<256x512xf32>
    %cst_8 = arith.constant 1.000000e+00 : f32
    %16 = vector.broadcast %cst_8 : f32 to vector<256x512xf32>
    %17 = arith.addf %16, %15 : vector<256x512xf32>
    %18 = arith.mulf %7, %17 : vector<256x512xf32>
    %19 = arith.truncf %18 : vector<256x512xf32> to vector<256x512xbf16>
    %c0_9 = arith.constant 0 : index
    %c0_10 = arith.constant 0 : index
    %20 = vector.load %arg5[%c0_9, %c0_10] : memref<512x128xbf16, #tpu.memory_space<vmem>>, vector<512x128xbf16>
    %cst_11 = arith.constant dense<0.000000e+00> : vector<256x128xf32>
    %21 = tpu.matmul %19, %20, %cst_11 {dimension_numbers = #tpu.dot_dimension_numbers<[1], [0], [0], [1], [0, 0, 1, 1], [], []>} : vector<256x512xbf16>, vector<512x128xbf16>, vector<256x128xf32> -> vector<256x128xf32>
    %c0_i32 = arith.constant 0 : i32
    %22 = arith.cmpi eq, %arg1, %c0_i32 : i32
    %23 = arith.extui %22 : i1 to i32
    %c0_i32_12 = arith.constant 0 : i32
    %24 = arith.cmpi ne, %23, %c0_i32_12 : i32
    scf.if %24 {
      %c0_17 = arith.constant 0 : index
      %c0_18 = arith.constant 0 : index
      %31 = vector.load %arg6[%c0_17, %c0_18] : memref<1x128xf32, #tpu.memory_space<vmem>>, vector<1x128xf32>
      %32 = vector.broadcast %31 : vector<1x128xf32> to vector<256x128xf32>
      %33 = arith.addf %21, %32 : vector<256x128xf32>
      %c0_19 = arith.constant 0 : index
      %c0_20 = arith.constant 0 : index
      %34 = vector.load %arg8[%c0_19, %c0_20] : memref<256x128xf32, #tpu.memory_space<vmem>>, vector<256x128xf32>
      tpu.vector_store %arg8[%c0_19, %c0_20], %33 {strides = array<i32>} : memref<256x128xf32, #tpu.memory_space<vmem>>, vector<256x128xf32>,
    } else {
    }
    %c0_i32_13 = arith.constant 0 : i32
    %25 = arith.cmpi sgt, %arg1, %c0_i32_13 : i32
    %26 = arith.extui %25 : i1 to i32
    %c0_i32_14 = arith.constant 0 : i32
    %27 = arith.cmpi ne, %26, %c0_i32_14 : i32
    scf.if %27 {
      %c0_17 = arith.constant 0 : index
      %c0_18 = arith.constant 0 : index
      %31 = vector.load %arg8[%c0_17, %c0_18] : memref<256x128xf32, #tpu.memory_space<vmem>>, vector<256x128xf32>
      %32 = arith.addf %31, %21 : vector<256x128xf32>
      %c0_19 = arith.constant 0 : index
      %c0_20 = arith.constant 0 : index
      %33 = vector.load %arg8[%c0_19, %c0_20] : memref<256x128xf32, #tpu.memory_space<vmem>>, vector<256x128xf32>
      tpu.vector_store %arg8[%c0_19, %c0_20], %32 {strides = array<i32>} : memref<256x128xf32, #tpu.memory_space<vmem>>, vector<256x128xf32>,
    } else {
    }
    %c0_i32_15 = arith.constant 0 : i32
    %28 = arith.cmpi eq, %arg1, %c0_i32_15 : i32
    %29 = arith.extui %28 : i1 to i32
    %c0_i32_16 = arith.constant 0 : i32
    %30 = arith.cmpi ne, %29, %c0_i32_16 : i32
    scf.if %30 {
      %c0_17 = arith.constant 0 : index
      %c0_18 = arith.constant 0 : index
      %31 = vector.load %arg8[%c0_17, %c0_18] : memref<256x128xf32, #tpu.memory_space<vmem>>, vector<256x128xf32>
      %c0_19 = arith.constant 0 : index
      %c0_20 = arith.constant 0 : index
      %32 = vector.load %arg7[%c0_19, %c0_20] : memref<256x128xf32, #tpu.memory_space<vmem>>, vector<256x128xf32>
      tpu.vector_store %arg7[%c0_19, %c0_20], %31 {strides = array<i32>} : memref<256x128xf32, #tpu.memory_space<vmem>>, vector<256x128xf32>,
    } else {
    }
    return
  }
  func.func @transform_0(%arg0: i32, %arg1: i32) -> (i32, i32) {
    %c0_i32 = arith.constant 0 : i32
    %c0_i32_0 = arith.constant 0 : i32
    return %arg0, %c0_i32 : i32, i32
  }
  func.func @transform_1(%arg0: i32, %arg1: i32) -> (i32, i32) {
    %c0_i32 = arith.constant 0 : i32
    %c0_i32_0 = arith.constant 0 : i32
    return %c0_i32, %arg1 : i32, i32
  }
  func.func @transform_2(%arg0: i32, %arg1: i32) -> (i32, i32) {
    %c0_i32 = arith.constant 0 : i32
    %c0_i32_0 = arith.constant 0 : i32
    return %c0_i32, %arg1 : i32, i32
  }
  func.func @transform_3(%arg0: i32, %arg1: i32) -> (i32, i32) {
    %c0_i32 = arith.constant 0 : i32
    %c0_i32_0 = arith.constant 0 : i32
    return %arg1, %c0_i32 : i32, i32
  }
  func.func @transform_4(%arg0: i32, %arg1: i32) -> (i32, i32) {
    %c0_i32 = arith.constant 0 : i32
    %c0_i32_0 = arith.constant 0 : i32
    %c0_i32_1 = arith.constant 0 : i32
    return %c0_i32, %c0_i32_0 : i32, i32
  }
  func.func @transform_5(%arg0: i32, %arg1: i32) -> (i32, i32) {
    %c0_i32 = arith.constant 0 : i32
    %c0_i32_0 = arith.constant 0 : i32
    return %arg0, %c0_i32 : i32, i32
  }
}

</mosaic_0001>

<bundles_post_ra>
// kernel: tpu_custom_call.1
= control target key start
LH: loop header
LB: loop body
LE: loop exit
PB: predicated region body
PF: predicated region fallthrough
CT: control target
= control target key end

     0   :  { %10 = vsyncpa [#allocation4], 0  ;;  %s5863_s0 = inlined_call_operand.hbm [shape: bf16[256,128], index: 0, kind: input, shape index: {}]   ;;  %s5864_s1 = inlined_call_operand.hbm [shape: bf16[128,512], index: 1, kind: input, shape index: {}]   ;;  %s5865_s2 = inlined_call_operand.hbm [shape: f32[1,512], index: 2, kind: input, shape index: {}]   ;;  %s5866_s3 = inlined_call_operand.hbm [shape: bf16[512,128], index: 3, kind: input, shape index: {}]   ;;  %s5867_s4 = inlined_call_operand.hbm [shape: f32[1,128], index: 4, kind: input, shape index: {}]   ;;  %s5868_s5 = inlined_call_operand.hbm [shape: f32[256,128], index: 5, kind: output, shape index: {}]  }
   0x1   :  { %11 = vsyncpa [#allocation7], 0 }
   0x2   :  { %12 = vsyncpa [#allocation10], 0 }
   0x3   :  { %13 = vsyncpa [#allocation5], 0  ;;  %s3679_s18 = smov [#allocation6]   ;;  %s3539_s22 = scalar_lea.hbm %s5864_s1, 4096 }
   0x4   :  { %s31_s19 = sshll.u32 %s3679_s18, 4  ;;  %p3540_p0 = scmp.ne.s32.totalorder %s5864_s1, %s3539_s22  ;;  %s32_s19 = int_to_ptr.vmem [resolvable:$true] %s31_s19 }
   0x5   :  { %p3543_p1 = scmp.lt.u32.totalorder %s3539_s22, %s5864_s1 }
   0x7   :  { %p3545_p2 = pnand %p3543_p1, %p3540_p0 }
   0x9   :  { %3548 = shalt.err (!%p3545_p2)
}
   0xa   :  { %s3549_s27 = scalar_lea.vmem %s32_s19, 4096  ;;  %p3554_p4 = scmp.lt.s32.totalorder %s32_s19, %s32_s19 }
   0xb   :  { %p3550_p3 = scmp.ne.s32.totalorder %s32_s19, %s3549_s27  ;;  %p3555_p5 = scmp.lt.s32.totalorder %s3549_s27, %s3549_s27 }
   0xd   :  { %p3556_p6 = por %p3555_p5, %p3554_p4 }
   0xf   :  { %p3557_p7 = pnand %p3556_p6, %p3550_p3 }
  0x11   :  { %3560 = shalt.err (!%p3557_p7)
}
  0x12   :  { %s3680_s28 = smov 256   ;;  %s3681_s29 = smov 16  }
  0x13   :  { %37 = dma.hbm_to_vmem [thread:$0]  %s5864_s1, 4096, %s32_s19, [#allocation7], %s3680_s28, %s3680_s28, %s3681_s29  }
  0x14   :  { %s3682_s7 = smov [#allocation9]   ;;  %s3683_s9 = smov [#allocation3]  }
  0x15   :  { %s53_s8 = sshll.u32 %s3682_s7, 4  ;;  %s19_s10 = sshll.u32 %s3683_s9, 4  ;;  %s54_s8 = int_to_ptr.vmem [resolvable:$true] %s53_s8  ;;  %s20_s10 = int_to_ptr.vmem [resolvable:$true] %s19_s10 }
  0x16   :  { %s3561_s13 = scalar_lea.hbm %s5866_s3, 4096 }
  0x17   :  { %p3562_p8 = scmp.ne.s32.totalorder %s5866_s3, %s3561_s13  ;;  %p3565_p9 = scmp.lt.u32.totalorder %s3561_s13, %s5866_s3 }
  0x19   :  { %p3567_p10 = pnand %p3565_p9, %p3562_p8 }
  0x1b   :  { %3570 = shalt.err (!%p3567_p10)
}
  0x1c   :  { %s3571_s1 = scalar_lea.vmem %s54_s8, 4096  ;;  %p3576_p12 = scmp.lt.s32.totalorder %s54_s8, %s54_s8 }
  0x1d   :  { %p3572_p11 = scmp.ne.s32.totalorder %s54_s8, %s3571_s1  ;;  %p3577_p13 = scmp.lt.s32.totalorder %s3571_s1, %s3571_s1 }
  0x1f   :  { %p3578_p0 = por %p3577_p13, %p3576_p12 }
  0x21   :  { %p3579_p1 = pnand %p3578_p0, %p3572_p11 }
  0x23   :  { %3582 = shalt.err (!%p3579_p1)
}
  0x24   :  { %s3684_s18 = smov 64   ;;  %s3685_s19 = smov 4  }
  0x25   :  { %59 = dma.hbm_to_vmem [thread:$0]  %s5866_s3, 4096, %s54_s8, [#allocation10], %s3684_s18, %s3684_s18, %s3685_s19  }
  0x26   :  { %s3583_s24 = scalar_lea.hbm %s5863_s0, 2048 }
  0x27   :  { %p3584_p2 = scmp.ne.s32.totalorder %s5863_s0, %s3583_s24  ;;  %p3587_p3 = scmp.lt.u32.totalorder %s3583_s24, %s5863_s0 }
  0x29   :  { %p3589_p4 = pnand %p3587_p3, %p3584_p2 }
  0x2b   :  { %3592 = shalt.err (!%p3589_p4)
}
  0x2c   :  { %s3593_s29 = scalar_lea.vmem %s20_s10, 2048  ;;  %p3598_p6 = scmp.lt.s32.totalorder %s20_s10, %s20_s10 }
  0x2d   :  { %p3594_p5 = scmp.ne.s32.totalorder %s20_s10, %s3593_s29  ;;  %p3599_p7 = scmp.lt.s32.totalorder %s3593_s29, %s3593_s29 }
  0x2f   :  { %p3600_p8 = por %p3599_p7, %p3598_p6 }
  0x31   :  { %p3601_p9 = pnand %p3600_p8, %p3594_p5 }
  0x33   :  { %3604 = shalt.err (!%p3601_p9)
}
  0x34   :  { %25 = dma.hbm_to_vmem [thread:$0]  %s5863_s0, 2048, %s20_s10, [#allocation4], %s3684_s18, %s3684_s18, %s3685_s19  }
  0x35   :  { %s3686_s6 = smov [#allocation8]   ;;  %s3687_s8 = smov [#allocation11]  }
  0x36   :  { %s44_s7 = sshll.u32 %s3686_s6, 4  ;;  %s66_s9 = sshll.u32 %s3687_s8, 4  ;;  %s45_s7 = int_to_ptr.vmem [resolvable:$true] %s44_s7  ;;  %s67_s9 = int_to_ptr.vmem [resolvable:$true] %s66_s9 }
  0x37   :  { %s3605_s13 = scalar_lea.hbm %s5865_s2, 64 }
  0x38   :  { %p3606_p10 = scmp.ne.s32.totalorder %s5865_s2, %s3605_s13  ;;  %p3609_p11 = scmp.lt.u32.totalorder %s3605_s13, %s5865_s2 }
  0x3a   :  { %p3611_p12 = pnand %p3609_p11, %p3606_p10 }
  0x3c   :  { %3614 = shalt.err (!%p3611_p12)
}
  0x3d   :  { %s3615_s0 = scalar_lea.vmem %s45_s7, 64  ;;  %p3620_p0 = scmp.lt.s32.totalorder %s45_s7, %s45_s7 }
  0x3e   :  { %p3616_p13 = scmp.ne.s32.totalorder %s45_s7, %s3615_s0  ;;  %p3621_p1 = scmp.lt.s32.totalorder %s3615_s0, %s3615_s0 }
  0x40   :  { %p3622_p2 = por %p3621_p1, %p3620_p0 }
  0x42   :  { %p3623_p3 = pnand %p3622_p2, %p3616_p13 }
  0x44   :  { %3626 = shalt.err (!%p3623_p3)
}
  0x45   :  { %47 = dma.hbm_to_vmem [thread:$0]  %s5865_s2, 64, %s45_s7, [#allocation7]  }
  0x46   :  { %s3627_s20 = scalar_lea.hbm %s5867_s4, 16 }
  0x47   :  { %p3628_p4 = scmp.ne.s32.totalorder %s5867_s4, %s3627_s20  ;;  %p3631_p5 = scmp.lt.u32.totalorder %s3627_s20, %s5867_s4 }
  0x49   :  { %p3633_p6 = pnand %p3631_p5, %p3628_p4 }
  0x4b   :  { %3636 = shalt.err (!%p3633_p6)
}
  0x4c   :  { %s3637_s25 = scalar_lea.vmem %s67_s9, 16  ;;  %s3641_s26 = scalar_lea.vmem %s67_s9, 32 }
  0x4d   :  { %p3638_p7 = scmp.ne.s32.totalorder %s67_s9, %s3637_s25  ;;  %p3642_p8 = scmp.lt.s32.totalorder %s67_s9, %s67_s9 }
  0x4e   :  { %p3643_p9 = scmp.lt.s32.totalorder %s3641_s26, %s3637_s25 }
  0x50   :  { %p3644_p10 = por %p3643_p9, %p3642_p8 }
  0x52   :  { %p3645_p11 = pnand %p3644_p10, %p3638_p7 }
  0x54   :  { %3648 = shalt.err (!%p3645_p11)
}
  0x55   :  { %69 = dma.hbm_to_vmem [thread:$0]  %s5867_s4, 16, %s67_s9, [#allocation10]  }
  0x56   :  { %3671 = dma.done.wait [#allocation4], 2048  }
  0x57   :  { %3672 = vsyncadd [#allocation4], 4294965248 }
  0x58   :  { %3673 = dma.done.wait [#allocation7], 4160  }
  0x59   :  { %3674 = vsyncadd [#allocation7], 4294963136 }
  0x5a   :  { %3675 = dma.done.wait [#allocation10], 4112  }
  0x5b   :  { %3676 = vsyncadd [#allocation10], 4294963184  ;;  %v3688_v0 = vmov 0   ;;  %v3187_v1 = vld [vmem:[#allocation6 + $0x4] ss:$16 sps:$4 sm:$0xff]   ;;  %v3236_v34 = vld [vmem:[#allocation3 + $0x8] sm:$0xff]  }
  0x5c   :  { %460 = vmatprep.mubr.bf16.mxu0 %v3688_v0  ;;  %653 = vmatprep.mubr.bf16.mxu1 %v3688_v0  ;;  %v3189_v2 = vld [vmem:[#allocation6 + $0xc] ss:$16 sps:$4 sm:$0xff]   ;;  %v3191_v3 = vld [vmem:[#allocation6] ss:$16 sps:$4 sm:$0xff]   ;;  %v3192_v4 = vld [vmem:[#allocation6 + $0x8] ss:$16 sps:$4 sm:$0xff]  }
  0x5d   :  { %428 = vmatprep.subr.bf16.mxu0 %v3187_v1  ;;  %621 = vmatprep.subr.bf16.mxu1 %v3189_v2  ;;  %v3193_v5 = vld [vmem:[#allocation6 + $0x24] ss:$16 sps:$4 sm:$0xff]   ;;  %v3195_v6 = vld [vmem:[#allocation6 + $0x2c] ss:$16 sps:$4 sm:$0xff]   ;;  %v3197_v7 = vld [vmem:[#allocation6 + $0x20] ss:$16 sps:$4 sm:$0xff]  }
  0x5e   :  { %429 = vmatpush1.bf16.msra.mxu0 %v3191_v3  ;;  %622 = vmatpush1.bf16.msra.mxu1 %v3192_v4  ;;  %v3198_v8 = vld [vmem:[#allocation6 + $0x28] ss:$16 sps:$4 sm:$0xff]   ;;  %v3199_v9 = vld [vmem:[#allocation6 + $0x44] ss:$16 sps:$4 sm:$0xff]   ;;  %v3201_v10 = vld [vmem:[#allocation6 + $0x4c] ss:$16 sps:$4 sm:$0xff]  }
  0x5f   :  { %430 = vmatprep.subr.bf16.mxu0 %v3193_v5  ;;  %623 = vmatprep.subr.bf16.mxu1 %v3195_v6  ;;  %v3203_v11 = vld [vmem:[#allocation6 + $0x40] ss:$16 sps:$4 sm:$0xff]   ;;  %v3204_v12 = vld [vmem:[#allocation6 + $0x48] ss:$16 sps:$4 sm:$0xff]   ;;  %v3205_v13 = vld [vmem:[#allocation6 + $0x64] ss:$16 sps:$4 sm:$0xff]  }
  0x60   :  { %v3207_v14 = vld [vmem:[#allocation6 + $0x6c] ss:$16 sps:$4 sm:$0xff]   ;;  %v3209_v15 = vld [vmem:[#allocation6 + $0x60] ss:$16 sps:$4 sm:$0xff]   ;;  %v3210_v16 = vld [vmem:[#allocation6 + $0x68] ss:$16 sps:$4 sm:$0xff]  }
  0x61   :  { %v3211_v17 = vld [vmem:[#allocation6 + $0x84] ss:$16 sps:$4 sm:$0xff]   ;;  %v3213_v18 = vld [vmem:[#allocation6 + $0x8c] ss:$16 sps:$4 sm:$0xff]   ;;  %v3215_v19 = vld [vmem:[#allocation6 + $0x80] ss:$16 sps:$4 sm:$0xff]  }
  0x62   :  { %431 = vmatpush1.bf16.msra.mxu0 %v3197_v7  ;;  %624 = vmatpush1.bf16.msra.mxu1 %v3198_v8  ;;  %v3216_v20 = vld [vmem:[#allocation6 + $0x88] ss:$16 sps:$4 sm:$0xff]   ;;  %v3217_v21 = vld [vmem:[#allocation6 + $0xa4] ss:$16 sps:$4 sm:$0xff]   ;;  %v3219_v22 = vld [vmem:[#allocation6 + $0xac] ss:$16 sps:$4 sm:$0xff]  }
  0x63   :  { %432 = vmatprep.subr.bf16.mxu0 %v3199_v9  ;;  %625 = vmatprep.subr.bf16.mxu1 %v3201_v10  ;;  %v3221_v23 = vld [vmem:[#allocation6 + $0xa0] ss:$16 sps:$4 sm:$0xff]   ;;  %v3222_v24 = vld [vmem:[#allocation6 + $0xa8] ss:$16 sps:$4 sm:$0xff]   ;;  %v3223_v25 = vld [vmem:[#allocation6 + $0xc4] ss:$16 sps:$4 sm:$0xff]  }
  0x64   :  { %v3225_v26 = vld [vmem:[#allocation6 + $0xcc] ss:$16 sps:$4 sm:$0xff]   ;;  %v3227_v27 = vld [vmem:[#allocation6 + $0xc0] ss:$16 sps:$4 sm:$0xff]   ;;  %v3228_v28 = vld [vmem:[#allocation6 + $0xc8] ss:$16 sps:$4 sm:$0xff]  }
  0x65   :  { %v3229_v29 = vld [vmem:[#allocation6 + $0xe4] ss:$16 sps:$4 sm:$0xff]   ;;  %v3231_v30 = vld [vmem:[#allocation6 + $0xec] ss:$16 sps:$4 sm:$0xff]   ;;  %v3233_v31 = vld [vmem:[#allocation6 + $0xe0] ss:$16 sps:$4 sm:$0xff]  }
  0x66   :  { %433 = vmatpush1.bf16.msra.mxu0 %v3203_v11  ;;  %626 = vmatpush1.bf16.msra.mxu1 %v3204_v12  ;;  %v3234_v32 = vld [vmem:[#allocation6 + $0xe8] ss:$16 sps:$4 sm:$0xff]   ;;  %v3235_v33 = vld [vmem:[#allocation3] sm:$0xff]   ;;  %v3255_v39 = vld [vmem:[#allocation9 + $0x48] sm:$0xff]   ;;  %s3689_s4 = smov [#allocation12]  }
  0x67   :  { %434 = vmatprep.subr.bf16.mxu0 %v3205_v13  ;;  %627 = vmatprep.subr.bf16.mxu1 %v3207_v14  ;;  %v3250_v35 = vld [vmem:[#allocation9 + $0x40] sm:$0xff]   ;;  %v3256_v40 = vld [vmem:[#allocation9 + $0xc8] sm:$0xff]   ;;  %v3259_v44 = vld [vmem:[#allocation9 + $0x50] sm:$0xff]   ;;  %s2855_s28 = sshll.u32 %s3689_s4, 4  ;;  %s2856_s28 = int_to_ptr.vmem [resolvable:$true] %s2855_s28 }
  0x68   :  { %v3251_v36 = vld [vmem:[#allocation9 + $0xc0] sm:$0xff]   ;;  %v3257_v41 = vld [vmem:[#allocation9 + $0x8] sm:$0xff]   ;;  %v3260_v45 = vld [vmem:[#allocation9 + $0xd0] sm:$0xff]   ;;  %s3649_s29 = scalar_lea.vmem %s2856_s28, 4096  ;;  %p3654_p13 = scmp.lt.s32.totalorder %s2856_s28, %s2856_s28 }
  0x69   :  { %v3252_v37 = vld [vmem:[#allocation9] sm:$0xff]   ;;  %v3237_v42 = vld [vmem:[#allocation3 + $0x10] sm:$0xff]   ;;  %v3263_v48 = vld [vmem:[#allocation9 + $0x58] sm:$0xff]   ;;  %p3650_p12 = scmp.ne.s32.totalorder %s2856_s28, %s3649_s29  ;;  %p3655_p0 = scmp.lt.s32.totalorder %s3649_s29, %s3649_s29 }
  0x6a   :  { %435 = vmatpush1.bf16.msra.mxu0 %v3209_v15  ;;  %628 = vmatpush1.bf16.msra.mxu1 %v3210_v16  ;;  %v3253_v38 = vld [vmem:[#allocation9 + $0x80] sm:$0xff]   ;;  %v3258_v43 = vld [vmem:[#allocation9 + $0x88] sm:$0xff]   ;;  %v3261_v46 = vld [vmem:[#allocation9 + $0x10] sm:$0xff]  }
  0x6b   :  { %436 = vmatprep.subr.bf16.mxu0 %v3211_v17  ;;  %629 = vmatprep.subr.bf16.mxu1 %v3213_v18  ;;  %v3262_v47 = vld [vmem:[#allocation9 + $0x90] sm:$0xff]   ;;  %v3264_v49 = vld [vmem:[#allocation9 + $0xd8] sm:$0xff]   ;;  %v3267_v53 = vld [vmem:[#allocation9 + $0x60] sm:$0xff]   ;;  %v152_v18 = vlaneseq  ;;  %p3656_p1 = por %p3655_p0, %p3654_p13 }
  0x6c   :  { %v3265_v50 = vld [vmem:[#allocation9 + $0x18] sm:$0xff]   ;;  %v3268_v54 = vld [vmem:[#allocation9 + $0xe0] sm:$0xff]   ;;  %v3271_v57 = vld [vmem:[#allocation9 + $0x68] sm:$0xff]  }
  0x6d   :  { %v3238_v51 = vld [vmem:[#allocation3 + $0x18] sm:$0xff]   ;;  %v3269_v55 = vld [vmem:[#allocation9 + $0x20] sm:$0xff]   ;;  %v3272_v58 = vld [vmem:[#allocation9 + $0xe8] sm:$0xff]   ;;  %p3657_p2 = pnand %p3656_p1, %p3650_p12 }
  0x6e   :  { %437 = vmatpush1.bf16.msra.mxu0 %v3215_v19  ;;  %630 = vmatpush1.bf16.msra.mxu1 %v3216_v20  ;;  %v3266_v52 = vld [vmem:[#allocation9 + $0x98] sm:$0xff]   ;;  %v3270_v56 = vld [vmem:[#allocation9 + $0xa0] sm:$0xff]   ;;  %v3273_v59 = vld [vmem:[#allocation9 + $0x28] sm:$0xff]   ;;  %v153_v19 = vshrl.u32 %v152_v18, 7 }
  0x6f   :  { %438 = vmatprep.subr.bf16.mxu0 %v3217_v21  ;;  %631 = vmatprep.subr.bf16.mxu1 %v3219_v22  ;;  %v3239_v60 = vld [vmem:[#allocation3 + $0x20] sm:$0xff]   ;;  %v3274_v61 = vld [vmem:[#allocation9 + $0xa8] sm:$0xff]   ;;  %v3242_v1 = vld [vmem:[#allocation3 + $0x38] sm:$0xff]  }
  0x70   :  { %v3240_v62 = vld [vmem:[#allocation3 + $0x28] sm:$0xff]   ;;  %v3241_v63 = vld [vmem:[#allocation3 + $0x30] sm:$0xff]   ;;  %v3243_v2 = vld [vmem:[#allocation3 + $0x40] sm:$0xff]   ;;  %v154_v20 = vsub.s32 0, %v153_v19  ;;  %v162_v21 = vsub.s32 2, %v153_v19 }
  0x71   :  { %v3244_v3 = vld [vmem:[#allocation3 + $0x48] sm:$0xff]   ;;  %v3245_v4 = vld [vmem:[#allocation3 + $0x50] sm:$0xff]   ;;  %v3246_v5 = vld [vmem:[#allocation3 + $0x58] sm:$0xff]  }
  0x72   :  { %439 = vmatpush1.bf16.msra.mxu0 %v3221_v23  ;;  %632 = vmatpush1.bf16.msra.mxu1 %v3222_v24  ;;  %v3247_v6 = vld [vmem:[#allocation3 + $0x60] sm:$0xff]   ;;  %v3275_v7 = vld [vmem:[#allocation9 + $0x70] sm:$0xff]   ;;  %v3248_v9 = vld [vmem:[#allocation3 + $0x68] sm:$0xff]   ;;  %v158_v23 = vsub.s32 1, %v153_v19  ;;  %v166_v24 = vsub.s32 3, %v153_v19 }
  0x73   :  { %440 = vmatprep.subr.bf16.mxu0 %v3223_v25  ;;  %633 = vmatprep.subr.bf16.mxu1 %v3225_v26  ;;  %v3276_v8 = vld [vmem:[#allocation9 + $0xf0] sm:$0xff]   ;;  %v3279_v13 = vld [vmem:[#allocation9 + $0x78] sm:$0xff]  }
  0x74   :  { %v3277_v10 = vld [vmem:[#allocation9 + $0x30] sm:$0xff]   ;;  %v3280_v14 = vld [vmem:[#allocation9 + $0xf8] sm:$0xff]  }
  0x75   :  { %v3278_v11 = vld [vmem:[#allocation9 + $0xb0] sm:$0xff]   ;;  %v3281_v15 = vld [vmem:[#allocation9 + $0x38] sm:$0xff]  }
  0x76   :  { %441 = vmatpush1.bf16.msra.mxu0 %v3227_v27  ;;  %634 = vmatpush1.bf16.msra.mxu1 %v3228_v28  ;;  %v3249_v12 = vld [vmem:[#allocation3 + $0x70] sm:$0xff]   ;;  %v3282_v16 = vld [vmem:[#allocation9 + $0xb8] sm:$0xff]  }
  0x77   :  { %442 = vmatprep.subr.bf16.mxu0 %v3229_v29  ;;  %635 = vmatprep.subr.bf16.mxu1 %v3231_v30  ;;  %v3254_v17 = vld [vmem:[#allocation3 + $0x78] sm:$0xff]   ;;  %v150_v22 = vld [vmem:[#allocation8] sm:$0xf] }
  0x78   :  { %v3814_v25 = vrot.slane %v150_v22, %v154_v20  ;;  %v3816_v26 = vrot.slane %v150_v22, %v162_v21  ;;  %v3820_v27 = vrot.slane %v150_v22, %v166_v24 }
  0x7a   :  { %443 = vmatpush1.bf16.msra.mxu0 %v3233_v31  ;;  %636 = vmatpush1.bf16.msra.mxu1 %v3234_v32 }
  0x7b   :  { %2950 = vmatprep.subr.bf16.mxu0 %v3250_v35  ;;  %3062 = vmatprep.subr.bf16.mxu1 %v3251_v36 }
  0x7d   :  { %461 = vmatmul.mubr.bf16.vlgmr.msra.gmra.mrb[0].mxu0 %v3235_v33  ;;  %654 = vmatmul.mubr.bf16.vlgmr.msra.gmra.mrb[0].mxu1 %v3235_v33 }
  0x7e   :  { %470 = vmatprep.mubr.bf16.mxu0 %v3688_v0  ;;  %663 = vmatprep.mubr.bf16.mxu1 %v3688_v0 }
  0x7f   :  { %2951 = vmatpush3.bf16.msra.mxu0 %v3252_v37  ;;  %3063 = vmatpush3.bf16.msra.mxu1 %v3253_v38 }
  0x80   :  { %2952 = vmatprep.subr.bf16.mxu0 %v3255_v39  ;;  %3064 = vmatprep.subr.bf16.mxu1 %v3256_v40 }
  0x83   :  { %2953 = vmatpush3.bf16.msra.mxu0 %v3257_v41  ;;  %3065 = vmatpush3.bf16.msra.mxu1 %v3258_v43 }
  0x84   :  { %2954 = vmatprep.subr.bf16.mxu0 %v3259_v44  ;;  %3066 = vmatprep.subr.bf16.mxu1 %v3260_v45 }
  0x85   :  { %471 = vmatmul.mubr.bf16.gmra.mrb[4].mxu0 %v3236_v34  ;;  %664 = vmatmul.mubr.bf16.gmra.mrb[4].mxu1 %v3236_v34 }
  0x86   :  { %480 = vmatprep.mubr.bf16.mxu0 %v3688_v0  ;;  %673 = vmatprep.mubr.bf16.mxu1 %v3688_v0 }
  0x87   :  { %2955 = vmatpush3.bf16.msra.mxu0 %v3261_v46  ;;  %3067 = vmatpush3.bf16.msra.mxu1 %v3262_v47 }
  0x88   :  { %2956 = vmatprep.subr.bf16.mxu0 %v3263_v48  ;;  %3068 = vmatprep.subr.bf16.mxu1 %v3264_v49 }
  0x8b   :  { %2957 = vmatpush3.bf16.msra.mxu0 %v3265_v50  ;;  %3069 = vmatpush3.bf16.msra.mxu1 %v3266_v52 }
  0x8c   :  { %2958 = vmatprep.subr.bf16.mxu0 %v3267_v53  ;;  %3070 = vmatprep.subr.bf16.mxu1 %v3268_v54 }
  0x8d   :  { %481 = vmatmul.mubr.bf16.gmra.mrb[8].mxu0 %v3237_v42  ;;  %674 = vmatmul.mubr.bf16.gmra.mrb[8].mxu1 %v3237_v42 }
  0x8e   :  { %490 = vmatprep.mubr.bf16.mxu0 %v3688_v0  ;;  %683 = vmatprep.mubr.bf16.mxu1 %v3688_v0 }
  0x8f   :  { %2959 = vmatpush3.bf16.msra.mxu0 %v3269_v55  ;;  %3071 = vmatpush3.bf16.msra.mxu1 %v3270_v56 }
  0x90   :  { %2960 = vmatprep.subr.bf16.mxu0 %v3271_v57  ;;  %3072 = vmatprep.subr.bf16.mxu1 %v3272_v58 }
  0x93   :  { %2961 = vmatpush3.bf16.msra.mxu0 %v3273_v59  ;;  %3073 = vmatpush3.bf16.msra.mxu1 %v3274_v61 }
  0x94   :  { %2962 = vmatprep.subr.bf16.mxu0 %v3275_v7  ;;  %3074 = vmatprep.subr.bf16.mxu1 %v3276_v8 }
  0x95   :  { %491 = vmatmul.mubr.bf16.gmra.mrb[12].mxu0 %v3238_v51  ;;  %684 = vmatmul.mubr.bf16.gmra.mrb[12].mxu1 %v3238_v51 }
  0x96   :  { %500 = vmatprep.mubr.bf16.mxu0 %v3688_v0  ;;  %693 = vmatprep.mubr.bf16.mxu1 %v3688_v0 }
  0x97   :  { %2963 = vmatpush3.bf16.msra.mxu0 %v3277_v10  ;;  %3075 = vmatpush3.bf16.msra.mxu1 %v3278_v11 }
  0x98   :  { %2964 = vmatprep.subr.bf16.mxu0 %v3279_v13  ;;  %3076 = vmatprep.subr.bf16.mxu1 %v3280_v14 }
  0x9b   :  { %2965 = vmatpush3.bf16.msra.mxu0 %v3281_v15  ;;  %3077 = vmatpush3.bf16.msra.mxu1 %v3282_v16 }
  0x9d   :  { %501 = vmatmul.mubr.bf16.gmra.mrb[16].mxu0 %v3239_v60  ;;  %694 = vmatmul.mubr.bf16.gmra.mrb[16].mxu1 %v3239_v60 }
  0x9e   :  { %510 = vmatprep.mubr.bf16.mxu0 %v3688_v0  ;;  %703 = vmatprep.mubr.bf16.mxu1 %v3688_v0 }
  0xa5   :  { %511 = vmatmul.mubr.bf16.gmra.mrb[20].mxu0 %v3240_v62  ;;  %704 = vmatmul.mubr.bf16.gmra.mrb[20].mxu1 %v3240_v62 }
  0xa6   :  { %520 = vmatprep.mubr.bf16.mxu0 %v3688_v0  ;;  %713 = vmatprep.mubr.bf16.mxu1 %v3688_v0 }
  0xad   :  { %521 = vmatmul.mubr.bf16.gmra.mrb[24].mxu0 %v3241_v63  ;;  %714 = vmatmul.mubr.bf16.gmra.mrb[24].mxu1 %v3241_v63 }
  0xae   :  { %530 = vmatprep.mubr.bf16.mxu0 %v3688_v0  ;;  %723 = vmatprep.mubr.bf16.mxu1 %v3688_v0 }
  0xb5   :  { %531 = vmatmul.mubr.bf16.gmra.mrb[28].mxu0 %v3242_v1  ;;  %724 = vmatmul.mubr.bf16.gmra.mrb[28].mxu1 %v3242_v1 }
  0xb6   :  { %540 = vmatprep.mubr.bf16.mxu0 %v3688_v0  ;;  %733 = vmatprep.mubr.bf16.mxu1 %v3688_v0 }
  0xbd   :  { %541 = vmatmul.mubr.bf16.gmra.mrb[32].mxu0 %v3243_v2  ;;  %734 = vmatmul.mubr.bf16.gmra.mrb[32].mxu1 %v3243_v2 }
  0xbe   :  { %550 = vmatprep.mubr.bf16.mxu0 %v3688_v0  ;;  %743 = vmatprep.mubr.bf16.mxu1 %v3688_v0 }
  0xc5   :  { %551 = vmatmul.mubr.bf16.gmra.mrb[36].mxu0 %v3244_v3  ;;  %744 = vmatmul.mubr.bf16.gmra.mrb[36].mxu1 %v3244_v3 }
  0xc6   :  { %560 = vmatprep.mubr.bf16.mxu0 %v3688_v0  ;;  %753 = vmatprep.mubr.bf16.mxu1 %v3688_v0 }
  0xcd   :  { %561 = vmatmul.mubr.bf16.gmra.mrb[40].mxu0 %v3245_v4  ;;  %754 = vmatmul.mubr.bf16.gmra.mrb[40].mxu1 %v3245_v4 }
  0xce   :  { %570 = vmatprep.mubr.bf16.mxu0 %v3688_v0  ;;  %763 = vmatprep.mubr.bf16.mxu1 %v3688_v0 }
  0xd5   :  { %571 = vmatmul.mubr.bf16.gmra.mrb[44].mxu0 %v3246_v5  ;;  %764 = vmatmul.mubr.bf16.gmra.mrb[44].mxu1 %v3246_v5 }
  0xd6   :  { %580 = vmatprep.mubr.bf16.mxu0 %v3688_v0  ;;  %773 = vmatprep.mubr.bf16.mxu1 %v3688_v0 }
  0xdd   :  { %581 = vmatmul.mubr.bf16.gmra.mrb[48].mxu0 %v3247_v6  ;;  %774 = vmatmul.mubr.bf16.gmra.mrb[48].mxu1 %v3247_v6 }
  0xde   :  { %590 = vmatprep.mubr.bf16.mxu0 %v3688_v0  ;;  %783 = vmatprep.mubr.bf16.mxu1 %v3688_v0 }
  0xe5   :  { %591 = vmatmul.mubr.bf16.gmra.mrb[52].mxu0 %v3248_v9  ;;  %784 = vmatmul.mubr.bf16.gmra.mrb[52].mxu1 %v3248_v9 }
  0xe6   :  { %600 = vmatprep.mubr.bf16.mxu0 %v3688_v0  ;;  %793 = vmatprep.mubr.bf16.mxu1 %v3688_v0 }
  0xed   :  { %601 = vmatmul.mubr.bf16.gmra.mrb[56].mxu0 %v3249_v12  ;;  %794 = vmatmul.mubr.bf16.gmra.mrb[56].mxu1 %v3249_v12 }
  0xee   :  { %610 = vmatprep.mubr.bf16.mxu0 %v3688_v0  ;;  %803 = vmatprep.mubr.bf16.mxu1 %v3688_v0  ;;  %v3818_v0 = vrot.slane %v150_v22, %v158_v23 }
  0xf5   :  { %611 = vmatmul.mubr.bf16.gmra.mrb[60].mxu0 %v3254_v17  ;;  %804 = vmatmul.mubr.bf16.gmra.mrb[60].mxu1 %v3254_v17 }
 0x150   :  { %v462_v28 = vpop.f32.mrb[0].mxu0  ;;  %v655_v29 = vpop.f32.mrb[0].mxu1 }
 0x151   :  { %v463_v30 = vadd.f32 %v462_v28, %v3814_v25  ;;  %v656_v31 = vadd.f32 %v655_v29, %v3816_v26  ;;  %v464_v32 = vpop.f32.mrb[1].mxu0  ;;  %v657_v33 = vpop.f32.mrb[1].mxu1 }
 0x152   :  { %v3825_v34 = vadd.f32 %v464_v32, %v3818_v0  ;;  %v3828_v35 = vadd.f32 %v657_v33, %v3820_v27  ;;  %v466_v36 = vpop.f32.mrb[2].mxu0  ;;  %v659_v37 = vpop.f32.mrb[2].mxu1 }
 0x153   :  { %v942_v38 = vmul.f32 0.044715, %v463_v30  ;;  %v944_v39 = vmul.f32 0.044715, %v656_v31  ;;  %v467_v42 = vadd.f32 %v466_v36, %v3814_v25  ;;  %v660_v43 = vadd.f32 %v659_v37, %v3816_v26  ;;  %v468_v44 = vpop.f32.mrb[3].mxu0  ;;  %v661_v45 = vpop.f32.mrb[3].mxu1 }
 0x154   :  { %v943_v40 = vmul.f32 0.044715, %v3825_v34  ;;  %v945_v41 = vmul.f32 0.044715, %v3828_v35  ;;  %v3835_v48 = vadd.f32 %v468_v44, %v3818_v0  ;;  %v3838_v49 = vadd.f32 %v661_v45, %v3820_v27 }
 0x155   :  { %v1070_v46 = vmul.f32 %v942_v38, %v463_v30  ;;  %v1072_v47 = vmul.f32 %v944_v39, %v656_v31  ;;  %v3840_v50 = vmul.f32 0.5, %v463_v30  ;;  %v946_v51 = vmul.f32 0.044715, %v467_v42 }
 0x156   :  { %v3842_v53 = vmul.f32 0.5, %v656_v31  ;;  %v948_v55 = vmul.f32 0.044715, %v660_v43  ;;  %v1071_v56 = vmul.f32 %v943_v40, %v3825_v34  ;;  %v1073_v57 = vmul.f32 %v945_v41, %v3828_v35 }
 0x157   :  { %v1198_v52 = vmul.f32 %v1070_v46, %v463_v30  ;;  %v1200_v54 = vmul.f32 %v1072_v47, %v656_v31  ;;  %v1074_v58 = vmul.f32 %v946_v51, %v467_v42  ;;  %v947_v59 = vmul.f32 0.044715, %v3835_v48 }
 0x158   :  { %v472_v60 = vpop.f32.mrb[4].mxu0  ;;  %v665_v61 = vpop.f32.mrb[4].mxu1  ;;  %v1076_v1 = vmul.f32 %v948_v55, %v660_v43  ;;  %v949_v2 = vmul.f32 0.044715, %v3838_v49  ;;  %v3855_v12 = vmul.f32 0.5, %v467_v42  ;;  %v3858_v19 = vmul.f32 0.5, %v660_v43 }
 0x159   :  { %v1326_v62 = vadd.f32 %v1198_v52, %v463_v30  ;;  %v1328_v63 = vadd.f32 %v1200_v54, %v656_v31  ;;  %v474_v3 = vpop.f32.mrb[5].mxu0  ;;  %v667_v4 = vpop.f32.mrb[5].mxu1  ;;  %v1202_v5 = vmul.f32 %v1074_v58, %v467_v42  ;;  %v1075_v6 = vmul.f32 %v947_v59, %v3835_v48 }
 0x15a   :  { %v3850_v7 = vadd.f32 %v472_v60, %v3814_v25  ;;  %v3853_v8 = vadd.f32 %v665_v61, %v3816_v26  ;;  %v476_v9 = vpop.f32.mrb[6].mxu0  ;;  %v669_v10 = vpop.f32.mrb[6].mxu1  ;;  %v1204_v13 = vmul.f32 %v1076_v1, %v660_v43  ;;  %v1077_v14 = vmul.f32 %v949_v2, %v3838_v49 }
 0x15b   :  { %v1454_v11 = vmul.f32 0.7978846, %v1326_v62  ;;  %v478_v15 = vpop.f32.mrb[7].mxu0  ;;  %v671_v16 = vpop.f32.mrb[7].mxu1  ;;  %v1456_v17 = vmul.f32 0.7978846, %v1328_v63  ;;  %v1330_v18 = vadd.f32 %v1202_v5, %v467_v42  ;;  %v3862_v21 = vmul.f32 %v1071_v56, %v3825_v34 }
 0x15c   :  { %6001 = vst [vmem:[#allocation17_spill] sm:$0xff] %v3853_v8  ;;  %v950_v20 = vmul.f32 0.044715, %v3850_v7  ;;  %v1332_v22 = vadd.f32 %v1204_v13, %v660_v43  ;;  %v952_v23 = vmul.f32 0.044715, %v3853_v8  ;;  %v3866_v24 = vadd.f32 %v474_v3, %v3818_v0 }
 0x15d   :  { %3283 = vtanh.f32 %v1454_v11  ;;  %v3869_v28 = vmul.f32 %v1073_v57, %v3828_v35  ;;  %v3872_v29 = vmul.f32 %v1075_v6, %v3835_v48  ;;  %v3875_v30 = vmul.f32 %v1077_v14, %v3838_v49 }
 0x15e   :  { %v1458_v31 = vmul.f32 0.7978846, %v1330_v18  ;;  %v951_v32 = vmul.f32 0.044715, %v3866_v24  ;;  %v3879_v33 = vadd.f32 %v667_v4, %v3820_v27  ;;  %v3882_v36 = vadd.f32 %v476_v9, %v3814_v25 }
 0x15f   :  { %3285 = vtanh.f32 %v1456_v17  ;;  %v1460_v37 = vmul.f32 0.7978846, %v1332_v22  ;;  %v1078_v38 = vmul.f32 %v950_v20, %v3850_v7  ;;  %v3886_v39 = vadd.f32 %v669_v10, %v3816_v26 }
 0x160   :  { %6002 = vst [vmem:[#allocation18_spill] sm:$0xff] %v3882_v36  ;;  %v482_v40 = vpop.f32.mrb[8].mxu0  ;;  %v675_v41 = vpop.f32.mrb[8].mxu1  ;;  %v1080_v42 = vmul.f32 %v952_v23, %v3853_v8  ;;  %v1079_v43 = vmul.f32 %v951_v32, %v3866_v24  ;;  %v953_v44 = vmul.f32 0.044715, %v3879_v33  ;;  %v3894_v52 = vadd.f32 %v478_v15, %v3818_v0 }
 0x161   :  { %6003 = vst [vmem:[#allocation19_spill] sm:$0xff] %v3886_v39  ;;  %v954_v45 = vmul.f32 0.044715, %v3882_v36  ;;  %v484_v46 = vpop.f32.mrb[9].mxu0  ;;  %v677_v47 = vpop.f32.mrb[9].mxu1  ;;  %v3897_v54 = vadd.f32 %v671_v16, %v3820_v27  ;;  %v3900_v55 = vadd.f32 %v482_v40, %v3814_v25  ;;  %3287 = vtanh.f32 %v1458_v31 }
 0x162   :  { %v956_v51 = vmul.f32 0.044715, %v3886_v39  ;;  %v486_v56 = vpop.f32.mrb[10].mxu0  ;;  %v679_v57 = vpop.f32.mrb[10].mxu1  ;;  %v1081_v58 = vmul.f32 %v953_v44, %v3879_v33  ;;  %v3905_v60 = vadd.f32 %v675_v41, %v3816_v26  ;;  %v955_v1 = vmul.f32 0.044715, %v3894_v52 }
 0x163   :  { %6004 = vst [vmem:[#allocation20_spill] sm:$0xff] %v3900_v55  ;;  %v1082_v59 = vmul.f32 %v954_v45, %v3882_v36  ;;  %v488_v61 = vpop.f32.mrb[11].mxu0  ;;  %v681_v62 = vpop.f32.mrb[11].mxu1  ;;  %v957_v2 = vmul.f32 0.044715, %v3897_v54  ;;  %v3912_v4 = vmul.f32 %v1078_v38, %v3850_v7  ;;  %v3915_v5 = vmul.f32 %v1080_v42, %v3853_v8 }
 0x164   :  { %6005 = vst [vmem:[#allocation21_spill] sm:$0xff] %v3905_v60  ;;  %v1084_v63 = vmul.f32 %v956_v51, %v3886_v39  ;;  %v958_v3 = vmul.f32 0.044715, %v3900_v55  ;;  %v960_v6 = vmul.f32 0.044715, %v3905_v60  ;;  %v3919_v9 = vadd.f32 %v484_v46, %v3818_v0 }
 0x165   :  { %6006 = vst [vmem:[#allocation22_spill] sm:$0xff] %v3912_v4  ;;  %6007 = vst [vmem:[#allocation23_spill] sm:$0xff] %v3915_v5  ;;  %3289 = vtanh.f32 %v1460_v37  ;;  %v3922_v10 = vmul.f32 %v1079_v43, %v3866_v24  ;;  %v3925_v11 = vmul.f32 %v1081_v58, %v3879_v33  ;;  %v3928_v13 = vmul.f32 %v1082_v59, %v3882_v36 }
 0x166   :  { %6008 = vst [vmem:[#allocation24_spill] sm:$0xff] %v3919_v9  ;;  %v1083_v14 = vmul.f32 %v955_v1, %v3894_v52  ;;  %v959_v15 = vmul.f32 0.044715, %v3919_v9  ;;  %v3933_v16 = vadd.f32 %v677_v47, %v3820_v27  ;;  %v3936_v17 = vadd.f32 %v486_v56, %v3814_v25 }
 0x167   :  { %6009 = vst [vmem:[#allocation25_spill] sm:$0xff] %v3928_v13  ;;  %v3938_v18 = vpop.eup %3283  ;;  %v3941_v20 = vmul.f32 %v1084_v63, %v3886_v39  ;;  %v1085_v22 = vmul.f32 %v957_v2, %v3897_v54  ;;  %v1086_v23 = vmul.f32 %v958_v3, %v3900_v55  ;;  %v3946_v31 = vadd.f32 %v679_v57, %v3816_v26 }
 0x168   :  { %6010 = vst [vmem:[#allocation26_spill] sm:$0xff] %v3933_v16  ;;  %6011 = vst [vmem:[#allocation27_spill] sm:$0xff] %v3936_v17  ;;  %v492_v32 = vpop.f32.mrb[12].mxu0  ;;  %v685_v37 = vpop.f32.mrb[12].mxu1  ;;  %v1088_v38 = vmul.f32 %v960_v6, %v3905_v60  ;;  %v1087_v40 = vmul.f32 %v959_v15, %v3919_v9  ;;  %v961_v41 = vmul.f32 0.044715, %v3933_v16  ;;  %v3956_v47 = vadd.f32 %v488_v61, %v3818_v0 }
 0x169   :  { %6012 = vst [vmem:[#allocation28_spill] sm:$0xff] %v3941_v20  ;;  %6013 = vst [vmem:[#allocation29_spill] sm:$0xff] %v3946_v31  ;;  %v962_v42 = vmul.f32 0.044715, %v3936_v17  ;;  %v494_v43 = vpop.f32.mrb[13].mxu0  ;;  %v687_v44 = vpop.f32.mrb[13].mxu1  ;;  %v3959_v51 = vadd.f32 %v681_v62, %v3820_v27  ;;  %v3962_v56 = vadd.f32 %v492_v32, %v3814_v25  ;;  %v3965_v59 = vmul.f32 %v1083_v14, %v3894_v52 }
 0x16a   :  { %v3952_v45 = vpop.eup %3285  ;;  %v964_v46 = vmul.f32 0.044715, %v3946_v31  ;;  %6014 = vst [vmem:[#allocation30_spill] sm:$0xff] %v3956_v47  ;;  %v496_v57 = vpop.f32.mrb[14].mxu0  ;;  %v1089_v63 = vmul.f32 %v961_v41, %v3933_v16  ;;  %v3970_v2 = vadd.f32 %v685_v37, %v3816_v26  ;;  %v963_v6 = vmul.f32 0.044715, %v3956_v47 }
 0x16b   :  { %6015 = vst [vmem:[#allocation31_spill] sm:$0xff] %v3962_v56  ;;  %v689_v58 = vpop.f32.mrb[14].mxu1  ;;  %v1090_v1 = vmul.f32 %v962_v42, %v3936_v17  ;;  %v498_v61 = vpop.f32.mrb[15].mxu0  ;;  %v965_v15 = vmul.f32 0.044715, %v3959_v51  ;;  %v3979_v14 = vmul.f32 %v1085_v22, %v3897_v54  ;;  %v3982_v41 = vmul.f32 %v1086_v23, %v3900_v55 }
 0x16c   :  { %6016 = vst [vmem:[#allocation32_spill] sm:$0xff] %v3970_v2  ;;  %v691_v3 = vpop.f32.mrb[15].mxu1  ;;  %v1092_v62 = vmul.f32 %v964_v46, %v3946_v31  ;;  %v966_v32 = vmul.f32 0.044715, %v3962_v56  ;;  %v3976_v20 = vpop.eup %3287  ;;  %v968_v37 = vmul.f32 0.044715, %v3970_v2  ;;  %v3986_v42 = vadd.f32 %v494_v43, %v3818_v0 }
 0x16d   :  { %6017 = vst [vmem:[#allocation33_spill] sm:$0xff] %v3982_v41  ;;  %v3989_v46 = vmul.f32 %v1088_v38, %v3905_v60  ;;  %v3992_v39 = vmul.f32 %v1087_v40, %v3919_v9  ;;  %v3995_v5 = vmul.f32 %v1089_v63, %v3933_v16  ;;  %v1091_v22 = vmul.f32 %v963_v6, %v3956_v47 }
 0x16e   :  { %v3999_v8 = vmul.f32 %v1090_v1, %v3936_v17  ;;  %v967_v23 = vmul.f32 0.044715, %v3986_v42  ;;  %v4003_v41 = vadd.f32 %v687_v44, %v3820_v27  ;;  %v4006_v43 = vadd.f32 %v496_v57, %v3814_v25 }
 0x16f   :  { %6018 = vst [vmem:[#allocation34_spill] sm:$0xff] %v3989_v46  ;;  %6019 = vst [vmem:[#allocation35_spill] sm:$0xff] %v3992_v39  ;;  %v4008_v38 = vpop.eup %3289  ;;  %v4011_v40 = vmul.f32 %v1092_v62, %v3946_v31  ;;  %v1093_v63 = vmul.f32 %v965_v15, %v3959_v51  ;;  %v1094_v6 = vmul.f32 %v966_v32, %v3962_v56 }
 0x170   :  { %6020 = vst [vmem:[#allocation36_spill] sm:$0xff] %v3995_v5  ;;  %6021 = vst [vmem:[#allocation37_spill] sm:$0xff] %v3999_v8  ;;  %v4016_v1 = vadd.f32 %v689_v58, %v3816_v26  ;;  %v502_v46 = vpop.f32.mrb[16].mxu0  ;;  %v695_v60 = vpop.f32.mrb[16].mxu1  ;;  %v4019_v44 = vmul.f32 %v1091_v22, %v3956_v47  ;;  %v1096_v57 = vmul.f32 %v968_v37, %v3970_v2  ;;  %v969_v8 = vmul.f32 0.044715, %v4003_v41 }
 0x171   :  { %6022 = vst [vmem:[#allocation38_spill] sm:$0xff] %v4003_v41  ;;  %6023 = vst [vmem:[#allocation39_spill] sm:$0xff] %v4006_v43  ;;  %v970_v17 = vmul.f32 0.044715, %v4006_v43  ;;  %v504_v62 = vpop.f32.mrb[17].mxu0  ;;  %v4026_v32 = vadd.f32 %v498_v61, %v3818_v0  ;;  %v4029_v58 = vadd.f32 %v691_v3, %v3820_v27  ;;  %v4032_v31 = vadd.f32 %v502_v46, %v3814_v25 }
 0x172   :  { %6024 = vst [vmem:[#allocation40_spill] sm:$0xff] %v4011_v40  ;;  %6025 = vst [vmem:[#allocation41_spill] sm:$0xff] %v4016_v1  ;;  %v697_v40 = vpop.f32.mrb[17].mxu1  ;;  %v972_v15 = vmul.f32 0.044715, %v4016_v1  ;;  %v506_v22 = vpop.f32.mrb[18].mxu0  ;;  %v1095_v37 = vmul.f32 %v967_v23, %v3986_v42  ;;  %v1097_v5 = vmul.f32 %v969_v8, %v4003_v41  ;;  %v4049_v23 = vmul.f32 %v1093_v63, %v3959_v51 }
 0x173   :  { %6026 = vst [vmem:[#allocation42_spill] sm:$0xff] %v4019_v44  ;;  %6027 = vst [vmem:[#allocation43_spill] sm:$0xff] %v4029_v58  ;;  %v699_v55 = vpop.f32.mrb[18].mxu1  ;;  %v1098_v16 = vmul.f32 %v970_v17, %v4006_v43  ;;  %v4038_v44 = vadd.f32 %v695_v60, %v3816_v26  ;;  %v4040_v39 = vpop.f32.mrb[19].mxu0  ;;  %v971_v46 = vmul.f32 0.044715, %v4026_v32  ;;  %v4052_v8 = vmul.f32 %v1094_v6, %v3962_v56 }
 0x174   :  { %6028 = vst [vmem:[#allocation44_spill] sm:$0xff] %v4032_v31  ;;  %v4042_v61 = vpop.f32.mrb[19].mxu1  ;;  %v1100_v3 = vmul.f32 %v972_v15, %v4016_v1  ;;  %v973_v47 = vmul.f32 0.044715, %v4029_v58  ;;  %v974_v9 = vmul.f32 0.044715, %v4032_v31  ;;  %v4056_v17 = vadd.f32 %v504_v62, %v3818_v0 }
 0x175   :  { %6029 = vst [vmem:[#allocation45_spill] sm:$0xff] %v4038_v44  ;;  %6030 = vst [vmem:[#allocation46_spill] sm:$0xff] %v4052_v8  ;;  %v976_v60 = vmul.f32 0.044715, %v4038_v44  ;;  %v4059_v13 = vmul.f32 %v1096_v57, %v3970_v2  ;;  %v1099_v15 = vmul.f32 %v971_v46, %v4026_v32  ;;  %v4065_v63 = vmul.f32 %v1095_v37, %v3986_v42 }
 0x176   :  { %6031 = vst [vmem:[#allocation47_spill] sm:$0xff] %v4056_v17  ;;  %v1101_v36 = vmul.f32 %v973_v47, %v4029_v58  ;;  %v1102_v4 = vmul.f32 %v974_v9, %v4032_v31  ;;  %v975_v8 = vmul.f32 0.044715, %v4056_v17  ;;  %v4070_v56 = vadd.f32 %v697_v40, %v3820_v27 }
 0x177   :  { %6032 = vst [vmem:[#allocation48_spill] sm:$0xff] %v4059_v13  ;;  %v1104_v6 = vmul.f32 %v976_v60, %v4038_v44  ;;  %v4073_v62 = vmul.f32 %v1097_v5, %v4003_v41  ;;  %v4076_v57 = vmul.f32 %v1098_v16, %v4006_v43  ;;  %v4079_v47 = vmul.f32 %v1100_v3, %v4016_v1 }
 0x178   :  { %6033 = vst [vmem:[#allocation49_spill] sm:$0xff] %v4070_v56  ;;  %v4082_v9 = vmul.f32 0.5, %v3825_v34  ;;  %v512_v37 = vpop.f32.mrb[20].mxu0  ;;  %v705_v46 = vpop.f32.mrb[20].mxu1  ;;  %v4085_v60 = vmul.f32 %v1099_v15, %v4026_v32  ;;  %v4088_v40 = vmul.f32 %v1101_v36, %v4029_v58  ;;  %v4091_v5 = vmul.f32 %v1102_v4, %v4032_v31 }
 0x179   :  { %6034 = vst [vmem:[#allocation50_spill] sm:$0xff] %v4073_v62  ;;  %6035 = vst [vmem:[#allocation51_spill] sm:$0xff] %v4076_v57  ;;  %v1327_v16 = vadd.f32 %v3862_v21, %v3825_v34  ;;  %v514_v13 = vpop.f32.mrb[21].mxu0  ;;  %v707_v3 = vpop.f32.mrb[21].mxu1  ;;  %v4099_v1 = vmul.f32 0.5, %v3835_v48  ;;  %v1331_v15 = vadd.f32 %v3872_v29, %v3835_v48  ;;  %v1329_v36 = vadd.f32 %v3869_v28, %v3828_v35 }
 0x17a   :  { %6036 = vst [vmem:[#allocation52_spill] sm:$0xff] %v4079_v47  ;;  %6037 = vst [vmem:[#allocation53_spill] sm:$0xff] %v4085_v60  ;;  %v4096_v47 = vmul.f32 %v1104_v6, %v4038_v44  ;;  %v4105_v2 = vpop.f32.mrb[22].mxu0  ;;  %v4107_v4 = vpop.f32.mrb[22].mxu1  ;;  %v1103_v34 = vmul.f32 %v975_v8, %v4056_v17  ;;  %v977_v21 = vmul.f32 0.044715, %v4070_v56  ;;  %v1333_v6 = vadd.f32 %v3875_v30, %v3838_v49 }
 0x17b   :  { %6038 = vst [vmem:[#allocation54_spill] sm:$0xff] %v4088_v40  ;;  %6039 = vst [vmem:[#allocation55_spill] sm:$0xff] %v4091_v5  ;;  %v1455_v5 = vmul.f32 0.7978846, %v1327_v16  ;;  %v4115_v44 = vpop.f32.mrb[23].mxu1  ;;  %v4118_v28 = vadd.f32 %v506_v22, %v3814_v25  ;;  %v4121_v31 = vadd.f32 %v699_v55, %v3816_v26  ;;  %v4124_v8 = vmul.f32 0.5, %v3828_v35 }
 0x17c   :  { %6040 = vst [vmem:[#allocation56_spill] sm:$0xff] %v4096_v47  ;;  %v4113_v47 = vpop.f32.mrb[23].mxu0  ;;  %v1459_v48 = vmul.f32 0.7978846, %v1331_v15  ;;  %v1457_v29 = vmul.f32 0.7978846, %v1329_v36  ;;  %v1105_v35 = vmul.f32 %v977_v21, %v4070_v56 }
 0x17d   :  { %6041 = vst [vmem:[#allocation57_spill] sm:$0xff] %v4118_v28  ;;  %6042 = vst [vmem:[#allocation58_spill] sm:$0xff] %v4121_v31  ;;  %3291 = vtanh.f32 %v1455_v5  ;;  %v1461_v16 = vmul.f32 0.7978846, %v1333_v6  ;;  %v1710_v57 = vadd.f32 1.0, %v3938_v18  ;;  %v1714_v15 = vadd.f32 1.0, %v3976_v20 }
 0x17e   :  { %3293 = vtanh.f32 %v1459_v48  ;;  %v978_v30 = vmul.f32 0.044715, %v4118_v28  ;;  %v980_v43 = vmul.f32 0.044715, %v4121_v31  ;;  %v4131_v22 = vmul.f32 0.5, %v3838_v49 }
 0x17f   :  { %3295 = vtanh.f32 %v1457_v29  ;;  %v1712_v55 = vadd.f32 1.0, %v3952_v45  ;;  %v1716_v5 = vadd.f32 1.0, %v4008_v38  ;;  %v4137_v18 = vmul.f32 %v1710_v57, %v3840_v50 }
 0x180   :  { %3297 = vtanh.f32 %v1461_v16  ;;  %v4140_v36 = vmul.f32 %v1714_v15, %v3855_v12  ;;  %v4142_v6 = vpop.f32.mrb[24].mxu0  ;;  %v4144_v20 = vpop.f32.mrb[24].mxu1  ;;  %v4154_v38 = vadd.f32 %v4040_v39, %v3818_v0  ;;  %v4158_v50 = vadd.f32 %v4042_v61, %v3820_v27 }
 0x181   :  { %v4147_v49 = vmul.f32 %v1712_v55, %v3842_v53  ;;  %v4150_v45 = vmul.f32 %v1716_v5, %v3858_v19  ;;  %v4160_v12 = vpop.f32.mrb[25].mxu0  ;;  %v4162_v57 = vpop.f32.mrb[25].mxu1  ;;  %v1106_v21 = vmul.f32 %v978_v30, %v4118_v28  ;;  %v1108_v53 = vmul.f32 %v980_v43, %v4121_v31 }
 0x182   :  { %6043 = vst [vmem:[#allocation59_spill] sm:$0xff] %v4154_v38  ;;  %v4169_v48 = vadd.f32 %v512_v37, %v3814_v25  ;;  %v4171_v39 = vpop.f32.mrb[26].mxu0  ;;  %v4173_v29 = vpop.f32.mrb[26].mxu1  ;;  %v979_v16 = vmul.f32 0.044715, %v4154_v38  ;;  %v4180_v30 = vadd.f32 %v705_v46, %v3816_v26  ;;  %v4187_v37 = vmul.f32 %v1103_v34, %v4056_v17 }
 0x183   :  { %v981_v15 = vmul.f32 0.044715, %v4158_v50  ;;  %v4182_v43 = vpop.f32.mrb[27].mxu0  ;;  %v4184_v55 = vpop.f32.mrb[27].mxu1  ;;  %v4191_v19 = vadd.f32 %v514_v13, %v3818_v0  ;;  %v4194_v61 = vadd.f32 %v707_v3, %v3820_v27  ;;  %v4197_v40 = vmul.f32 %v1105_v35, %v4070_v56 }
 0x184   :  { %6044 = vst [vmem:[#allocation60_spill] sm:$0xff] %v4169_v48  ;;  %6045 = vst [vmem:[#allocation61_spill] sm:$0xff] %v4180_v30  ;;  %v982_v5 = vmul.f32 0.044715, %v4169_v48  ;;  %v1107_v46 = vmul.f32 %v979_v16, %v4154_v38  ;;  %v984_v62 = vmul.f32 0.044715, %v4180_v30  ;;  %v1335_v13 = vadd.f32 %v3922_v10, %v3866_v24 }
 0x185   :  { %6046 = vst [vmem:[#allocation62_spill] sm:$0xff] %v4187_v37  ;;  %6047 = vst [vmem:[#allocation63_spill] sm:$0xff] %v4191_v19  ;;  %v1109_v58 = vmul.f32 %v981_v15, %v4158_v50  ;;  %v983_v37 = vmul.f32 0.044715, %v4191_v19  ;;  %v985_v17 = vmul.f32 0.044715, %v4194_v61  ;;  %v4208_v41 = vmul.f32 %v1106_v21, %v4118_v28 }
 0x186   :  { %6048 = vst [vmem:[#allocation64_spill] sm:$0xff] %v4194_v61  ;;  %6049 = vst [vmem:[#allocation65_spill] sm:$0xff] %v4197_v40  ;;  %v1110_v34 = vmul.f32 %v982_v5, %v4169_v48  ;;  %v4211_v35 = vmul.f32 %v1108_v53, %v4121_v31  ;;  %v4214_v16 = vmul.f32 0.5, %v3866_v24  ;;  %v1339_v15 = vadd.f32 %v3965_v59, %v3894_v52 }
 0x187   :  { %v3292_v3 = vpop.eup %3291  ;;  %6050 = vst [vmem:[#allocation66_spill] sm:$0xff] %v4208_v41  ;;  %v4219_v56 = vmul.f32 %v1107_v46, %v4154_v38  ;;  %v1112_v10 = vmul.f32 %v984_v62, %v4180_v30  ;;  %v4223_v60 = vmul.f32 0.5, %v3894_v52  ;;  %v4230_v31 = vmul.f32 %v1109_v58, %v4158_v50 }
 0x188   :  { %6051 = vst [vmem:[#allocation67_spill] sm:$0xff] %v4211_v35  ;;  %v3294_v5 = vpop.eup %3293  ;;  %v1711_v40 = vadd.f32 1.0, %v3292_v3  ;;  %v4225_v21 = vpop.f32.mrb[28].mxu0  ;;  %v1463_v59 = vmul.f32 0.7978846, %v1335_v13  ;;  %v4235_v62 = vmul.f32 %v1110_v34, %v4169_v48  ;;  %v1111_v52 = vmul.f32 %v983_v37, %v4191_v19 }
 0x189   :  { %6052 = vst [vmem:[#allocation68_spill] sm:$0xff] %v4219_v56  ;;  %v4227_v53 = vpop.f32.mrb[28].mxu1  ;;  %v3296_v35 = vpop.eup %3295  ;;  %v1715_v24 = vadd.f32 1.0, %v3294_v5  ;;  %6053 = vst [vmem:[#allocation69_spill] sm:$0xff] %v4230_v31  ;;  %v1467_v41 = vmul.f32 0.7978846, %v1339_v15  ;;  %v4239_v56 = vmul.f32 %v985_v17, %v4194_v61  ;;  %v4253_v37 = vmul.f32 %v1112_v10, %v4180_v30 }
 0x18a   :  { %v4232_v3 = vpop.f32.mrb[29].mxu0  ;;  %v3298_v46 = vpop.eup %3297  ;;  %v1713_v28 = vadd.f32 1.0, %v3296_v35  ;;  %6054 = vst [vmem:[#allocation70_spill] sm:$0xff] %v4235_v62  ;;  %v1839_v58 = vmul.f32 %v1711_v40, %v4082_v9  ;;  %3299 = vtanh.f32 %v1463_v59  ;;  %v1337_v17 = vadd.f32 %v3925_v11, %v3879_v33  ;;  %v6059_v59 = vld [vmem:[#allocation22_spill] sm:$0xff] }
 0x18b   :  { %v4241_v38 = vpop.f32.mrb[29].mxu1  ;;  %v4243_v5 = vpop.f32.mrb[30].mxu0  ;;  %v1843_v13 = vmul.f32 %v1715_v24, %v4099_v1  ;;  %v1717_v15 = vadd.f32 1.0, %v3298_v46  ;;  %6055 = vst [vmem:[#allocation71_spill] sm:$0xff] %v4253_v37  ;;  %3301 = vtanh.f32 %v1467_v41  ;;  %v1341_v40 = vadd.f32 %v3979_v14, %v3897_v54 }
 0x18c   :  { %v4247_v31 = vpop.f32.mrb[30].mxu1  ;;  %v4249_v35 = vpop.f32.mrb[31].mxu0  ;;  %v1841_v34 = vmul.f32 %v1713_v28, %v4124_v8  ;;  %v4264_v24 = vadd.f32 %v4105_v2, %v3814_v25  ;;  %v4267_v28 = vmul.f32 %v1111_v52, %v4191_v19  ;;  %v4270_v41 = vmul.f32 0.5, %v3879_v33 }
 0x18d   :  { %v4257_v62 = vpop.f32.mrb[31].mxu1  ;;  %v1967_v9 = vpack.c.bf16 %v1843_v13, %v1839_v58  ;;  %v1845_v1 = vmul.f32 %v1717_v15, %v4131_v22  ;;  %v1465_v8 = vmul.f32 0.7978846, %v1337_v17  ;;  %v4274_v11 = vadd.f32 %v4107_v4, %v3816_v26  ;;  %v6061_v4 = vld [vmem:[#allocation18_spill] sm:$0xff]  ;;  %v6062_v58 = vld [vmem:[#allocation25_spill] sm:$0xff] }
 0x18e   :  { %6056 = vst [vmem:[#allocation72_spill] sm:$0xff] %v4264_v24  ;;  %6057 = vst [vmem:[#allocation73_spill] sm:$0xff] %v4267_v28  ;;  %v1469_v10 = vmul.f32 0.7978846, %v1341_v40  ;;  %v986_v14 = vmul.f32 0.044715, %v4264_v24  ;;  %v1334_v2 = vadd.f32 %v6059_v59, %v3850_v7  ;;  %v6060_v46 = vpack.c.bf16 %v4140_v36, %v4137_v18 }
 0x18f   :  { %6058 = vst [vmem:[#allocation74_spill] sm:$0xff] %v4274_v11  ;;  %2318 = vmatprep.mubr.bf16.mxu0 %v1967_v9  ;;  %v1969_v22 = vpack.c.bf16 %v1845_v1, %v1841_v34  ;;  %v4283_v33 = vmul.f32 0.5, %v3897_v54  ;;  %3303 = vtanh.f32 %v1465_v8  ;;  %v988_v52 = vmul.f32 0.044715, %v4274_v11  ;;  %v6064_v8 = vld [vmem:[#allocation17_spill] sm:$0xff] }
 0x190   :  { %2319 = vmatmul.mubr.bf16.vlgmr.msra.gmra.mrb[64].mxu0 %v6060_v46  ;;  %v1338_v13 = vadd.f32 %v6062_v58, %v6061_v4  ;;  %v4288_v15 = vpop.f32.mrb[32].mxu0  ;;  %v4290_v34 = vpop.f32.mrb[32].mxu1  ;;  %3305 = vtanh.f32 %v1469_v10  ;;  %v4293_v17 = vmul.f32 0.5, %v3850_v7  ;;  %v4296_v18 = vmul.f32 0.5, %v6061_v4  ;;  %v6066_v10 = vld [vmem:[#allocation19_spill] sm:$0xff]  ;;  %v6067_v46 = vld [vmem:[#allocation28_spill] sm:$0xff] }
 0x191   :  { %2479 = vmatprep.mubr.bf16.mxu1 %v1969_v22  ;;  %v1462_v54 = vmul.f32 0.7978846, %v1334_v2  ;;  %v4298_v36 = vpop.f32.mrb[33].mxu0  ;;  %v4300_v9 = vpop.f32.mrb[33].mxu1  ;;  %v6063_v1 = vpack.c.bf16 %v4150_v45, %v4147_v49  ;;  %v4306_v59 = vmul.f32 0.5, %v6064_v8  ;;  %v6065_v22 = vld [vmem:[#allocation23_spill] sm:$0xff]  ;;  %v1340_v4 = vadd.f32 %v6067_v46, %v6066_v10 }
 0x192   :  { %v1466_v40 = vmul.f32 0.7978846, %v1338_v13  ;;  %v1336_v7 = vadd.f32 %v6065_v22, %v6064_v8  ;;  %v4312_v58 = vpop.f32.mrb[34].mxu0  ;;  %v4314_v2 = vpop.f32.mrb[34].mxu1  ;;  %v1114_v37 = vmul.f32 %v986_v14, %v4264_v24  ;;  %v4319_v49 = vadd.f32 %v4113_v47, %v3818_v0 }
 0x193   :  { %2480 = vmatmul.mubr.bf16.vlgmr.msra.gmra.mrb[64].mxu1 %v6063_v1  ;;  %3307 = vtanh.f32 %v1462_v54  ;;  %v4323_v45 = vadd.f32 %v4115_v44, %v3820_v27  ;;  %v4325_v13 = vpop.f32.mrb[35].mxu0  ;;  %v4327_v1 = vpop.f32.mrb[35].mxu1  ;;  %v1116_v8 = vmul.f32 %v988_v52, %v4274_v11  ;;  %v1468_v46 = vmul.f32 0.7978846, %v1340_v4 }
 0x194   :  { %6068 = vst [vmem:[#allocation22_spill] sm:$0xff] %v4319_v49  ;;  %6070 = vst [vmem:[#allocation25_spill] sm:$0xff] %v4327_v1  ;;  %3309 = vtanh.f32 %v1466_v40  ;;  %v1464_v22 = vmul.f32 0.7978846, %v1336_v7  ;;  %v3300_v30 = vpop.eup %3299  ;;  %v987_v14 = vmul.f32 0.044715, %v4319_v49  ;;  %v4334_v47 = vadd.f32 %v4142_v6, %v3814_v25 }
 0x195   :  { %6069 = vst [vmem:[#allocation18_spill] sm:$0xff] %v4323_v45  ;;  %v989_v54 = vmul.f32 0.044715, %v4323_v45  ;;  %v4338_v44 = vadd.f32 %v4144_v20, %v3816_v26  ;;  %v3302_v48 = vpop.eup %3301  ;;  %v1719_v28 = vadd.f32 1.0, %v3300_v30  ;;  %v4342_v52 = vadd.f32 %v4160_v12, %v3818_v0 }
 0x196   :  { %6071 = vst [vmem:[#allocation17_spill] sm:$0xff] %v4334_v47  ;;  %3311 = vtanh.f32 %v1464_v22  ;;  %v4346_v40 = vadd.f32 %v4162_v57, %v3820_v27  ;;  %v1723_v7 = vadd.f32 1.0, %v3302_v48  ;;  %v1115_v6 = vmul.f32 %v987_v14, %v4319_v49 }
 0x197   :  { %6072 = vst [vmem:[#allocation23_spill] sm:$0xff] %v4338_v44  ;;  %3313 = vtanh.f32 %v1468_v46  ;;  %v1117_v4 = vmul.f32 %v989_v54, %v4323_v45  ;;  %v4352_v20 = vmul.f32 %v4239_v56, %v4194_v61  ;;  %v990_v30 = vmul.f32 0.044715, %v4334_v47 }
 0x198   :  { %v992_v22 = vmul.f32 0.044715, %v4338_v44  ;;  %v991_v12 = vmul.f32 0.044715, %v4342_v52  ;;  %v1847_v19 = vmul.f32 %v1719_v28, %v4214_v16  ;;  %v1851_v57 = vmul.f32 %v1723_v7, %v4223_v60  ;;  %v4363_v14 = vpop.f32.mrb[36].mxu0  ;;  %v4365_v54 = vpop.f32.mrb[36].mxu1 }
 0x199   :  { %6073 = vst [vmem:[#allocation19_spill] sm:$0xff] %v4352_v20  ;;  %v4360_v48 = vmul.f32 0.5, %v6066_v10  ;;  %v993_v46 = vmul.f32 0.044715, %v4346_v40  ;;  %6074 = vst [vmem:[#allocation28_spill] sm:$0xff] %v4363_v14  ;;  %v3304_v56 = vpop.eup %3303  ;;  %v4368_v20 = vmul.f32 %v1114_v37, %v4264_v24  ;;  %v4371_v61 = vmul.f32 %v1116_v8, %v4274_v11  ;;  %v4375_v28 = vpop.f32.mrb[37].mxu0 }
 0x19a   :  { %6075 = vst [vmem:[#allocation75_spill] sm:$0xff] %v4365_v54  ;;  %v1118_v16 = vmul.f32 %v990_v30, %v4334_v47  ;;  %v1120_v60 = vmul.f32 %v992_v22, %v4338_v44  ;;  %6078 = vst [vmem:[#allocation78_spill] sm:$0xff] %v4375_v28  ;;  %v4377_v10 = vpop.f32.mrb[37].mxu1  ;;  %v3306_v7 = vpop.eup %3305  ;;  %v1971_v1 = vpack.c.bf16 %v1851_v57, %v1847_v19  ;;  %v1721_v14 = vadd.f32 1.0, %v3304_v56  ;;  %v6084_v11 = vld [vmem:[#allocation24_spill] sm:$0xff]  ;;  %v6088_v56 = vld [vmem:[#allocation30_spill] sm:$0xff] }
 0x19b   :  { %6076 = vst [vmem:[#allocation76_spill] sm:$0xff] %v4368_v20  ;;  %6077 = vst [vmem:[#allocation77_spill] sm:$0xff] %v4371_v61  ;;  %v4380_v54 = vmul.f32 %v1115_v6, %v4319_v49  ;;  %v4383_v37 = vmul.f32 %v1117_v4, %v4323_v45  ;;  %v4385_v20 = vpop.f32.mrb[38].mxu0  ;;  %v4387_v8 = vpop.f32.mrb[38].mxu1  ;;  %v1725_v30 = vadd.f32 1.0, %v3306_v7  ;;  %v1119_v22 = vmul.f32 %v991_v12, %v4342_v52  ;;  %v6089_v7 = vld [vmem:[#allocation35_spill] sm:$0xff] }
 0x19c   :  { %6079 = vst [vmem:[#allocation79_spill] sm:$0xff] %v4377_v10  ;;  %6082 = vst [vmem:[#allocation82_spill] sm:$0xff] %v4385_v20  ;;  %v1121_v61 = vmul.f32 %v993_v46, %v4346_v40  ;;  %v4392_v24 = vmul.f32 0.5, %v6084_v11  ;;  %v4394_v19 = vpop.f32.mrb[39].mxu0  ;;  %v4396_v57 = vpop.f32.mrb[39].mxu1  ;;  %2326 = vmatprep.mubr.bf16.mxu0 %v1971_v1  ;;  %v4399_v4 = vmul.f32 %v1118_v16, %v4334_v47  ;;  %v4402_v20 = vmul.f32 0.5, %v6088_v56 }
 0x19d   :  { %6080 = vst [vmem:[#allocation80_spill] sm:$0xff] %v4380_v54  ;;  %6081 = vst [vmem:[#allocation81_spill] sm:$0xff] %v4383_v37  ;;  %v3308_v6 = vpop.eup %3307  ;;  %v1343_v12 = vadd.f32 %v6089_v7, %v6084_v11  ;;  %v6090_v46 = vld [vmem:[#allocation42_spill] sm:$0xff]  ;;  %v1849_v45 = vmul.f32 %v1721_v14, %v4270_v41  ;;  %v4411_v1 = vmul.f32 %v1120_v60, %v4338_v44  ;;  %v6093_v49 = vld [vmem:[#allocation36_spill] sm:$0xff] }
 0x19e   :  { %6083 = vst [vmem:[#allocation83_spill] sm:$0xff] %v4387_v8  ;;  %6085 = vst [vmem:[#allocation24_spill] sm:$0xff] %v4394_v19  ;;  %v1347_v8 = vadd.f32 %v6090_v46, %v6088_v56  ;;  %v3310_v37 = vpop.eup %3309  ;;  %v1853_v19 = vmul.f32 %v1725_v30, %v4283_v33  ;;  %v6092_v54 = vld [vmem:[#allocation26_spill] sm:$0xff]  ;;  %v1349_v56 = vadd.f32 %v4049_v23, %v3959_v51 }
 0x19f   :  { %6086 = vst [vmem:[#allocation84_spill] sm:$0xff] %v4396_v57  ;;  %6087 = vst [vmem:[#allocation85_spill] sm:$0xff] %v4399_v4  ;;  %v1718_v57 = vadd.f32 1.0, %v3308_v6  ;;  %v1722_v16 = vadd.f32 1.0, %v3310_v37  ;;  %v1471_v4 = vmul.f32 0.7978846, %v1343_v12  ;;  %v1345_v10 = vadd.f32 %v6093_v49, %v6092_v54 }
 0x1a0   :  { %6091 = vst [vmem:[#allocation30_spill] sm:$0xff] %v4411_v1  ;;  %v1475_v47 = vmul.f32 0.7978846, %v1347_v8  ;;  %v3312_v28 = vpop.eup %3311  ;;  %v1973_v11 = vpack.c.bf16 %v1853_v19, %v1849_v45  ;;  %v4420_v41 = vadd.f32 %v4171_v39, %v3814_v25  ;;  %v4422_v33 = vpop.f32.mrb[40].mxu0  ;;  %v1477_v30 = vmul.f32 0.7978846, %v1349_v56 }
 0x1a1   :  { %v1846_v7 = vmul.f32 %v1718_v57, %v4293_v17  ;;  %v4424_v14 = vpop.f32.mrb[40].mxu1  ;;  %v3314_v60 = vpop.eup %3313  ;;  %v1850_v37 = vmul.f32 %v1722_v16, %v4296_v18  ;;  %v1720_v8 = vadd.f32 1.0, %v3312_v28  ;;  %3315 = vtanh.f32 %v1471_v4  ;;  %v6097_v16 = vld [vmem:[#allocation20_spill] sm:$0xff]  ;;  %v6099_v56 = vld [vmem:[#allocation27_spill] sm:$0xff] }
 0x1a2   :  { %v1473_v49 = vmul.f32 0.7978846, %v1345_v10  ;;  %v4427_v45 = vpop.f32.mrb[41].mxu0  ;;  %v4429_v17 = vpop.f32.mrb[41].mxu1  ;;  %2487 = vmatprep.mubr.bf16.mxu1 %v1973_v11  ;;  %v1724_v23 = vadd.f32 1.0, %v3314_v60  ;;  %3317 = vtanh.f32 %v1475_v47  ;;  %v4435_v6 = vmul.f32 %v1119_v22, %v4342_v52  ;;  %v6098_v11 = vld [vmem:[#allocation33_spill] sm:$0xff] }
 0x1a3   :  { %v994_v39 = vmul.f32 0.044715, %v4420_v41  ;;  %v4432_v19 = vpop.f32.mrb[42].mxu0  ;;  %v1970_v57 = vpack.c.bf16 %v1850_v37, %v1846_v7  ;;  %v4439_v18 = vadd.f32 %v4173_v29, %v3816_v26  ;;  %v4441_v28 = vpop.f32.mrb[42].mxu1  ;;  %v1848_v47 = vmul.f32 %v1720_v8, %v4306_v59  ;;  %v6100_v60 = vld [vmem:[#allocation37_spill] sm:$0xff] }
 0x1a4   :  { %3319 = vtanh.f32 %v1473_v49  ;;  %6094 = vst [vmem:[#allocation35_spill] sm:$0xff] %v4441_v28  ;;  %v4443_v10 = vpop.f32.mrb[43].mxu0  ;;  %v1852_v4 = vmul.f32 %v1724_v23, %v4360_v48  ;;  %v4448_v12 = vmul.f32 %v1121_v61, %v4346_v40  ;;  %v4450_v46 = vpop.f32.mrb[43].mxu1  ;;  %v4453_v22 = vmul.f32 0.5, %v6092_v54 }
 0x1a5   :  { %6095 = vst [vmem:[#allocation42_spill] sm:$0xff] %v4443_v10  ;;  %3321 = vtanh.f32 %v1477_v30  ;;  %6096 = vst [vmem:[#allocation26_spill] sm:$0xff] %v4450_v46  ;;  %2327 = vmatmul.mubr.bf16.gmra.mrb[68].mxu0 %v1970_v57  ;;  %v996_v29 = vmul.f32 0.044715, %v4439_v18  ;;  %v1342_v7 = vadd.f32 %v6098_v11, %v6097_v16  ;;  %v1346_v59 = vadd.f32 %v6100_v60, %v6099_v56  ;;  %v6101_v30 = vld [vmem:[#allocation21_spill] sm:$0xff]  ;;  %v6102_v57 = vld [vmem:[#allocation34_spill] sm:$0xff] }
 0x1a6   :  { %v1972_v37 = vpack.c.bf16 %v1852_v4, %v1848_v47  ;;  %v837_v48 = vmul.f32 0.5, %v3959_v51  ;;  %v1122_v61 = vmul.f32 %v994_v39, %v4420_v41  ;;  %v4463_v8 = vmul.f32 0.5, %v6097_v16  ;;  %v6103_v11 = vld [vmem:[#allocation29_spill] sm:$0xff]  ;;  %v6104_v10 = vld [vmem:[#allocation40_spill] sm:$0xff] }
 0x1a7   :  { %v4466_v49 = vmul.f32 0.5, %v6099_v56  ;;  %v1470_v54 = vmul.f32 0.7978846, %v1342_v7  ;;  %v1474_v23 = vmul.f32 0.7978846, %v1346_v59  ;;  %v1344_v46 = vadd.f32 %v6102_v57, %v6101_v30 }
 0x1a8   :  { %2488 = vmatmul.mubr.bf16.gmra.mrb[68].mxu1 %v1972_v37  ;;  %v1348_v60 = vadd.f32 %v6104_v10, %v6103_v11  ;;  %v4474_v51 = vadd.f32 %v4182_v43, %v3818_v0  ;;  %v4478_v39 = vadd.f32 %v4184_v55, %v3820_v27  ;;  %v4482_v47 = vadd.f32 %v4225_v21, %v3814_v25  ;;  %v4484_v4 = vpop.f32.mrb[44].mxu0  ;;  %v4486_v16 = vpop.f32.mrb[44].mxu1 }
 0x1a9   :  { %6106 = vst [vmem:[#allocation20_spill] sm:$0xff] %v4484_v4  ;;  %6107 = vst [vmem:[#allocation33_spill] sm:$0xff] %v4486_v16  ;;  %v1124_v7 = vmul.f32 %v996_v29, %v4439_v18  ;;  %3323 = vtanh.f32 %v1470_v54  ;;  %v1472_v10 = vmul.f32 0.7978846, %v1344_v46  ;;  %v4491_v43 = vadd.f32 %v4227_v53, %v3816_v26  ;;  %v4493_v56 = vpop.f32.mrb[45].mxu0  ;;  %v4495_v55 = vpop.f32.mrb[45].mxu1 }
 0x1aa   :  { %6105 = vst [vmem:[#allocation36_spill] sm:$0xff] %v4482_v47  ;;  %6109 = vst [vmem:[#allocation37_spill] sm:$0xff] %v4493_v56  ;;  %3325 = vtanh.f32 %v1474_v23  ;;  %v1476_v59 = vmul.f32 0.7978846, %v1348_v60  ;;  %v995_v21 = vmul.f32 0.044715, %v4474_v51  ;;  %v4503_v53 = vadd.f32 %v4232_v3, %v3818_v0 }
 0x1ab   :  { %6108 = vst [vmem:[#allocation27_spill] sm:$0xff] %v4491_v43  ;;  %6110 = vst [vmem:[#allocation21_spill] sm:$0xff] %v4495_v55  ;;  %v997_v37 = vmul.f32 0.044715, %v4478_v39  ;;  %v3316_v57 = vpop.eup %3315  ;;  %3327 = vtanh.f32 %v1472_v10  ;;  %v998_v29 = vmul.f32 0.044715, %v4482_v47  ;;  %v4516_v3 = vmul.f32 %v1122_v61, %v4420_v41 }
 0x1ac   :  { %v1000_v46 = vmul.f32 0.044715, %v4491_v43  ;;  %v4505_v54 = vpop.f32.mrb[46].mxu0  ;;  %v4507_v56 = vpop.f32.mrb[46].mxu1  ;;  %v1727_v60 = vadd.f32 1.0, %v3316_v57  ;;  %3329 = vtanh.f32 %v1476_v59  ;;  %v1123_v55 = vmul.f32 %v995_v21, %v4474_v51 }
 0x1ad   :  { %6111 = vst [vmem:[#allocation34_spill] sm:$0xff] %v4505_v54  ;;  %6112 = vst [vmem:[#allocation29_spill] sm:$0xff] %v4507_v56  ;;  %v3318_v23 = vpop.eup %3317  ;;  %v1125_v16 = vmul.f32 %v997_v37, %v4478_v39  ;;  %v4511_v10 = vpop.f32.mrb[47].mxu0  ;;  %v832_v54 = vmul.f32 0.5, %v6101_v30  ;;  %v1126_v56 = vmul.f32 %v998_v29, %v4482_v47  ;;  %v836_v59 = vmul.f32 0.5, %v6103_v11 }
 0x1ae   :  { %6113 = vst [vmem:[#allocation40_spill] sm:$0xff] %v4511_v10  ;;  %v4513_v4 = vpop.f32.mrb[47].mxu1  ;;  %v3320_v1 = vpop.eup %3319  ;;  %v1731_v44 = vadd.f32 1.0, %v3318_v23  ;;  %v1128_v21 = vmul.f32 %v1000_v46, %v4491_v43  ;;  %v999_v37 = vmul.f32 0.044715, %v4503_v53  ;;  %v1855_v10 = vmul.f32 %v1727_v60, %v4392_v24 }
 0x1af   :  { %6114 = vst [vmem:[#allocation86_spill] sm:$0xff] %v4513_v4  ;;  %v3322_v28 = vpop.eup %3321  ;;  %v1729_v57 = vadd.f32 1.0, %v3320_v1  ;;  %v4526_v61 = vmul.f32 %v1124_v7, %v4439_v18  ;;  %v4529_v30 = vmul.f32 %v1123_v55, %v4474_v51  ;;  %v4532_v29 = vmul.f32 %v1125_v16, %v4478_v39 }
 0x1b0   :  { %v1859_v4 = vmul.f32 %v1731_v44, %v4402_v20  ;;  %v1733_v23 = vadd.f32 1.0, %v3322_v28  ;;  %v4535_v1 = vmul.f32 %v1126_v56, %v4482_v47  ;;  %v4539_v11 = vadd.f32 %v4241_v38, %v3820_v27  ;;  %v4541_v24 = vpop.f32.mrb[48].mxu0  ;;  %v4543_v44 = vpop.f32.mrb[48].mxu1 }
 0x1b1   :  { %6117 = vst [vmem:[#allocation89_spill] sm:$0xff] %v4541_v24  ;;  %6118 = vst [vmem:[#allocation90_spill] sm:$0xff] %v4543_v44  ;;  %v1857_v28 = vmul.f32 %v1729_v57, %v4453_v22  ;;  %v1351_v55 = vadd.f32 %v4065_v63, %v3986_v42  ;;  %v4548_v16 = vpop.f32.mrb[49].mxu0  ;;  %v4550_v46 = vpop.f32.mrb[49].mxu1  ;;  %v4553_v56 = vmul.f32 %v1128_v21, %v4491_v43  ;;  %v4557_v60 = vmul.f32 0.5, %v3986_v42  ;;  %v6128_v43 = vld [vmem:[#allocation54_spill] sm:$0xff] }
 0x1b2   :  { %6115 = vst [vmem:[#allocation87_spill] sm:$0xff] %v4535_v1  ;;  %6116 = vst [vmem:[#allocation88_spill] sm:$0xff] %v4539_v11  ;;  %v1975_v20 = vpack.c.bf16 %v1859_v4, %v1855_v10  ;;  %v1861_v7 = vmul.f32 %v1733_v23, %v837_v48  ;;  %v1127_v38 = vmul.f32 %v999_v37, %v4503_v53  ;;  %v6122_v4 = vld [vmem:[#allocation53_spill] sm:$0xff]  ;;  %v4562_v63 = vmul.f32 0.5, %v4026_v32  ;;  %v6123_v23 = vld [vmem:[#allocation38_spill] sm:$0xff]  ;;  %v4566_v21 = vpop.f32.mrb[50].mxu0 }
 0x1b3   :  { %6119 = vst [vmem:[#allocation91_spill] sm:$0xff] %v4548_v16  ;;  %6120 = vst [vmem:[#allocation92_spill] sm:$0xff] %v4550_v46  ;;  %v1355_v10 = vadd.f32 %v6122_v4, %v4026_v32  ;;  %v3324_v22 = vpop.eup %3323  ;;  %v1479_v57 = vmul.f32 0.7978846, %v1351_v55  ;;  %v6124_v46 = vld [vmem:[#allocation50_spill] sm:$0xff]  ;;  %v4568_v44 = vpop.f32.mrb[50].mxu1  ;;  %v4575_v55 = vadd.f32 %v4243_v5, %v3814_v25 }
 0x1b4   :  { %6121 = vst [vmem:[#allocation93_spill] sm:$0xff] %v4553_v56  ;;  %2334 = vmatprep.mubr.bf16.mxu0 %v1975_v20  ;;  %v1977_v48 = vpack.c.bf16 %v1861_v7, %v1857_v28  ;;  %v1353_v16 = vadd.f32 %v6124_v46, %v6123_v23  ;;  %6125 = vst [vmem:[#allocation53_spill] sm:$0xff] %v4566_v21  ;;  %v3326_v37 = vpop.eup %3325  ;;  %v1726_v42 = vadd.f32 1.0, %v3324_v22  ;;  %v1001_v24 = vmul.f32 0.044715, %v4539_v11  ;;  %v6127_v4 = vld [vmem:[#allocation43_spill] sm:$0xff] }
 0x1b5   :  { %6126 = vst [vmem:[#allocation38_spill] sm:$0xff] %v4568_v44  ;;  %v1483_v56 = vmul.f32 0.7978846, %v1355_v10  ;;  %v1357_v20 = vadd.f32 %v6128_v43, %v6127_v4  ;;  %v3328_v28 = vpop.eup %3327  ;;  %v1730_v32 = vadd.f32 1.0, %v3326_v37  ;;  %3331 = vtanh.f32 %v1479_v57 }
 0x1b6   :  { %2495 = vmatprep.mubr.bf16.mxu1 %v1977_v48  ;;  %v1481_v7 = vmul.f32 0.7978846, %v1353_v16  ;;  %v3330_v46 = vpop.eup %3329  ;;  %v1854_v44 = vmul.f32 %v1726_v42, %v4463_v8  ;;  %v1728_v21 = vadd.f32 1.0, %v3328_v28  ;;  %v4579_v22 = vmul.f32 %v1127_v38, %v4503_v53  ;;  %v6130_v42 = vld [vmem:[#allocation31_spill] sm:$0xff] }
 0x1b7   :  { %3333 = vtanh.f32 %v1483_v56  ;;  %v1858_v10 = vmul.f32 %v1730_v32, %v4466_v49  ;;  %v1732_v43 = vadd.f32 1.0, %v3330_v46  ;;  %v1485_v1 = vmul.f32 0.7978846, %v1357_v20  ;;  %v6131_v20 = vld [vmem:[#allocation46_spill] sm:$0xff]  ;;  %v6132_v28 = vld [vmem:[#allocation39_spill] sm:$0xff] }
 0x1b8   :  { %3335 = vtanh.f32 %v1481_v7  ;;  %v1129_v48 = vmul.f32 %v1001_v24, %v4539_v11  ;;  %v4584_v16 = vmul.f32 0.5, %v6123_v23  ;;  %v1002_v5 = vmul.f32 0.044715, %v4575_v55  ;;  %v6133_v23 = vld [vmem:[#allocation51_spill] sm:$0xff] }
 0x1b9   :  { %v4589_v8 = vadd.f32 %v4247_v31, %v3816_v26  ;;  %v1974_v57 = vpack.c.bf16 %v1858_v10, %v1854_v44  ;;  %v1856_v38 = vmul.f32 %v1728_v21, %v832_v54  ;;  %v1860_v37 = vmul.f32 %v1732_v43, %v836_v59  ;;  %v6134_v54 = vld [vmem:[#allocation32_spill] sm:$0xff]  ;;  %v4605_v44 = vpop.f32.mrb[51].mxu0  ;;  %v4607_v21 = vpop.f32.mrb[51].mxu1 }
 0x1ba   :  { %3337 = vtanh.f32 %v1485_v1  ;;  %v845_v49 = vmul.f32 0.5, %v6127_v4  ;;  %v1350_v24 = vadd.f32 %v6131_v20, %v6130_v42  ;;  %v1354_v32 = vadd.f32 %v6133_v23, %v6132_v28  ;;  %v6135_v59 = vld [vmem:[#allocation48_spill] sm:$0xff]  ;;  %6136 = vst [vmem:[#allocation43_spill] sm:$0xff] %v4605_v44  ;;  %6137 = vst [vmem:[#allocation54_spill] sm:$0xff] %v4607_v21 }
 0x1bb   :  { %6129 = vst [vmem:[#allocation50_spill] sm:$0xff] %v4589_v8  ;;  %v1004_v56 = vmul.f32 0.044715, %v4589_v8  ;;  %2335 = vmatmul.mubr.bf16.gmra.mrb[72].mxu0 %v1974_v57  ;;  %v1976_v7 = vpack.c.bf16 %v1860_v37, %v1856_v38  ;;  %v4598_v46 = vmul.f32 0.5, %v6130_v42  ;;  %v4601_v31 = vmul.f32 0.5, %v6132_v28  ;;  %v4613_v38 = vpop.f32.mrb[52].mxu0 }
 0x1bc   :  { %v1352_v1 = vadd.f32 %v6135_v59, %v6134_v54  ;;  %v4610_v4 = vmul.f32 %v1129_v48, %v4539_v11  ;;  %v1130_v10 = vmul.f32 %v1002_v5, %v4575_v55  ;;  %v1478_v43 = vmul.f32 0.7978846, %v1350_v24  ;;  %6139 = vst [vmem:[#allocation46_spill] sm:$0xff] %v4613_v38  ;;  %v4615_v37 = vpop.f32.mrb[52].mxu1  ;;  %v6141_v42 = vld [vmem:[#allocation41_spill] sm:$0xff]  ;;  %v6142_v20 = vld [vmem:[#allocation52_spill] sm:$0xff] }
 0x1bd   :  { %v1482_v57 = vmul.f32 0.7978846, %v1354_v32  ;;  %6140 = vst [vmem:[#allocation39_spill] sm:$0xff] %v4615_v37  ;;  %2496 = vmatmul.mubr.bf16.gmra.mrb[72].mxu1 %v1976_v7  ;;  %v1356_v28 = vadd.f32 %v6142_v20, %v6141_v42  ;;  %v4621_v59 = vadd.f32 %v4249_v35, %v3818_v0  ;;  %v4625_v48 = vadd.f32 %v4257_v62, %v3820_v27  ;;  %v4627_v5 = vpop.f32.mrb[53].mxu0  ;;  %v4629_v24 = vpop.f32.mrb[53].mxu1 }
 0x1be   :  { %6138 = vst [vmem:[#allocation31_spill] sm:$0xff] %v4610_v4  ;;  %v1480_v23 = vmul.f32 0.7978846, %v1352_v1  ;;  %6143 = vst [vmem:[#allocation51_spill] sm:$0xff] %v4627_v5  ;;  %v1132_v32 = vmul.f32 %v1004_v56, %v4589_v8  ;;  %3339 = vtanh.f32 %v1478_v43  ;;  %v4634_v7 = vadd.f32 %v4288_v15, %v3814_v25 }
 0x1bf   :  { %6144 = vst [vmem:[#allocation32_spill] sm:$0xff] %v4629_v24  ;;  %v4638_v1 = vadd.f32 %v4290_v34, %v3816_v26  ;;  %v3332_v35 = vpop.eup %3331  ;;  %3341 = vtanh.f32 %v1482_v57  ;;  %v1484_v20 = vmul.f32 0.7978846, %v1356_v28  ;;  %v1003_v62 = vmul.f32 0.044715, %v4621_v59 }
 0x1c0   :  { %6145 = vst [vmem:[#allocation48_spill] sm:$0xff] %v4634_v7  ;;  %v1005_v5 = vmul.f32 0.044715, %v4625_v48  ;;  %v1735_v24 = vadd.f32 1.0, %v3332_v35  ;;  %3343 = vtanh.f32 %v1480_v23  ;;  %v1006_v56 = vmul.f32 0.044715, %v4634_v7 }
 0x1c1   :  { %6146 = vst [vmem:[#allocation41_spill] sm:$0xff] %v4638_v1  ;;  %v3334_v37 = vpop.eup %3333  ;;  %v1008_v43 = vmul.f32 0.044715, %v4638_v1  ;;  %3345 = vtanh.f32 %v1484_v20  ;;  %v1131_v34 = vmul.f32 %v1003_v62, %v4621_v59  ;;  %v840_v44 = vmul.f32 0.5, %v6134_v54  ;;  %v6150_v62 = vld [vmem:[#allocation47_spill] sm:$0xff] }
 0x1c2   :  { %v3336_v15 = vpop.eup %3335  ;;  %v1739_v38 = vadd.f32 1.0, %v3334_v37  ;;  %v1133_v21 = vmul.f32 %v1005_v5, %v4625_v48  ;;  %v1863_v57 = vmul.f32 %v1735_v24, %v4557_v60  ;;  %v844_v47 = vmul.f32 0.5, %v6141_v42 }
 0x1c3   :  { %v1737_v28 = vadd.f32 1.0, %v3336_v15  ;;  %v1134_v4 = vmul.f32 %v1006_v56, %v4634_v7  ;;  %v1136_v11 = vmul.f32 %v1008_v43, %v4638_v1  ;;  %v4654_v37 = vadd.f32 %v4298_v36, %v3818_v0  ;;  %v6151_v56 = vld [vmem:[#allocation62_spill] sm:$0xff]  ;;  %v6152_v43 = vld [vmem:[#allocation59_spill] sm:$0xff]  ;;  %v6153_v15 = vld [vmem:[#allocation68_spill] sm:$0xff] }
 0x1c4   :  { %v3338_v35 = vpop.eup %3337  ;;  %v1867_v23 = vmul.f32 %v1739_v38, %v4562_v63  ;;  %v4657_v5 = vmul.f32 %v1130_v10, %v4575_v55  ;;  %v4660_v60 = vmul.f32 %v1132_v32, %v4589_v8  ;;  %v4663_v54 = vmul.f32 %v1131_v34, %v4621_v59 }
 0x1c5   :  { %6147 = vst [vmem:[#allocation52_spill] sm:$0xff] %v4654_v37  ;;  %v1741_v20 = vadd.f32 1.0, %v3338_v35  ;;  %v4666_v63 = vmul.f32 %v1133_v21, %v4625_v48  ;;  %v1007_v38 = vmul.f32 0.044715, %v4654_v37  ;;  %v4671_v36 = vadd.f32 %v4300_v9, %v3820_v27 }
 0x1c6   :  { %6148 = vst [vmem:[#allocation94_spill] sm:$0xff] %v4660_v60  ;;  %v1979_v42 = vpack.c.bf16 %v1867_v23, %v1863_v57  ;;  %v1865_v24 = vmul.f32 %v1737_v28, %v4584_v16  ;;  %v1359_v32 = vadd.f32 %v6151_v56, %v6150_v62  ;;  %v1363_v34 = vadd.f32 %v6153_v15, %v6152_v43  ;;  %v6157_v56 = vld [vmem:[#allocation65_spill] sm:$0xff] }
 0x1c7   :  { %6149 = vst [vmem:[#allocation95_spill] sm:$0xff] %v4671_v36  ;;  %v1869_v10 = vmul.f32 %v1741_v20, %v845_v49  ;;  %v4679_v57 = vmul.f32 %v1134_v4, %v4634_v7  ;;  %v4682_v21 = vmul.f32 %v1136_v11, %v4638_v1  ;;  %v4685_v35 = vmul.f32 0.5, %v6150_v62  ;;  %v6156_v20 = vld [vmem:[#allocation49_spill] sm:$0xff]  ;;  %v4694_v4 = vpop.f32.mrb[54].mxu1 }
 0x1c8   :  { %2342 = vmatprep.mubr.bf16.mxu0 %v1979_v42  ;;  %v4688_v9 = vmul.f32 0.5, %v6152_v43  ;;  %v3340_v16 = vpop.eup %3339  ;;  %v1487_v28 = vmul.f32 0.7978846, %v1359_v32  ;;  %v1491_v23 = vmul.f32 0.7978846, %v1363_v34  ;;  %v1361_v15 = vadd.f32 %v6157_v56, %v6156_v20  ;;  %v4692_v42 = vpop.f32.mrb[54].mxu0 }
 0x1c9   :  { %6154 = vst [vmem:[#allocation47_spill] sm:$0xff] %v4679_v57  ;;  %6155 = vst [vmem:[#allocation62_spill] sm:$0xff] %v4682_v21  ;;  %v1981_v49 = vpack.c.bf16 %v1869_v10, %v1865_v24  ;;  %v3342_v57 = vpop.eup %3341  ;;  %v1734_v11 = vadd.f32 1.0, %v3340_v16  ;;  %v1135_v21 = vmul.f32 %v1007_v38, %v4654_v37  ;;  %v1009_v62 = vmul.f32 0.044715, %v4671_v36  ;;  %v6160_v43 = vld [vmem:[#allocation69_spill] sm:$0xff] }
 0x1ca   :  { %6158 = vst [vmem:[#allocation59_spill] sm:$0xff] %v4692_v42  ;;  %6159 = vst [vmem:[#allocation68_spill] sm:$0xff] %v4694_v4  ;;  %v1365_v1 = vadd.f32 %v6160_v43, %v4158_v50  ;;  %v3344_v7 = vpop.eup %3343  ;;  %v1738_v24 = vadd.f32 1.0, %v3342_v57  ;;  %3347 = vtanh.f32 %v1487_v28  ;;  %v1489_v10 = vmul.f32 0.7978846, %v1361_v15  ;;  %v6165_v15 = vld [vmem:[#allocation55_spill] sm:$0xff] }
 0x1cb   :  { %2503 = vmatprep.mubr.bf16.mxu1 %v1981_v49  ;;  %v4702_v32 = vadd.f32 %v4312_v58, %v3814_v25  ;;  %v3346_v34 = vpop.eup %3345  ;;  %v1862_v56 = vmul.f32 %v1734_v11, %v4598_v46  ;;  %v1736_v16 = vadd.f32 1.0, %v3344_v7  ;;  %3349 = vtanh.f32 %v1491_v23 }
 0x1cc   :  { %v4706_v38 = vmul.f32 0.5, %v6156_v20  ;;  %v1866_v4 = vmul.f32 %v1738_v24, %v4601_v31  ;;  %v1740_v43 = vadd.f32 1.0, %v3346_v34  ;;  %v1493_v42 = vmul.f32 0.7978846, %v1365_v1  ;;  %v6164_v20 = vld [vmem:[#allocation44_spill] sm:$0xff]  ;;  %v4736_v34 = vpop.f32.mrb[55].mxu1 }
 0x1cd   :  { %6161 = vst [vmem:[#allocation49_spill] sm:$0xff] %v4702_v32  ;;  %3351 = vtanh.f32 %v1489_v10  ;;  %v1137_v57 = vmul.f32 %v1009_v62, %v4671_v36  ;;  %v4711_v49 = vmul.f32 0.5, %v4158_v50  ;;  %v1010_v58 = vmul.f32 0.044715, %v4702_v32  ;;  %v6166_v50 = vld [vmem:[#allocation57_spill] sm:$0xff]  ;;  %v6167_v62 = vld [vmem:[#allocation66_spill] sm:$0xff] }
 0x1ce   :  { %v4716_v46 = vadd.f32 %v4314_v2, %v3816_v26  ;;  %v1978_v7 = vpack.c.bf16 %v1866_v4, %v1862_v56  ;;  %v1864_v28 = vmul.f32 %v1736_v16, %v840_v44  ;;  %v1868_v23 = vmul.f32 %v1740_v43, %v844_v47  ;;  %v6168_v47 = vld [vmem:[#allocation45_spill] sm:$0xff]  ;;  %v4734_v4 = vpop.f32.mrb[55].mxu0  ;;  %6171 = vst [vmem:[#allocation55_spill] sm:$0xff] %v4736_v34 }
 0x1cf   :  { %3353 = vtanh.f32 %v1493_v42  ;;  %v4719_v31 = vmul.f32 %v1135_v21, %v4654_v37  ;;  %v1358_v11 = vadd.f32 %v6165_v15, %v6164_v20  ;;  %v1362_v24 = vadd.f32 %v6167_v62, %v6166_v50  ;;  %v6169_v42 = vld [vmem:[#allocation56_spill] sm:$0xff]  ;;  %6170 = vst [vmem:[#allocation44_spill] sm:$0xff] %v4734_v4  ;;  %v6176_v15 = vld [vmem:[#allocation67_spill] sm:$0xff] }
 0x1d0   :  { %6162 = vst [vmem:[#allocation65_spill] sm:$0xff] %v4716_v46  ;;  %v1012_v1 = vmul.f32 0.044715, %v4716_v46  ;;  %2343 = vmatmul.mubr.bf16.gmra.mrb[76].mxu0 %v1978_v7  ;;  %v1980_v10 = vpack.c.bf16 %v1868_v23, %v1864_v28  ;;  %v4727_v2 = vmul.f32 0.5, %v6164_v20  ;;  %v4730_v44 = vmul.f32 0.5, %v6166_v50  ;;  %v4742_v28 = vpop.f32.mrb[56].mxu0 }
 0x1d1   :  { %6163 = vst [vmem:[#allocation69_spill] sm:$0xff] %v4719_v31  ;;  %v1360_v21 = vadd.f32 %v6169_v42, %v6168_v47  ;;  %v4739_v56 = vmul.f32 %v1137_v57, %v4671_v36  ;;  %v1138_v16 = vmul.f32 %v1010_v58, %v4702_v32  ;;  %v1486_v43 = vmul.f32 0.7978846, %v1358_v11  ;;  %6173 = vst [vmem:[#allocation66_spill] sm:$0xff] %v4742_v28  ;;  %v4744_v23 = vpop.f32.mrb[56].mxu1  ;;  %v6175_v20 = vld [vmem:[#allocation58_spill] sm:$0xff] }
 0x1d2   :  { %v1490_v7 = vmul.f32 0.7978846, %v1362_v24  ;;  %6174 = vst [vmem:[#allocation45_spill] sm:$0xff] %v4744_v23  ;;  %2504 = vmatmul.mubr.bf16.gmra.mrb[76].mxu1 %v1980_v10  ;;  %v1364_v50 = vadd.f32 %v6176_v15, %v6175_v20  ;;  %v4750_v42 = vadd.f32 %v4325_v13, %v3818_v0  ;;  %v6177_v57 = vld [vmem:[#allocation25_spill] sm:$0xff]  ;;  %v4756_v58 = vpop.f32.mrb[57].mxu0  ;;  %v4758_v11 = vpop.f32.mrb[57].mxu1  ;;  %v1140_v24 = vmul.f32 %v1012_v1, %v4716_v46 }
 0x1d3   :  { %6172 = vst [vmem:[#allocation57_spill] sm:$0xff] %v4739_v56  ;;  %v1488_v62 = vmul.f32 0.7978846, %v1360_v21  ;;  %v4754_v34 = vadd.f32 %v6177_v57, %v3820_v27  ;;  %6179 = vst [vmem:[#allocation58_spill] sm:$0xff] %v4756_v58  ;;  %3355 = vtanh.f32 %v1486_v43  ;;  %v6181_v10 = vld [vmem:[#allocation28_spill] sm:$0xff]  ;;  %v6183_v21 = vld [vmem:[#allocation75_spill] sm:$0xff] }
 0x1d4   :  { %6180 = vst [vmem:[#allocation67_spill] sm:$0xff] %v4758_v11  ;;  %v4763_v23 = vadd.f32 %v6181_v10, %v3814_v25  ;;  %v4767_v15 = vadd.f32 %v6183_v21, %v3816_v26  ;;  %v3348_v13 = vpop.eup %3347  ;;  %3357 = vtanh.f32 %v1490_v7  ;;  %v1492_v28 = vmul.f32 0.7978846, %v1364_v50 }
 0x1d5   :  { %6178 = vst [vmem:[#allocation56_spill] sm:$0xff] %v4754_v34  ;;  %v1011_v57 = vmul.f32 0.044715, %v4750_v42  ;;  %v1013_v58 = vmul.f32 0.044715, %v4754_v34  ;;  %v3350_v4 = vpop.eup %3349  ;;  %v1743_v11 = vadd.f32 1.0, %v3348_v13  ;;  %3359 = vtanh.f32 %v1488_v62 }
 0x1d6   :  { %6182 = vst [vmem:[#allocation25_spill] sm:$0xff] %v4763_v23  ;;  %6184 = vst [vmem:[#allocation28_spill] sm:$0xff] %v4767_v15  ;;  %v1014_v1 = vmul.f32 0.044715, %v4763_v23  ;;  %v1016_v43 = vmul.f32 0.044715, %v4767_v15  ;;  %3361 = vtanh.f32 %v1492_v28 }
 0x1d7   :  { %v3352_v10 = vpop.eup %3351  ;;  %v1747_v56 = vadd.f32 1.0, %v3350_v4  ;;  %v1139_v21 = vmul.f32 %v1011_v57, %v4750_v42  ;;  %v1141_v36 = vmul.f32 %v1013_v58, %v4754_v34  ;;  %v1871_v7 = vmul.f32 %v1743_v11, %v4685_v35  ;;  %v6185_v4 = vld [vmem:[#allocation78_spill] sm:$0xff]  ;;  %v6190_v11 = vld [vmem:[#allocation79_spill] sm:$0xff] }
 0x1d8   :  { %v1745_v50 = vadd.f32 1.0, %v3352_v10  ;;  %v848_v31 = vmul.f32 0.5, %v6168_v47  ;;  %v852_v37 = vmul.f32 0.5, %v6175_v20  ;;  %v1142_v60 = vmul.f32 %v1014_v1, %v4763_v23  ;;  %v6192_v10 = vld [vmem:[#allocation63_spill] sm:$0xff] }
 0x1d9   :  { %v3354_v13 = vpop.eup %3353  ;;  %v1875_v62 = vmul.f32 %v1747_v56, %v4688_v9  ;;  %v1144_v8 = vmul.f32 %v1016_v43, %v4767_v15  ;;  %v4783_v28 = vadd.f32 %v6185_v4, %v3818_v0  ;;  %v4786_v58 = vmul.f32 %v1138_v16, %v4702_v32  ;;  %v6194_v4 = vld [vmem:[#allocation22_spill] sm:$0xff] }
 0x1da   :  { %v1749_v57 = vadd.f32 1.0, %v3354_v13  ;;  %v4789_v35 = vmul.f32 %v1140_v24, %v4716_v46  ;;  %v4792_v47 = vmul.f32 %v1139_v21, %v4750_v42  ;;  %v4795_v9 = vmul.f32 %v1141_v36, %v4754_v34  ;;  %v6193_v24 = vld [vmem:[#allocation73_spill] sm:$0xff]  ;;  %v6195_v21 = vld [vmem:[#allocation80_spill] sm:$0xff]  ;;  %v6199_v46 = vld [vmem:[#allocation19_spill] sm:$0xff] }
 0x1db   :  { %6186 = vst [vmem:[#allocation75_spill] sm:$0xff] %v4783_v28  ;;  %6187 = vst [vmem:[#allocation78_spill] sm:$0xff] %v4786_v58  ;;  %v1983_v20 = vpack.c.bf16 %v1875_v62, %v1871_v7  ;;  %v1015_v56 = vmul.f32 0.044715, %v4783_v28  ;;  %v4800_v1 = vadd.f32 %v6190_v11, %v3820_v27  ;;  %v1873_v43 = vmul.f32 %v1745_v50, %v4706_v38 }
 0x1dc   :  { %6188 = vst [vmem:[#allocation96_spill] sm:$0xff] %v4789_v35  ;;  %6189 = vst [vmem:[#allocation97_spill] sm:$0xff] %v4795_v9  ;;  %v1877_v16 = vmul.f32 %v1749_v57, %v4711_v49  ;;  %v1367_v13 = vadd.f32 %v6193_v24, %v6192_v10  ;;  %v1371_v35 = vadd.f32 %v6195_v21, %v6194_v4  ;;  %v4815_v62 = vmul.f32 0.5, %v6192_v10  ;;  %v6198_v24 = vld [vmem:[#allocation64_spill] sm:$0xff] }
 0x1dd   :  { %6191 = vst [vmem:[#allocation79_spill] sm:$0xff] %v4800_v1  ;;  %2350 = vmatprep.mubr.bf16.mxu0 %v1983_v20  ;;  %v4809_v36 = vmul.f32 %v1142_v60, %v4763_v23  ;;  %v4812_v7 = vmul.f32 %v1144_v8, %v4767_v15  ;;  %v4818_v38 = vmul.f32 0.5, %v6194_v4  ;;  %v3356_v49 = vpop.eup %3355  ;;  %v1369_v21 = vadd.f32 %v6199_v46, %v6198_v24  ;;  %v4822_v20 = vpop.f32.mrb[58].mxu0  ;;  %v6202_v15 = vld [vmem:[#allocation18_spill] sm:$0xff]  ;;  %v6203_v4 = vld [vmem:[#allocation81_spill] sm:$0xff] }
 0x1de   :  { %v1985_v50 = vpack.c.bf16 %v1877_v16, %v1873_v43  ;;  %v1495_v57 = vmul.f32 0.7978846, %v1367_v13  ;;  %v1499_v11 = vmul.f32 0.7978846, %v1371_v35  ;;  %6200 = vst [vmem:[#allocation22_spill] sm:$0xff] %v4822_v20  ;;  %v4824_v60 = vpop.f32.mrb[58].mxu1  ;;  %v1373_v23 = vadd.f32 %v6203_v4, %v6202_v15 }
 0x1df   :  { %6196 = vst [vmem:[#allocation63_spill] sm:$0xff] %v4809_v36  ;;  %6197 = vst [vmem:[#allocation73_spill] sm:$0xff] %v4812_v7  ;;  %v3358_v36 = vpop.eup %3357  ;;  %v1742_v8 = vadd.f32 1.0, %v3356_v49  ;;  %v1143_v7 = vmul.f32 %v1015_v56, %v4783_v28  ;;  %v1017_v10 = vmul.f32 0.044715, %v4800_v1  ;;  %v6204_v46 = vld [vmem:[#allocation82_spill] sm:$0xff] }
 0x1e0   :  { %6201 = vst [vmem:[#allocation80_spill] sm:$0xff] %v4824_v60  ;;  %v3360_v58 = vpop.eup %3359  ;;  %2511 = vmatprep.mubr.bf16.mxu1 %v1985_v50  ;;  %v1746_v43 = vadd.f32 1.0, %v3358_v36  ;;  %3363 = vtanh.f32 %v1495_v57  ;;  %v1497_v35 = vmul.f32 0.7978846, %v1369_v21  ;;  %v4832_v16 = vadd.f32 %v6204_v46, %v3814_v25  ;;  %v6205_v21 = vld [vmem:[#allocation83_spill] sm:$0xff] }
 0x1e1   :  { %v3362_v13 = vpop.eup %3361  ;;  %v1870_v60 = vmul.f32 %v1742_v8, %v4727_v2  ;;  %v1744_v49 = vadd.f32 1.0, %v3360_v58  ;;  %3365 = vtanh.f32 %v1499_v11  ;;  %v4836_v56 = vmul.f32 0.5, %v6198_v24  ;;  %v6207_v8 = vld [vmem:[#allocation60_spill] sm:$0xff] }
 0x1e2   :  { %v1874_v20 = vmul.f32 %v1746_v43, %v4730_v44  ;;  %v1748_v4 = vadd.f32 1.0, %v3362_v13  ;;  %v1501_v32 = vmul.f32 0.7978846, %v1373_v23  ;;  %3367 = vtanh.f32 %v1497_v35  ;;  %v6210_v35 = vld [vmem:[#allocation76_spill] sm:$0xff] }
 0x1e3   :  { %v1145_v36 = vmul.f32 %v1017_v10, %v4800_v1  ;;  %v4841_v50 = vmul.f32 0.5, %v6202_v15  ;;  %v1018_v57 = vmul.f32 0.044715, %v4832_v16  ;;  %v4846_v2 = vadd.f32 %v6205_v21, %v3816_v26  ;;  %v6208_v10 = vld [vmem:[#allocation70_spill] sm:$0xff]  ;;  %v6209_v15 = vld [vmem:[#allocation72_spill] sm:$0xff] }
 0x1e4   :  { %v1982_v58 = vpack.c.bf16 %v1874_v20, %v1870_v60  ;;  %v1872_v11 = vmul.f32 %v1744_v49, %v848_v31  ;;  %v1876_v24 = vmul.f32 %v1748_v4, %v852_v37  ;;  %3369 = vtanh.f32 %v1501_v32  ;;  %v6211_v37 = vld [vmem:[#allocation61_spill] sm:$0xff]  ;;  %v6212_v32 = vld [vmem:[#allocation71_spill] sm:$0xff]  ;;  %v4864_v20 = vpop.f32.mrb[59].mxu0  ;;  %v4866_v60 = vpop.f32.mrb[59].mxu1 }
 0x1e5   :  { %v4849_v44 = vmul.f32 %v1143_v7, %v4783_v28  ;;  %v1020_v23 = vmul.f32 0.044715, %v4846_v2  ;;  %v1366_v43 = vadd.f32 %v6208_v10, %v6207_v8  ;;  %v1370_v46 = vadd.f32 %v6210_v35, %v6209_v15  ;;  %6213 = vst [vmem:[#allocation19_spill] sm:$0xff] %v4864_v20  ;;  %6214 = vst [vmem:[#allocation18_spill] sm:$0xff] %v4866_v60  ;;  %v6218_v10 = vld [vmem:[#allocation74_spill] sm:$0xff]  ;;  %v6220_v20 = vld [vmem:[#allocation24_spill] sm:$0xff] }
 0x1e6   :  { %2351 = vmatmul.mubr.bf16.gmra.mrb[80].mxu0 %v1982_v58  ;;  %v1984_v13 = vpack.c.bf16 %v1876_v24, %v1872_v11  ;;  %v4857_v21 = vmul.f32 0.5, %v6207_v8  ;;  %v4860_v31 = vmul.f32 0.5, %v6209_v15  ;;  %v1368_v7 = vadd.f32 %v6212_v32, %v6211_v37  ;;  %v4872_v24 = vpop.f32.mrb[60].mxu0  ;;  %v4874_v8 = vpop.f32.mrb[60].mxu1  ;;  %v6219_v15 = vld [vmem:[#allocation77_spill] sm:$0xff] }
 0x1e7   :  { %6206 = vst [vmem:[#allocation64_spill] sm:$0xff] %v4849_v44  ;;  %v4869_v49 = vmul.f32 %v1145_v36, %v4800_v1  ;;  %v1146_v4 = vmul.f32 %v1018_v57, %v4832_v16  ;;  %v1494_v58 = vmul.f32 0.7978846, %v1366_v43  ;;  %v1498_v11 = vmul.f32 0.7978846, %v1370_v46  ;;  %6216 = vst [vmem:[#allocation82_spill] sm:$0xff] %v4872_v24 }
 0x1e8   :  { %6217 = vst [vmem:[#allocation83_spill] sm:$0xff] %v4874_v8  ;;  %2512 = vmatmul.mubr.bf16.gmra.mrb[80].mxu1 %v1984_v13  ;;  %v1372_v35 = vadd.f32 %v6219_v15, %v6218_v10  ;;  %v1496_v32 = vmul.f32 0.7978846, %v1368_v7  ;;  %v4880_v44 = vadd.f32 %v6220_v20, %v3818_v0  ;;  %v6221_v36 = vld [vmem:[#allocation84_spill] sm:$0xff]  ;;  %v4886_v57 = vpop.f32.mrb[61].mxu0  ;;  %v4888_v43 = vpop.f32.mrb[61].mxu1  ;;  %v1148_v46 = vmul.f32 %v1020_v23, %v4846_v2 }
 0x1e9   :  { %6215 = vst [vmem:[#allocation81_spill] sm:$0xff] %v4869_v49  ;;  %v4884_v60 = vadd.f32 %v6221_v36, %v3820_v27  ;;  %6222 = vst [vmem:[#allocation60_spill] sm:$0xff] %v4886_v57  ;;  %3371 = vtanh.f32 %v1494_v58  ;;  %v4893_v13 = vadd.f32 %v4422_v33, %v3814_v25  ;;  %v4897_v7 = vadd.f32 %v4424_v14, %v3816_v26 }
 0x1ea   :  { %6223 = vst [vmem:[#allocation70_spill] sm:$0xff] %v4888_v43  ;;  %v3364_v20 = vpop.eup %3363  ;;  %3373 = vtanh.f32 %v1498_v11  ;;  %v1500_v15 = vmul.f32 0.7978846, %v1372_v35  ;;  %v1019_v36 = vmul.f32 0.044715, %v4880_v44  ;;  %v856_v1 = vmul.f32 0.5, %v6211_v37 }
 0x1eb   :  { %v1021_v57 = vmul.f32 0.044715, %v4884_v60  ;;  %v3366_v8 = vpop.eup %3365  ;;  %v1751_v43 = vadd.f32 1.0, %v3364_v20  ;;  %3375 = vtanh.f32 %v1496_v32  ;;  %v1022_v23 = vmul.f32 0.044715, %v4893_v13 }
 0x1ec   :  { %v1024_v58 = vmul.f32 0.044715, %v4897_v7  ;;  %v3368_v33 = vpop.eup %3367  ;;  %v1755_v24 = vadd.f32 1.0, %v3366_v8  ;;  %3377 = vtanh.f32 %v1500_v15  ;;  %v1147_v14 = vmul.f32 %v1019_v36, %v4880_v44 }
 0x1ed   :  { %v1149_v49 = vmul.f32 %v1021_v57, %v4884_v60  ;;  %v1879_v11 = vmul.f32 %v1751_v43, %v4815_v62  ;;  %v1753_v35 = vadd.f32 1.0, %v3368_v33  ;;  %v860_v28 = vmul.f32 0.5, %v6218_v10 }
 0x1ee   :  { %v3370_v20 = vpop.eup %3369  ;;  %v1883_v32 = vmul.f32 %v1755_v24, %v4818_v38  ;;  %v1150_v9 = vmul.f32 %v1022_v23, %v4893_v13  ;;  %v1152_v34 = vmul.f32 %v1024_v58, %v4897_v7  ;;  %v4913_v8 = vadd.f32 %v4427_v45, %v3818_v0 }
 0x1ef   :  { %v1757_v15 = vadd.f32 1.0, %v3370_v20  ;;  %v4916_v57 = vmul.f32 %v1146_v4, %v4832_v16  ;;  %v4919_v62 = vmul.f32 %v1148_v46, %v4846_v2  ;;  %v4922_v37 = vmul.f32 %v1147_v14, %v4880_v44 }
 0x1f0   :  { %v1987_v10 = vpack.c.bf16 %v1883_v32, %v1879_v11  ;;  %v4925_v38 = vmul.f32 %v1149_v49, %v4884_v60  ;;  %v1023_v24 = vmul.f32 0.044715, %v4913_v8  ;;  %v4930_v45 = vadd.f32 %v4429_v17, %v3820_v27  ;;  %v4952_v11 = vpop.f32.mrb[62].mxu1 }
 0x1f1   :  { %v1881_v43 = vmul.f32 %v1753_v35, %v4836_v56  ;;  %v1885_v4 = vmul.f32 %v1757_v15, %v4841_v50  ;;  %v1375_v46 = vadd.f32 %v4435_v6, %v4342_v52  ;;  %v1379_v36 = vadd.f32 %v4529_v30, %v4474_v51  ;;  %v4950_v30 = vpop.f32.mrb[62].mxu0  ;;  %6226 = vst [vmem:[#allocation61_spill] sm:$0xff] %v4952_v11 }
 0x1f2   :  { %2358 = vmatprep.mubr.bf16.mxu0 %v1987_v10  ;;  %v4939_v49 = vmul.f32 %v1150_v9, %v4893_v13  ;;  %v4942_v23 = vmul.f32 %v1152_v34, %v4897_v7  ;;  %v1025_v17 = vmul.f32 0.044715, %v4930_v45  ;;  %v4946_v58 = vmul.f32 0.5, %v4342_v52  ;;  %6225 = vst [vmem:[#allocation76_spill] sm:$0xff] %v4950_v30 }
 0x1f3   :  { %v3372_v56 = vpop.eup %3371  ;;  %v1989_v50 = vpack.c.bf16 %v1885_v4, %v1881_v43  ;;  %v1503_v33 = vmul.f32 0.7978846, %v1375_v46  ;;  %v1507_v14 = vmul.f32 0.7978846, %v1379_v36  ;;  %v1377_v6 = vadd.f32 %v4448_v12, %v4346_v40 }
 0x1f4   :  { %6224 = vst [vmem:[#allocation72_spill] sm:$0xff] %v4942_v23  ;;  %v3374_v9 = vpop.eup %3373  ;;  %v1750_v35 = vadd.f32 1.0, %v3372_v56  ;;  %v1151_v34 = vmul.f32 %v1023_v24, %v4913_v8  ;;  %v4956_v20 = vmul.f32 0.5, %v4474_v51  ;;  %v1381_v52 = vadd.f32 %v4532_v29, %v4478_v39 }
 0x1f5   :  { %v3376_v32 = vpop.eup %3375  ;;  %2519 = vmatprep.mubr.bf16.mxu1 %v1989_v50  ;;  %v1754_v15 = vadd.f32 1.0, %v3374_v9  ;;  %3379 = vtanh.f32 %v1503_v33  ;;  %v1505_v10 = vmul.f32 0.7978846, %v1377_v6  ;;  %v4962_v12 = vadd.f32 %v4432_v19, %v3814_v25  ;;  %v6227_v33 = vld [vmem:[#allocation35_spill] sm:$0xff] }
 0x1f6   :  { %v3378_v43 = vpop.eup %3377  ;;  %v1878_v4 = vmul.f32 %v1750_v35, %v4857_v21  ;;  %v1752_v46 = vadd.f32 1.0, %v3376_v32  ;;  %v1153_v24 = vmul.f32 %v1025_v17, %v4930_v45  ;;  %3381 = vtanh.f32 %v1507_v14  ;;  %v6229_v35 = vld [vmem:[#allocation85_spill] sm:$0xff] }
 0x1f7   :  { %v1882_v51 = vmul.f32 %v1754_v15, %v4860_v31  ;;  %v1756_v36 = vadd.f32 1.0, %v3378_v43  ;;  %v1509_v29 = vmul.f32 0.7978846, %v1381_v52  ;;  %3383 = vtanh.f32 %v1505_v10  ;;  %v6231_v10 = vld [vmem:[#allocation30_spill] sm:$0xff]  ;;  %v4994_v43 = vpop.f32.mrb[63].mxu0 }
 0x1f8   :  { %v4968_v56 = vmul.f32 0.5, %v4346_v40  ;;  %v4971_v50 = vmul.f32 0.5, %v4478_v39  ;;  %v1026_v19 = vmul.f32 0.044715, %v4962_v12  ;;  %v4976_v21 = vadd.f32 %v6227_v33, %v3816_v26  ;;  %v6228_v40 = vld [vmem:[#allocation17_spill] sm:$0xff]  ;;  %6232 = vst [vmem:[#allocation71_spill] sm:$0xff] %v4994_v43 }
 0x1f9   :  { %v1986_v6 = vpack.c.bf16 %v1882_v51, %v1878_v4  ;;  %v1880_v17 = vmul.f32 %v1752_v46, %v856_v1  ;;  %v1884_v14 = vmul.f32 %v1756_v36, %v860_v28  ;;  %3385 = vtanh.f32 %v1509_v29  ;;  %v6230_v28 = vld [vmem:[#allocation23_spill] sm:$0xff]  ;;  %v4996_v4 = vpop.f32.mrb[63].mxu1  ;;  %v6234_v33 = vld [vmem:[#allocation42_spill] sm:$0xff] }
 0x1fa   :  { %v4979_v31 = vmul.f32 %v1151_v34, %v4913_v8  ;;  %v1028_v9 = vmul.f32 0.044715, %v4976_v21  ;;  %v1374_v52 = vadd.f32 %v6229_v35, %v6228_v40  ;;  %v1378_v39 = vadd.f32 %v4516_v3, %v4420_v41  ;;  %6233 = vst [vmem:[#allocation74_spill] sm:$0xff] %v4996_v4  ;;  %v6238_v35 = vld [vmem:[#allocation33_spill] sm:$0xff] }
 0x1fb   :  { %2359 = vmatmul.mubr.bf16.gmra.mrb[84].mxu0 %v1986_v6  ;;  %v1988_v32 = vpack.c.bf16 %v1884_v14, %v1880_v17  ;;  %v4987_v15 = vmul.f32 %v1153_v24, %v4930_v45  ;;  %v4990_v1 = vmul.f32 0.5, %v6228_v40  ;;  %v1376_v34 = vadd.f32 %v6231_v10, %v6230_v28  ;;  %v6235_v17 = vld [vmem:[#allocation26_spill] sm:$0xff] }
 0x1fc   :  { %v1154_v46 = vmul.f32 %v1026_v19, %v4962_v12  ;;  %v5000_v51 = vmul.f32 0.5, %v4420_v41  ;;  %v1502_v3 = vmul.f32 0.7978846, %v1374_v52  ;;  %v1506_v36 = vmul.f32 0.7978846, %v1378_v39  ;;  %v6236_v41 = vld [vmem:[#allocation20_spill] sm:$0xff] }
 0x1fd   :  { %2520 = vmatmul.mubr.bf16.gmra.mrb[84].mxu1 %v1988_v32  ;;  %v1380_v24 = vadd.f32 %v4526_v61, %v4439_v18  ;;  %v1504_v29 = vmul.f32 0.7978846, %v1376_v34  ;;  %v5006_v6 = vadd.f32 %v6234_v33, %v3818_v0  ;;  %v5010_v14 = vadd.f32 %v6235_v17, %v3820_v27 }
 0x1fe   :  { %v1156_v19 = vmul.f32 %v1028_v9, %v4976_v21  ;;  %3387 = vtanh.f32 %v1502_v3  ;;  %v5015_v40 = vadd.f32 %v6236_v41, %v3814_v25  ;;  %v5019_v52 = vadd.f32 %v6238_v35, %v3816_v26 }
 0x1ff   :  { %v3380_v61 = vpop.eup %3379  ;;  %3389 = vtanh.f32 %v1506_v36  ;;  %v1508_v39 = vmul.f32 0.7978846, %v1380_v24  ;;  %v1027_v32 = vmul.f32 0.044715, %v5006_v6  ;;  %v1029_v10 = vmul.f32 0.044715, %v5010_v14 }
 0x200   :  { %6237 = vst [vmem:[#allocation77_spill] sm:$0xff] %v5015_v40  ;;  %6239 = vst [vmem:[#allocation24_spill] sm:$0xff] %v5019_v52  ;;  %v3382_v34 = vpop.eup %3381  ;;  %v1759_v33 = vadd.f32 1.0, %v3380_v61  ;;  %3391 = vtanh.f32 %v1504_v29  ;;  %v1030_v9 = vmul.f32 0.044715, %v5015_v40  ;;  %v864_v43 = vmul.f32 0.5, %v6230_v28 }
 0x201   :  { %v1032_v3 = vmul.f32 0.044715, %v5019_v52  ;;  %v3384_v17 = vpop.eup %3383  ;;  %v1763_v41 = vadd.f32 1.0, %v3382_v34  ;;  %3393 = vtanh.f32 %v1508_v39  ;;  %v1155_v35 = vmul.f32 %v1027_v32, %v5006_v6  ;;  %v6240_v39 = vld [vmem:[#allocation37_spill] sm:$0xff] }
 0x202   :  { %v1157_v4 = vmul.f32 %v1029_v10, %v5010_v14  ;;  %v1887_v36 = vmul.f32 %v1759_v33, %v4946_v58  ;;  %v1761_v24 = vadd.f32 1.0, %v3384_v17  ;;  %v868_v11 = vmul.f32 0.5, %v4439_v18 }
 0x203   :  { %v3386_v61 = vpop.eup %3385  ;;  %v1891_v29 = vmul.f32 %v1763_v41, %v4956_v20  ;;  %v1158_v30 = vmul.f32 %v1030_v9, %v5015_v40  ;;  %v1160_v23 = vmul.f32 %v1032_v3, %v5019_v52  ;;  %v5035_v34 = vadd.f32 %v6240_v39, %v3818_v0  ;;  %v6242_v9 = vld [vmem:[#allocation21_spill] sm:$0xff]  ;;  %v6247_v39 = vld [vmem:[#allocation31_spill] sm:$0xff] }
 0x204   :  { %v1765_v32 = vadd.f32 1.0, %v3386_v61  ;;  %v5038_v10 = vmul.f32 %v1154_v46, %v4962_v12  ;;  %v5041_v58 = vmul.f32 %v1156_v19, %v4976_v21  ;;  %v5044_v18 = vmul.f32 %v1155_v35, %v5006_v6 }
 0x205   :  { %6241 = vst [vmem:[#allocation84_spill] sm:$0xff] %v5035_v34  ;;  %v1991_v28 = vpack.c.bf16 %v1891_v29, %v1887_v36  ;;  %v5047_v20 = vmul.f32 %v1157_v4, %v5010_v14  ;;  %v1031_v33 = vmul.f32 0.044715, %v5035_v34  ;;  %v5052_v3 = vadd.f32 %v6242_v9, %v3820_v27 }
 0x206   :  { %v1889_v17 = vmul.f32 %v1761_v24, %v4968_v56  ;;  %v1893_v46 = vmul.f32 %v1765_v32, %v4971_v50  ;;  %v1383_v19 = vadd.f32 %v4579_v22, %v4503_v53  ;;  %v1387_v41 = vadd.f32 %v4663_v54, %v4621_v59  ;;  %v6246_v22 = vld [vmem:[#allocation88_spill] sm:$0xff] }
 0x207   :  { %6243 = vst [vmem:[#allocation35_spill] sm:$0xff] %v5052_v3  ;;  %2366 = vmatprep.mubr.bf16.mxu0 %v1991_v28  ;;  %v5061_v4 = vmul.f32 %v1158_v30, %v5015_v40  ;;  %v5064_v35 = vmul.f32 %v1160_v23, %v5019_v52  ;;  %v1033_v36 = vmul.f32 0.044715, %v5052_v3  ;;  %v5068_v61 = vmul.f32 0.5, %v4503_v53 }
 0x208   :  { %v3388_v56 = vpop.eup %3387  ;;  %v1993_v50 = vpack.c.bf16 %v1893_v46, %v1889_v17  ;;  %v1511_v24 = vmul.f32 0.7978846, %v1383_v19  ;;  %v1515_v29 = vmul.f32 0.7978846, %v1387_v41  ;;  %v1385_v32 = vadd.f32 %v6247_v39, %v6246_v22  ;;  %v6248_v46 = vld [vmem:[#allocation34_spill] sm:$0xff] }
 0x209   :  { %6244 = vst [vmem:[#allocation17_spill] sm:$0xff] %v5061_v4  ;;  %6245 = vst [vmem:[#allocation85_spill] sm:$0xff] %v5064_v35  ;;  %v3390_v54 = vpop.eup %3389  ;;  %v1758_v28 = vadd.f32 1.0, %v3388_v56  ;;  %v1159_v30 = vmul.f32 %v1031_v33, %v5035_v34  ;;  %v5074_v9 = vmul.f32 0.5, %v4621_v59  ;;  %v1389_v23 = vadd.f32 %v4666_v63, %v4625_v48 }
 0x20a   :  { %v3392_v35 = vpop.eup %3391  ;;  %2527 = vmatprep.mubr.bf16.mxu1 %v1993_v50  ;;  %v1762_v53 = vadd.f32 1.0, %v3390_v54  ;;  %3395 = vtanh.f32 %v1511_v24  ;;  %v1513_v17 = vmul.f32 0.7978846, %v1385_v32  ;;  %v5080_v19 = vadd.f32 %v6248_v46, %v3814_v25  ;;  %v6250_v54 = vld [vmem:[#allocation29_spill] sm:$0xff] }
 0x20b   :  { %v3394_v41 = vpop.eup %3393  ;;  %v1886_v56 = vmul.f32 %v1758_v28, %v4990_v1  ;;  %v1760_v39 = vadd.f32 1.0, %v3392_v35  ;;  %v1161_v33 = vmul.f32 %v1033_v36, %v5052_v3  ;;  %3397 = vtanh.f32 %v1515_v29  ;;  %v6253_v29 = vld [vmem:[#allocation36_spill] sm:$0xff] }
 0x20c   :  { %6249 = vst [vmem:[#allocation23_spill] sm:$0xff] %v5080_v19  ;;  %v1890_v59 = vmul.f32 %v1762_v53, %v5000_v51  ;;  %v1764_v52 = vadd.f32 1.0, %v3394_v41  ;;  %v1517_v63 = vmul.f32 0.7978846, %v1389_v23  ;;  %3399 = vtanh.f32 %v1513_v17  ;;  %v6254_v23 = vld [vmem:[#allocation87_spill] sm:$0xff] }
 0x20d   :  { %v873_v50 = vmul.f32 0.5, %v6246_v22  ;;  %v877_v24 = vmul.f32 0.5, %v4625_v48  ;;  %v1034_v32 = vmul.f32 0.044715, %v5080_v19  ;;  %v5090_v46 = vadd.f32 %v6250_v54, %v3816_v26 }
 0x20e   :  { %v1990_v1 = vpack.c.bf16 %v1890_v59, %v1886_v56  ;;  %v1888_v35 = vmul.f32 %v1760_v39, %v864_v43  ;;  %v1892_v28 = vmul.f32 %v1764_v52, %v868_v11  ;;  %3401 = vtanh.f32 %v1517_v63  ;;  %v6256_v11 = vld [vmem:[#allocation27_spill] sm:$0xff]  ;;  %v6257_v52 = vld [vmem:[#allocation93_spill] sm:$0xff]  ;;  %v6259_v63 = vld [vmem:[#allocation94_spill] sm:$0xff] }
 0x20f   :  { %6251 = vst [vmem:[#allocation30_spill] sm:$0xff] %v5090_v46  ;;  %v5093_v36 = vmul.f32 %v1159_v30, %v5035_v34  ;;  %v1036_v51 = vmul.f32 0.044715, %v5090_v46  ;;  %v1382_v22 = vadd.f32 %v6254_v23, %v6253_v29  ;;  %v1386_v48 = vadd.f32 %v4657_v5, %v4575_v55  ;;  %v6258_v5 = vld [vmem:[#allocation50_spill] sm:$0xff] }
 0x210   :  { %2367 = vmatmul.mubr.bf16.gmra.mrb[88].mxu0 %v1990_v1  ;;  %v1992_v53 = vpack.c.bf16 %v1892_v28, %v1888_v35  ;;  %v5101_v17 = vmul.f32 %v1161_v33, %v5052_v3  ;;  %v5104_v43 = vmul.f32 0.5, %v6253_v29  ;;  %v1384_v30 = vadd.f32 %v6257_v52, %v6256_v11  ;;  %v6260_v33 = vld [vmem:[#allocation40_spill] sm:$0xff]  ;;  %v6261_v28 = vld [vmem:[#allocation86_spill] sm:$0xff] }
 0x211   :  { %6252 = vst [vmem:[#allocation42_spill] sm:$0xff] %v5093_v36  ;;  %v1162_v41 = vmul.f32 %v1034_v32, %v5080_v19  ;;  %v5110_v56 = vmul.f32 0.5, %v4575_v55  ;;  %v1510_v39 = vmul.f32 0.7978846, %v1382_v22  ;;  %v1514_v59 = vmul.f32 0.7978846, %v1386_v48 }
 0x212   :  { %6255 = vst [vmem:[#allocation26_spill] sm:$0xff] %v5101_v17  ;;  %2528 = vmatmul.mubr.bf16.gmra.mrb[88].mxu1 %v1992_v53  ;;  %v1388_v54 = vadd.f32 %v6259_v63, %v6258_v5  ;;  %v1512_v1 = vmul.f32 0.7978846, %v1384_v30  ;;  %v5116_v35 = vadd.f32 %v6260_v33, %v3818_v0  ;;  %v5120_v29 = vadd.f32 %v6261_v28, %v3820_v27  ;;  %v6263_v55 = vld [vmem:[#allocation89_spill] sm:$0xff]  ;;  %v6265_v22 = vld [vmem:[#allocation90_spill] sm:$0xff] }
 0x213   :  { %v1164_v32 = vmul.f32 %v1036_v51, %v5090_v46  ;;  %3403 = vtanh.f32 %v1510_v39  ;;  %v5125_v23 = vadd.f32 %v6263_v55, %v3814_v25  ;;  %v5129_v48 = vadd.f32 %v6265_v22, %v3816_v26 }
 0x214   :  { %6262 = vst [vmem:[#allocation20_spill] sm:$0xff] %v5120_v29  ;;  %v3396_v53 = vpop.eup %3395  ;;  %3405 = vtanh.f32 %v1514_v59  ;;  %v1516_v52 = vmul.f32 0.7978846, %v1388_v54  ;;  %v1035_v30 = vmul.f32 0.044715, %v5116_v35  ;;  %v872_v17 = vmul.f32 0.5, %v6256_v11 }
 0x215   :  { %6264 = vst [vmem:[#allocation33_spill] sm:$0xff] %v5125_v23  ;;  %6266 = vst [vmem:[#allocation37_spill] sm:$0xff] %v5129_v48  ;;  %v1037_v63 = vmul.f32 0.044715, %v5120_v29  ;;  %v3398_v33 = vpop.eup %3397  ;;  %v1767_v28 = vadd.f32 1.0, %v3396_v53  ;;  %3407 = vtanh.f32 %v1512_v1  ;;  %v876_v3 = vmul.f32 0.5, %v6258_v5 }
 0x216   :  { %v1038_v51 = vmul.f32 0.044715, %v5125_v23  ;;  %v1040_v39 = vmul.f32 0.044715, %v5129_v48  ;;  %v3400_v55 = vpop.eup %3399  ;;  %v1771_v4 = vadd.f32 1.0, %v3398_v33  ;;  %3409 = vtanh.f32 %v1516_v52  ;;  %v6267_v52 = vld [vmem:[#allocation91_spill] sm:$0xff] }
 0x217   :  { %v1163_v22 = vmul.f32 %v1035_v30, %v5116_v35  ;;  %v1165_v40 = vmul.f32 %v1037_v63, %v5120_v29  ;;  %v1895_v59 = vmul.f32 %v1767_v28, %v5068_v61  ;;  %v1769_v54 = vadd.f32 1.0, %v3400_v55  ;;  %v6272_v28 = vld [vmem:[#allocation92_spill] sm:$0xff] }
 0x218   :  { %v3402_v53 = vpop.eup %3401  ;;  %v1899_v1 = vmul.f32 %v1771_v4, %v5074_v9  ;;  %v1166_v36 = vmul.f32 %v1038_v51, %v5125_v23  ;;  %v1168_v34 = vmul.f32 %v1040_v39, %v5129_v48  ;;  %v5145_v33 = vadd.f32 %v6267_v52, %v3818_v0 }
 0x219   :  { %v1773_v30 = vadd.f32 1.0, %v3402_v53  ;;  %v5148_v63 = vmul.f32 %v1162_v41, %v5080_v19  ;;  %v5151_v61 = vmul.f32 %v1164_v32, %v5090_v46  ;;  %v5154_v11 = vmul.f32 %v1163_v22, %v5116_v35  ;;  %v6274_v41 = vld [vmem:[#allocation52_spill] sm:$0xff]  ;;  %v6275_v53 = vld [vmem:[#allocation69_spill] sm:$0xff] }
 0x21a   :  { %6268 = vst [vmem:[#allocation21_spill] sm:$0xff] %v5145_v33  ;;  %v1995_v5 = vpack.c.bf16 %v1899_v1, %v1895_v59  ;;  %v5157_v4 = vmul.f32 %v1165_v40, %v5120_v29  ;;  %v1039_v9 = vmul.f32 0.044715, %v5145_v33  ;;  %v5162_v51 = vadd.f32 %v6272_v28, %v3820_v27  ;;  %v6278_v28 = vld [vmem:[#allocation95_spill] sm:$0xff] }
 0x21b   :  { %6269 = vst [vmem:[#allocation88_spill] sm:$0xff] %v5148_v63  ;;  %6270 = vst [vmem:[#allocation31_spill] sm:$0xff] %v5151_v61  ;;  %v1897_v39 = vmul.f32 %v1769_v54, %v873_v50  ;;  %v1901_v55 = vmul.f32 %v1773_v30, %v877_v24  ;;  %v1391_v52 = vadd.f32 %v6275_v53, %v6274_v41  ;;  %v5176_v1 = vmul.f32 0.5, %v6274_v41  ;;  %v6279_v53 = vld [vmem:[#allocation57_spill] sm:$0xff] }
 0x21c   :  { %6271 = vst [vmem:[#allocation34_spill] sm:$0xff] %v5157_v4  ;;  %6273 = vst [vmem:[#allocation29_spill] sm:$0xff] %v5162_v51  ;;  %v1395_v32 = vadd.f32 %v4792_v47, %v4750_v42  ;;  %2374 = vmatprep.mubr.bf16.mxu0 %v1995_v5  ;;  %v5169_v22 = vmul.f32 %v1166_v36, %v5125_v23  ;;  %v5172_v40 = vmul.f32 %v1168_v34, %v5129_v48  ;;  %v6280_v34 = vld [vmem:[#allocation56_spill] sm:$0xff] }
 0x21d   :  { %v1041_v59 = vmul.f32 0.044715, %v5162_v51  ;;  %v3404_v50 = vpop.eup %3403  ;;  %v1997_v24 = vpack.c.bf16 %v1901_v55, %v1897_v39  ;;  %v1519_v54 = vmul.f32 0.7978846, %v1391_v52  ;;  %v1393_v61 = vadd.f32 %v6279_v53, %v6278_v28  ;;  %v6282_v55 = vld [vmem:[#allocation53_spill] sm:$0xff] }
 0x21e   :  { %6276 = vst [vmem:[#allocation36_spill] sm:$0xff] %v5169_v22  ;;  %6277 = vst [vmem:[#allocation87_spill] sm:$0xff] %v5172_v40  ;;  %v1523_v30 = vmul.f32 0.7978846, %v1395_v32  ;;  %v3406_v47 = vpop.eup %3405  ;;  %v1766_v5 = vadd.f32 1.0, %v3404_v50  ;;  %v1167_v36 = vmul.f32 %v1039_v9, %v5145_v33  ;;  %v5182_v22 = vmul.f32 0.5, %v4750_v42 }
 0x21f   :  { %v6281_v40 = vld [vmem:[#allocation97_spill] sm:$0xff]  ;;  %v3408_v23 = vpop.eup %3407  ;;  %2535 = vmatprep.mubr.bf16.mxu1 %v1997_v24  ;;  %v1770_v41 = vadd.f32 1.0, %v3406_v47  ;;  %3411 = vtanh.f32 %v1519_v54  ;;  %v1521_v39 = vmul.f32 0.7978846, %v1393_v61  ;;  %v5188_v52 = vadd.f32 %v6282_v55, %v3814_v25  ;;  %v6283_v47 = vld [vmem:[#allocation38_spill] sm:$0xff] }
 0x220   :  { %v1397_v48 = vadd.f32 %v6281_v40, %v6280_v34  ;;  %v3410_v32 = vpop.eup %3409  ;;  %v1894_v50 = vmul.f32 %v1766_v5, %v5104_v43  ;;  %v1768_v53 = vadd.f32 1.0, %v3408_v23  ;;  %v1169_v9 = vmul.f32 %v1041_v59, %v5162_v51 }
 0x221   :  { %3413 = vtanh.f32 %v1523_v30  ;;  %v1898_v42 = vmul.f32 %v1770_v41, %v5110_v56  ;;  %v1772_v46 = vadd.f32 1.0, %v3410_v32  ;;  %v881_v24 = vmul.f32 0.5, %v6278_v28  ;;  %v6286_v30 = vld [vmem:[#allocation47_spill] sm:$0xff]  ;;  %v6287_v41 = vld [vmem:[#allocation49_spill] sm:$0xff] }
 0x222   :  { %v1525_v40 = vmul.f32 0.7978846, %v1397_v48  ;;  %3415 = vtanh.f32 %v1521_v39  ;;  %v885_v61 = vmul.f32 0.5, %v6280_v34  ;;  %v1042_v54 = vmul.f32 0.044715, %v5188_v52  ;;  %v6285_v48 = vld [vmem:[#allocation48_spill] sm:$0xff] }
 0x223   :  { %v5198_v55 = vadd.f32 %v6283_v47, %v3816_v26  ;;  %v1994_v43 = vpack.c.bf16 %v1898_v42, %v1894_v50  ;;  %v1896_v23 = vmul.f32 %v1768_v53, %v872_v17  ;;  %v1900_v5 = vmul.f32 %v1772_v46, %v876_v3  ;;  %v6288_v34 = vld [vmem:[#allocation78_spill] sm:$0xff]  ;;  %v6290_v3 = vld [vmem:[#allocation41_spill] sm:$0xff] }
 0x224   :  { %3417 = vtanh.f32 %v1525_v40  ;;  %v5201_v59 = vmul.f32 %v1167_v36, %v5145_v33  ;;  %v1390_v28 = vadd.f32 %v6286_v30, %v6285_v48  ;;  %v1394_v39 = vadd.f32 %v6288_v34, %v6287_v41  ;;  %v6291_v46 = vld [vmem:[#allocation62_spill] sm:$0xff]  ;;  %v6292_v30 = vld [vmem:[#allocation65_spill] sm:$0xff] }
 0x225   :  { %v1044_v56 = vmul.f32 0.044715, %v5198_v55  ;;  %2375 = vmatmul.mubr.bf16.gmra.mrb[92].mxu0 %v1994_v43  ;;  %v1996_v32 = vpack.c.bf16 %v1900_v5, %v1896_v23  ;;  %v5209_v47 = vmul.f32 %v1169_v9, %v5162_v51  ;;  %v5212_v17 = vmul.f32 0.5, %v6285_v48  ;;  %v6293_v43 = vld [vmem:[#allocation96_spill] sm:$0xff]  ;;  %v6294_v9 = vld [vmem:[#allocation43_spill] sm:$0xff]  ;;  %v6295_v48 = vld [vmem:[#allocation54_spill] sm:$0xff] }
 0x226   :  { %6284 = vst [vmem:[#allocation27_spill] sm:$0xff] %v5201_v59  ;;  %v1392_v36 = vadd.f32 %v6291_v46, %v6290_v3  ;;  %v1170_v50 = vmul.f32 %v1042_v54, %v5188_v52  ;;  %v5218_v53 = vmul.f32 0.5, %v6287_v41  ;;  %v1518_v42 = vmul.f32 0.7978846, %v1390_v28  ;;  %v6296_v41 = vld [vmem:[#allocation46_spill] sm:$0xff] }
 0x227   :  { %6289 = vst [vmem:[#allocation93_spill] sm:$0xff] %v5209_v47  ;;  %v1522_v40 = vmul.f32 0.7978846, %v1394_v39  ;;  %2536 = vmatmul.mubr.bf16.gmra.mrb[92].mxu1 %v1996_v32  ;;  %v1396_v23 = vadd.f32 %v6293_v43, %v6292_v30  ;;  %v5224_v34 = vadd.f32 %v6294_v9, %v3818_v0  ;;  %v5228_v47 = vadd.f32 %v6295_v48, %v3820_v27  ;;  %v6298_v39 = vld [vmem:[#allocation39_spill] sm:$0xff] }
 0x228   :  { %v1520_v5 = vmul.f32 0.7978846, %v1392_v36  ;;  %v1172_v54 = vmul.f32 %v1044_v56, %v5198_v55  ;;  %3419 = vtanh.f32 %v1518_v42  ;;  %v5233_v28 = vadd.f32 %v6296_v41, %v3814_v25 }
 0x229   :  { %v5237_v32 = vadd.f32 %v6298_v39, %v3816_v26  ;;  %v3412_v46 = vpop.eup %3411  ;;  %3421 = vtanh.f32 %v1522_v40  ;;  %v1524_v36 = vmul.f32 0.7978846, %v1396_v23  ;;  %v1043_v43 = vmul.f32 0.044715, %v5224_v34 }
 0x22a   :  { %6297 = vst [vmem:[#allocation50_spill] sm:$0xff] %v5233_v28  ;;  %v1045_v9 = vmul.f32 0.044715, %v5228_v47  ;;  %v1775_v51 = vadd.f32 1.0, %v3412_v46  ;;  %3423 = vtanh.f32 %v1520_v5  ;;  %v1046_v56 = vmul.f32 0.044715, %v5233_v28 }
 0x22b   :  { %6299 = vst [vmem:[#allocation94_spill] sm:$0xff] %v5237_v32  ;;  %v3414_v48 = vpop.eup %3413  ;;  %v1048_v42 = vmul.f32 0.044715, %v5237_v32  ;;  %3425 = vtanh.f32 %v1524_v36  ;;  %v1171_v39 = vmul.f32 %v1043_v43, %v5224_v34  ;;  %v880_v63 = vmul.f32 0.5, %v6290_v3  ;;  %v6300_v36 = vld [vmem:[#allocation51_spill] sm:$0xff] }
 0x22c   :  { %v3416_v41 = vpop.eup %3415  ;;  %v1779_v59 = vadd.f32 1.0, %v3414_v48  ;;  %v1173_v33 = vmul.f32 %v1045_v9, %v5228_v47  ;;  %v1903_v40 = vmul.f32 %v1775_v51, %v5176_v1  ;;  %v884_v19 = vmul.f32 0.5, %v6292_v30  ;;  %v6302_v30 = vld [vmem:[#allocation32_spill] sm:$0xff] }
 0x22d   :  { %v1777_v23 = vadd.f32 1.0, %v3416_v41  ;;  %v1174_v4 = vmul.f32 %v1046_v56, %v5233_v28  ;;  %v1176_v29 = vmul.f32 %v1048_v42, %v5237_v32  ;;  %v5253_v48 = vadd.f32 %v6300_v36, %v3818_v0 }
 0x22e   :  { %v3418_v46 = vpop.eup %3417  ;;  %v1907_v5 = vmul.f32 %v1779_v59, %v5182_v22  ;;  %v5256_v9 = vmul.f32 %v1170_v50, %v5188_v52  ;;  %v5259_v51 = vmul.f32 %v1172_v54, %v5198_v55  ;;  %v5262_v1 = vmul.f32 %v1171_v39, %v5224_v34  ;;  %v6304_v50 = vld [vmem:[#allocation75_spill] sm:$0xff] }
 0x22f   :  { %v1781_v43 = vadd.f32 1.0, %v3418_v46  ;;  %v5265_v22 = vmul.f32 %v1173_v33, %v5228_v47  ;;  %v1047_v59 = vmul.f32 0.044715, %v5253_v48  ;;  %v5270_v56 = vadd.f32 %v6302_v30, %v3820_v27  ;;  %v6305_v46 = vld [vmem:[#allocation64_spill] sm:$0xff]  ;;  %v6308_v30 = vld [vmem:[#allocation79_spill] sm:$0xff] }
 0x230   :  { %6301 = vst [vmem:[#allocation40_spill] sm:$0xff] %v5259_v51  ;;  %v1999_v3 = vpack.c.bf16 %v1907_v5, %v1903_v40  ;;  %v1905_v42 = vmul.f32 %v1777_v23, %v881_v24  ;;  %v1399_v36 = vadd.f32 %v6305_v46, %v6304_v50  ;;  %v1403_v54 = vadd.f32 %v4922_v37, %v4880_v44  ;;  %v6309_v46 = vld [vmem:[#allocation81_spill] sm:$0xff] }
 0x231   :  { %6303 = vst [vmem:[#allocation86_spill] sm:$0xff] %v5270_v56  ;;  %v1909_v41 = vmul.f32 %v1781_v43, %v885_v61  ;;  %v5277_v39 = vmul.f32 %v1174_v4, %v5233_v28  ;;  %v5280_v33 = vmul.f32 %v1176_v29, %v5237_v32  ;;  %v1049_v40 = vmul.f32 0.044715, %v5270_v56 }
 0x232   :  { %2382 = vmatprep.mubr.bf16.mxu0 %v1999_v3  ;;  %v5284_v5 = vmul.f32 0.5, %v6304_v50  ;;  %v3420_v24 = vpop.eup %3419  ;;  %v1527_v23 = vmul.f32 0.7978846, %v1399_v36  ;;  %v1531_v43 = vmul.f32 0.7978846, %v1403_v54  ;;  %v1401_v51 = vadd.f32 %v6309_v46, %v6308_v30 }
 0x233   :  { %6306 = vst [vmem:[#allocation89_spill] sm:$0xff] %v5277_v39  ;;  %6307 = vst [vmem:[#allocation90_spill] sm:$0xff] %v5280_v33  ;;  %v2001_v61 = vpack.c.bf16 %v1909_v41, %v1905_v42  ;;  %v3422_v37 = vpop.eup %3421  ;;  %v1774_v3 = vadd.f32 1.0, %v3420_v24  ;;  %v1175_v4 = vmul.f32 %v1047_v59, %v5253_v48  ;;  %v5290_v39 = vmul.f32 0.5, %v4880_v44  ;;  %v6310_v41 = vld [vmem:[#allocation59_spill] sm:$0xff] }
 0x234   :  { %v1405_v29 = vadd.f32 %v4925_v38, %v4884_v60  ;;  %v3424_v33 = vpop.eup %3423  ;;  %v1778_v50 = vadd.f32 1.0, %v3422_v37  ;;  %3427 = vtanh.f32 %v1527_v23  ;;  %v1529_v42 = vmul.f32 0.7978846, %v1401_v51  ;;  %v6311_v37 = vld [vmem:[#allocation68_spill] sm:$0xff] }
 0x235   :  { %2543 = vmatprep.mubr.bf16.mxu1 %v2001_v61  ;;  %v5296_v36 = vadd.f32 %v6310_v41, %v3814_v25  ;;  %v3426_v54 = vpop.eup %3425  ;;  %v1902_v24 = vmul.f32 %v1774_v3, %v5212_v17  ;;  %v1776_v46 = vadd.f32 1.0, %v3424_v33  ;;  %v1177_v59 = vmul.f32 %v1049_v40, %v5270_v56 }
 0x236   :  { %3429 = vtanh.f32 %v1531_v43  ;;  %v1906_v44 = vmul.f32 %v1778_v50, %v5218_v53  ;;  %v1780_v32 = vadd.f32 1.0, %v3426_v54  ;;  %v1533_v38 = vmul.f32 0.7978846, %v1405_v29  ;;  %v6313_v43 = vld [vmem:[#allocation25_spill] sm:$0xff]  ;;  %v6314_v29 = vld [vmem:[#allocation63_spill] sm:$0xff] }
 0x237   :  { %3431 = vtanh.f32 %v1529_v42  ;;  %v889_v61 = vmul.f32 0.5, %v6308_v30  ;;  %v893_v51 = vmul.f32 0.5, %v4884_v60  ;;  %v1050_v23 = vmul.f32 0.044715, %v5296_v36 }
 0x238   :  { %v5306_v41 = vadd.f32 %v6311_v37, %v3816_v26  ;;  %v1998_v17 = vpack.c.bf16 %v1906_v44, %v1902_v24  ;;  %v1904_v33 = vmul.f32 %v1776_v46, %v880_v63  ;;  %v1908_v3 = vmul.f32 %v1780_v32, %v884_v19  ;;  %v6316_v19 = vld [vmem:[#allocation28_spill] sm:$0xff]  ;;  %v6317_v32 = vld [vmem:[#allocation73_spill] sm:$0xff] }
 0x239   :  { %3433 = vtanh.f32 %v1533_v38  ;;  %v5309_v40 = vmul.f32 %v1175_v4, %v5253_v48  ;;  %v1398_v30 = vadd.f32 %v6314_v29, %v6313_v43  ;;  %v1402_v60 = vadd.f32 %v4916_v57, %v4832_v16 }
 0x23a   :  { %v1052_v53 = vmul.f32 0.044715, %v5306_v41  ;;  %2383 = vmatmul.mubr.bf16.gmra.mrb[96].mxu0 %v1998_v17  ;;  %v2000_v50 = vpack.c.bf16 %v1908_v3, %v1904_v33  ;;  %v5317_v42 = vmul.f32 %v1177_v59, %v5270_v56  ;;  %v5320_v63 = vmul.f32 0.5, %v6313_v43  ;;  %v6318_v59 = vld [vmem:[#allocation44_spill] sm:$0xff]  ;;  %v6319_v17 = vld [vmem:[#allocation55_spill] sm:$0xff]  ;;  %v6321_v43 = vld [vmem:[#allocation45_spill] sm:$0xff] }
 0x23b   :  { %6312 = vst [vmem:[#allocation91_spill] sm:$0xff] %v5309_v40  ;;  %v1400_v4 = vadd.f32 %v6317_v32, %v6316_v19  ;;  %v1178_v54 = vmul.f32 %v1050_v23, %v5296_v36  ;;  %v5326_v24 = vmul.f32 0.5, %v4832_v16  ;;  %v1526_v46 = vmul.f32 0.7978846, %v1398_v30  ;;  %v6320_v16 = vld [vmem:[#allocation66_spill] sm:$0xff] }
 0x23c   :  { %6315 = vst [vmem:[#allocation92_spill] sm:$0xff] %v5317_v42  ;;  %v1530_v44 = vmul.f32 0.7978846, %v1402_v60  ;;  %2544 = vmatmul.mubr.bf16.gmra.mrb[96].mxu1 %v2000_v50  ;;  %v1404_v57 = vadd.f32 %v4919_v62, %v4846_v2  ;;  %v5332_v37 = vadd.f32 %v6318_v59, %v3818_v0  ;;  %v5336_v33 = vadd.f32 %v6319_v17, %v3820_v27 }
 0x23d   :  { %v1528_v38 = vmul.f32 0.7978846, %v1400_v4  ;;  %v1180_v23 = vmul.f32 %v1052_v53, %v5306_v41  ;;  %3435 = vtanh.f32 %v1526_v46  ;;  %v5341_v3 = vadd.f32 %v6320_v16, %v3814_v25 }
 0x23e   :  { %v5345_v29 = vadd.f32 %v6321_v43, %v3816_v26  ;;  %v3428_v62 = vpop.eup %3427  ;;  %3437 = vtanh.f32 %v1530_v44  ;;  %v1532_v30 = vmul.f32 0.7978846, %v1404_v57  ;;  %v1051_v60 = vmul.f32 0.044715, %v5332_v37 }
 0x23f   :  { %v1053_v50 = vmul.f32 0.044715, %v5336_v33  ;;  %v1783_v4 = vadd.f32 1.0, %v3428_v62  ;;  %3439 = vtanh.f32 %v1528_v38  ;;  %v1054_v53 = vmul.f32 0.044715, %v5341_v3 }
 0x240   :  { %v3430_v32 = vpop.eup %3429  ;;  %v1056_v46 = vmul.f32 0.044715, %v5345_v29  ;;  %3441 = vtanh.f32 %v1532_v30  ;;  %v1179_v16 = vmul.f32 %v1051_v60, %v5332_v37  ;;  %v888_v28 = vmul.f32 0.5, %v6316_v19  ;;  %v6322_v30 = vld [vmem:[#allocation58_spill] sm:$0xff] }
 0x241   :  { %v3432_v59 = vpop.eup %3431  ;;  %v1787_v17 = vadd.f32 1.0, %v3430_v32  ;;  %v1181_v43 = vmul.f32 %v1053_v50, %v5336_v33  ;;  %v1911_v44 = vmul.f32 %v1783_v4, %v5284_v5  ;;  %v892_v42 = vmul.f32 0.5, %v4846_v2 }
 0x242   :  { %v1785_v57 = vadd.f32 1.0, %v3432_v59  ;;  %v1182_v56 = vmul.f32 %v1054_v53, %v5341_v3  ;;  %v1184_v40 = vmul.f32 %v1056_v46, %v5345_v29  ;;  %v5361_v32 = vadd.f32 %v6322_v30, %v3818_v0  ;;  %v6323_v53 = vld [vmem:[#allocation67_spill] sm:$0xff] }
 0x243   :  { %v3434_v62 = vpop.eup %3433  ;;  %v1915_v38 = vmul.f32 %v1787_v17, %v5290_v39  ;;  %v5364_v50 = vmul.f32 %v1178_v54, %v5296_v36  ;;  %v5367_v5 = vmul.f32 %v1180_v23, %v5306_v41  ;;  %v5370_v2 = vmul.f32 %v1179_v16, %v5332_v37 }
 0x244   :  { %v1789_v60 = vadd.f32 1.0, %v3434_v62  ;;  %v5373_v39 = vmul.f32 %v1181_v43, %v5336_v33  ;;  %v1055_v4 = vmul.f32 0.044715, %v5361_v32  ;;  %v5378_v46 = vadd.f32 %v6323_v53, %v3820_v27 }
 0x245   :  { %v2003_v19 = vpack.c.bf16 %v1915_v38, %v1911_v44  ;;  %v1913_v59 = vmul.f32 %v1785_v57, %v889_v61  ;;  %v1407_v54 = vadd.f32 %v4979_v31, %v4913_v8  ;;  %v1411_v23 = vadd.f32 %v5044_v18, %v5006_v6 }
 0x246   :  { %v1917_v17 = vmul.f32 %v1789_v60, %v893_v51  ;;  %v5385_v16 = vmul.f32 %v1182_v56, %v5341_v3  ;;  %v5388_v43 = vmul.f32 %v1184_v40, %v5345_v29  ;;  %v1057_v44 = vmul.f32 0.044715, %v5378_v46 }
 0x247   :  { %2390 = vmatprep.mubr.bf16.mxu0 %v2003_v19  ;;  %v5392_v62 = vmul.f32 0.5, %v4913_v8  ;;  %v3436_v61 = vpop.eup %3435  ;;  %v1535_v57 = vmul.f32 0.7978846, %v1407_v54  ;;  %v1539_v38 = vmul.f32 0.7978846, %v1411_v23  ;;  %v1409_v31 = vadd.f32 %v4987_v15, %v4930_v45 }
 0x248   :  { %6324 = vst [vmem:[#allocation52_spill] sm:$0xff] %v5388_v43  ;;  %v2005_v51 = vpack.c.bf16 %v1917_v17, %v1913_v59  ;;  %v3438_v18 = vpop.eup %3437  ;;  %v1782_v30 = vadd.f32 1.0, %v3436_v61  ;;  %v1183_v56 = vmul.f32 %v1055_v4, %v5361_v32  ;;  %v5398_v60 = vmul.f32 0.5, %v5006_v6  ;;  %v6325_v59 = vld [vmem:[#allocation22_spill] sm:$0xff] }
 0x249   :  { %v1413_v40 = vadd.f32 %v5047_v20, %v5010_v14  ;;  %v3440_v19 = vpop.eup %3439  ;;  %v1786_v8 = vadd.f32 1.0, %v3438_v18  ;;  %3443 = vtanh.f32 %v1535_v57  ;;  %v1537_v53 = vmul.f32 0.7978846, %v1409_v31  ;;  %v6326_v18 = vld [vmem:[#allocation80_spill] sm:$0xff] }
 0x24a   :  { %2551 = vmatprep.mubr.bf16.mxu1 %v2005_v51  ;;  %v5404_v17 = vadd.f32 %v6325_v59, %v3814_v25  ;;  %v3442_v15 = vpop.eup %3441  ;;  %v1910_v54 = vmul.f32 %v1782_v30, %v5320_v63  ;;  %v1784_v23 = vadd.f32 1.0, %v3440_v19  ;;  %v1185_v4 = vmul.f32 %v1057_v44, %v5378_v46 }
 0x24b   :  { %3445 = vtanh.f32 %v1539_v38  ;;  %v1914_v6 = vmul.f32 %v1786_v8, %v5326_v24  ;;  %v1788_v61 = vadd.f32 1.0, %v3442_v15  ;;  %v1541_v20 = vmul.f32 0.7978846, %v1413_v40 }
 0x24c   :  { %3447 = vtanh.f32 %v1537_v53  ;;  %v897_v51 = vmul.f32 0.5, %v4930_v45  ;;  %v901_v57 = vmul.f32 0.5, %v5010_v14  ;;  %v1058_v31 = vmul.f32 0.044715, %v5404_v17 }
 0x24d   :  { %v5414_v59 = vadd.f32 %v6326_v18, %v3816_v26  ;;  %v2002_v63 = vpack.c.bf16 %v1914_v6, %v1910_v54  ;;  %v1912_v30 = vmul.f32 %v1784_v23, %v888_v28  ;;  %v1916_v19 = vmul.f32 %v1788_v61, %v892_v42  ;;  %v6328_v42 = vld [vmem:[#allocation72_spill] sm:$0xff]  ;;  %v6329_v23 = vld [vmem:[#allocation19_spill] sm:$0xff] }
 0x24e   :  { %3449 = vtanh.f32 %v1541_v20  ;;  %v5417_v44 = vmul.f32 %v1183_v56, %v5361_v32  ;;  %v1406_v45 = vadd.f32 %v4939_v49, %v4893_v13  ;;  %v1410_v14 = vadd.f32 %v5038_v10, %v4962_v12 }
 0x24f   :  { %6327 = vst [vmem:[#allocation69_spill] sm:$0xff] %v5414_v59  ;;  %v1060_v24 = vmul.f32 0.044715, %v5414_v59  ;;  %2391 = vmatmul.mubr.bf16.gmra.mrb[100].mxu0 %v2002_v63  ;;  %v2004_v38 = vpack.c.bf16 %v1916_v19, %v1912_v30  ;;  %v5425_v40 = vmul.f32 %v1185_v4, %v5378_v46  ;;  %v5428_v28 = vmul.f32 0.5, %v4893_v13  ;;  %v6330_v13 = vld [vmem:[#allocation18_spill] sm:$0xff] }
 0x250   :  { %v1408_v56 = vadd.f32 %v6328_v42, %v4897_v7  ;;  %v1186_v8 = vmul.f32 %v1058_v31, %v5404_v17  ;;  %v5434_v53 = vmul.f32 0.5, %v4962_v12  ;;  %v1534_v49 = vmul.f32 0.7978846, %v1406_v45  ;;  %v6331_v12 = vld [vmem:[#allocation82_spill] sm:$0xff]  ;;  %v6333_v31 = vld [vmem:[#allocation83_spill] sm:$0xff] }
 0x251   :  { %v1538_v15 = vmul.f32 0.7978846, %v1410_v14  ;;  %2552 = vmatmul.mubr.bf16.gmra.mrb[100].mxu1 %v2004_v38  ;;  %v1412_v10 = vadd.f32 %v5041_v58, %v4976_v21  ;;  %v5440_v4 = vadd.f32 %v6329_v23, %v3818_v0  ;;  %v5444_v6 = vadd.f32 %v6330_v13, %v3820_v27 }
 0x252   :  { %v1536_v54 = vmul.f32 0.7978846, %v1408_v56  ;;  %v1188_v61 = vmul.f32 %v1060_v24, %v5414_v59  ;;  %3451 = vtanh.f32 %v1534_v49  ;;  %v5449_v20 = vadd.f32 %v6331_v12, %v3814_v25 }
 0x253   :  { %v5453_v18 = vadd.f32 %v6333_v31, %v3816_v26  ;;  %v3444_v58 = vpop.eup %3443  ;;  %3453 = vtanh.f32 %v1538_v15  ;;  %v1540_v63 = vmul.f32 0.7978846, %v1412_v10  ;;  %v1059_v30 = vmul.f32 0.044715, %v5440_v4 }
 0x254   :  { %6332 = vst [vmem:[#allocation95_spill] sm:$0xff] %v5449_v20  ;;  %v1061_v19 = vmul.f32 0.044715, %v5444_v6  ;;  %v1791_v14 = vadd.f32 1.0, %v3444_v58  ;;  %3455 = vtanh.f32 %v1536_v54  ;;  %v1062_v24 = vmul.f32 0.044715, %v5449_v20 }
 0x255   :  { %6334 = vst [vmem:[#allocation57_spill] sm:$0xff] %v5453_v18  ;;  %v3446_v45 = vpop.eup %3445  ;;  %v1064_v38 = vmul.f32 0.044715, %v5453_v18  ;;  %3457 = vtanh.f32 %v1540_v63  ;;  %v1187_v49 = vmul.f32 %v1059_v30, %v5440_v4  ;;  %v896_v13 = vmul.f32 0.5, %v4897_v7  ;;  %v6335_v63 = vld [vmem:[#allocation60_spill] sm:$0xff] }
 0x256   :  { %v3448_v42 = vpop.eup %3447  ;;  %v1795_v56 = vadd.f32 1.0, %v3446_v45  ;;  %v1189_v23 = vmul.f32 %v1061_v19, %v5444_v6  ;;  %v1919_v15 = vmul.f32 %v1791_v14, %v5392_v62  ;;  %v900_v12 = vmul.f32 0.5, %v4976_v21 }
 0x257   :  { %v1793_v10 = vadd.f32 1.0, %v3448_v42  ;;  %v1190_v58 = vmul.f32 %v1062_v24, %v5449_v20  ;;  %v1192_v43 = vmul.f32 %v1064_v38, %v5453_v18  ;;  %v5469_v45 = vadd.f32 %v6335_v63, %v3818_v0  ;;  %v6337_v24 = vld [vmem:[#allocation70_spill] sm:$0xff] }
 0x258   :  { %v3450_v31 = vpop.eup %3449  ;;  %v1923_v54 = vmul.f32 %v1795_v56, %v5398_v60  ;;  %v5472_v19 = vmul.f32 %v1186_v8, %v5404_v17  ;;  %v5475_v62 = vmul.f32 %v1188_v61, %v5414_v59  ;;  %v5478_v7 = vmul.f32 %v1187_v49, %v5440_v4  ;;  %v6339_v8 = vld [vmem:[#allocation84_spill] sm:$0xff] }
 0x259   :  { %v1797_v30 = vadd.f32 1.0, %v3450_v31  ;;  %v5481_v60 = vmul.f32 %v1189_v23, %v5444_v6  ;;  %v1063_v14 = vmul.f32 0.044715, %v5469_v45  ;;  %v5486_v38 = vadd.f32 %v6337_v24, %v3820_v27  ;;  %v6340_v31 = vld [vmem:[#allocation42_spill] sm:$0xff]  ;;  %v6343_v24 = vld [vmem:[#allocation35_spill] sm:$0xff] }
 0x25a   :  { %6336 = vst [vmem:[#allocation56_spill] sm:$0xff] %v5475_v62  ;;  %v2007_v21 = vpack.c.bf16 %v1923_v54, %v1919_v15  ;;  %v1921_v42 = vmul.f32 %v1793_v10, %v897_v51  ;;  %v1415_v63 = vadd.f32 %v6340_v31, %v6339_v8  ;;  %v1419_v61 = vadd.f32 %v5154_v11, %v5116_v35  ;;  %v6344_v31 = vld [vmem:[#allocation26_spill] sm:$0xff] }
 0x25b   :  { %6338 = vst [vmem:[#allocation97_spill] sm:$0xff] %v5486_v38  ;;  %v1925_v56 = vmul.f32 %v1797_v30, %v901_v57  ;;  %v5493_v49 = vmul.f32 %v1190_v58, %v5449_v20  ;;  %v5496_v23 = vmul.f32 %v1192_v43, %v5453_v18  ;;  %v1065_v15 = vmul.f32 0.044715, %v5486_v38  ;;  %v6345_v43 = vld [vmem:[#allocation20_spill] sm:$0xff] }
 0x25c   :  { %2398 = vmatprep.mubr.bf16.mxu0 %v2007_v21  ;;  %v5500_v54 = vmul.f32 0.5, %v6339_v8  ;;  %v3452_v51 = vpop.eup %3451  ;;  %v1543_v10 = vmul.f32 0.7978846, %v1415_v63  ;;  %v1547_v30 = vmul.f32 0.7978846, %v1419_v61  ;;  %v1417_v62 = vadd.f32 %v6344_v31, %v6343_v24 }
 0x25d   :  { %6341 = vst [vmem:[#allocation53_spill] sm:$0xff] %v5493_v49  ;;  %6342 = vst [vmem:[#allocation38_spill] sm:$0xff] %v5496_v23  ;;  %v2009_v57 = vpack.c.bf16 %v1925_v56, %v1921_v42  ;;  %v3454_v11 = vpop.eup %3453  ;;  %v1790_v21 = vadd.f32 1.0, %v3452_v51  ;;  %v1191_v58 = vmul.f32 %v1063_v14, %v5469_v45  ;;  %v5506_v49 = vmul.f32 0.5, %v5116_v35  ;;  %v6346_v23 = vld [vmem:[#allocation34_spill] sm:$0xff]  ;;  %v6347_v56 = vld [vmem:[#allocation76_spill] sm:$0xff] }
 0x25e   :  { %v1421_v18 = vadd.f32 %v6346_v23, %v6345_v43  ;;  %v3456_v20 = vpop.eup %3455  ;;  %v1794_v8 = vadd.f32 1.0, %v3454_v11  ;;  %3459 = vtanh.f32 %v1543_v10  ;;  %v1545_v42 = vmul.f32 0.7978846, %v1417_v62  ;;  %v6348_v10 = vld [vmem:[#allocation61_spill] sm:$0xff] }
 0x25f   :  { %2559 = vmatprep.mubr.bf16.mxu1 %v2009_v57  ;;  %v5512_v63 = vadd.f32 %v6347_v56, %v3814_v25  ;;  %v3458_v61 = vpop.eup %3457  ;;  %v1918_v51 = vmul.f32 %v1790_v21, %v5428_v28  ;;  %v1792_v31 = vadd.f32 1.0, %v3456_v20  ;;  %v1193_v14 = vmul.f32 %v1065_v15, %v5486_v38  ;;  %v6350_v11 = vld [vmem:[#allocation17_spill] sm:$0xff] }
 0x260   :  { %3461 = vtanh.f32 %v1547_v30  ;;  %v1922_v35 = vmul.f32 %v1794_v8, %v5434_v53  ;;  %v1796_v59 = vadd.f32 1.0, %v3458_v61  ;;  %v1549_v23 = vmul.f32 0.7978846, %v1421_v18  ;;  %v6352_v8 = vld [vmem:[#allocation88_spill] sm:$0xff] }
 0x261   :  { %3463 = vtanh.f32 %v1545_v42  ;;  %v5518_v57 = vmul.f32 0.5, %v6343_v24  ;;  %v5521_v62 = vmul.f32 0.5, %v6345_v43  ;;  %v1066_v25 = vmul.f32 0.044715, %v5512_v63  ;;  %v6349_v24 = vld [vmem:[#allocation77_spill] sm:$0xff]  ;;  %v6351_v43 = vld [vmem:[#allocation23_spill] sm:$0xff] }
 0x262   :  { %v5526_v28 = vadd.f32 %v6348_v10, %v3816_v26  ;;  %v2006_v20 = vpack.c.bf16 %v1922_v35, %v1918_v51  ;;  %v1920_v15 = vmul.f32 %v1792_v31, %v896_v13  ;;  %v1924_v30 = vmul.f32 %v1796_v59, %v900_v12  ;;  %v6354_v59 = vld [vmem:[#allocation24_spill] sm:$0xff]  ;;  %v6355_v12 = vld [vmem:[#allocation85_spill] sm:$0xff] }
 0x263   :  { %3465 = vtanh.f32 %v1549_v23  ;;  %v5529_v53 = vmul.f32 %v1191_v58, %v5469_v45  ;;  %v1414_v21 = vadd.f32 %v6350_v11, %v6349_v24  ;;  %v1418_v42 = vadd.f32 %v6352_v8, %v6351_v43  ;;  %v5544_v61 = vpop.f32.mrb[64].mxu0  ;;  %v6361_v8 = vld [vmem:[#allocation74_spill] sm:$0xff] }
 0x264   :  { %v1068_v18 = vmul.f32 0.044715, %v5526_v28  ;;  %2399 = vmatmul.mubr.bf16.gmra.mrb[104].mxu0 %v2006_v20  ;;  %v2008_v56 = vpack.c.bf16 %v1924_v30, %v1920_v15  ;;  %v5537_v26 = vmul.f32 %v1193_v14, %v5486_v38  ;;  %v5540_v13 = vmul.f32 0.5, %v6349_v24  ;;  %6356 = vst [vmem:[#allocation47_spill] sm:$0xff] %v5544_v61  ;;  %v5550_v10 = vpop.f32.mrb[65].mxu0  ;;  %v6358_v14 = vld [vmem:[#allocation30_spill] sm:$0xff] }
 0x265   :  { %v1416_v58 = vadd.f32 %v6355_v12, %v6354_v59  ;;  %v1194_v51 = vmul.f32 %v1066_v25, %v5512_v63  ;;  %v5548_v31 = vmul.f32 0.5, %v6351_v43  ;;  %v1542_v35 = vmul.f32 0.7978846, %v1414_v21  ;;  %6357 = vst [vmem:[#allocation49_spill] sm:$0xff] %v5550_v10  ;;  %v6359_v20 = vld [vmem:[#allocation31_spill] sm:$0xff]  ;;  %v5564_v43 = vpop.f32.mrb[66].mxu0 }
 0x266   :  { %6353 = vst [vmem:[#allocation48_spill] sm:$0xff] %v5537_v26  ;;  %v1546_v23 = vmul.f32 0.7978846, %v1418_v42  ;;  %2560 = vmatmul.mubr.bf16.gmra.mrb[104].mxu1 %v2008_v56  ;;  %v1420_v15 = vadd.f32 %v6359_v20, %v6358_v14  ;;  %v6360_v24 = vld [vmem:[#allocation71_spill] sm:$0xff]  ;;  %v5560_v12 = vadd.f32 %v6361_v8, %v3820_v27  ;;  %v5562_v25 = vpop.f32.mrb[64].mxu1  ;;  %6363 = vst [vmem:[#allocation41_spill] sm:$0xff] %v5564_v43 }
 0x267   :  { %v1544_v30 = vmul.f32 0.7978846, %v1416_v58  ;;  %v5556_v11 = vadd.f32 %v6360_v24, %v3818_v0  ;;  %6362 = vst [vmem:[#allocation78_spill] sm:$0xff] %v5562_v25  ;;  %v1196_v21 = vmul.f32 %v1068_v18, %v5526_v28  ;;  %3467 = vtanh.f32 %v1542_v35  ;;  %v5573_v58 = vpop.f32.mrb[65].mxu1  ;;  %v5575_v0 = vpop.f32.mrb[67].mxu0  ;;  %v6366_v35 = vld [vmem:[#allocation21_spill] sm:$0xff] }
 0x268   :  { %v5568_v42 = vmul.f32 0.5, %v6354_v59  ;;  %v5571_v56 = vmul.f32 0.5, %v6358_v14  ;;  %6364 = vst [vmem:[#allocation62_spill] sm:$0xff] %v5573_v58  ;;  %6365 = vst [vmem:[#allocation65_spill] sm:$0xff] %v5575_v0  ;;  %v3460_v20 = vpop.eup %3459  ;;  %3469 = vtanh.f32 %v1546_v23  ;;  %v1548_v27 = vmul.f32 0.7978846, %v1420_v15 }
 0x269   :  { %v1067_v24 = vmul.f32 0.044715, %v5556_v11  ;;  %v1069_v8 = vmul.f32 0.044715, %v5560_v12  ;;  %v1799_v18 = vadd.f32 1.0, %v3460_v20  ;;  %3471 = vtanh.f32 %v1544_v30  ;;  %v6367_v59 = vld [vmem:[#allocation27_spill] sm:$0xff] }
 0x26a   :  { %v3462_v43 = vpop.eup %3461  ;;  %v1423_v25 = vadd.f32 %v6367_v59, %v6366_v35  ;;  %v1427_v14 = vadd.f32 %v5262_v1, %v5224_v34  ;;  %v5583_v10 = vpop.f32.mrb[66].mxu1  ;;  %v5586_v23 = vmul.f32 %v1194_v51, %v5512_v63  ;;  %3473 = vtanh.f32 %v1548_v27 }
 0x26b   :  { %6368 = vst [vmem:[#allocation96_spill] sm:$0xff] %v5583_v10  ;;  %v3464_v58 = vpop.eup %3463  ;;  %v1803_v0 = vadd.f32 1.0, %v3462_v43  ;;  %v1195_v15 = vmul.f32 %v1067_v24, %v5556_v11  ;;  %v5589_v61 = vpop.f32.mrb[67].mxu1  ;;  %v1197_v30 = vmul.f32 %v1069_v8, %v5560_v12  ;;  %v1927_v1 = vmul.f32 %v1799_v18, %v5500_v54  ;;  %v6370_v8 = vld [vmem:[#allocation29_spill] sm:$0xff] }
 0x26c   :  { %6369 = vst [vmem:[#allocation43_spill] sm:$0xff] %v5589_v61  ;;  %v1801_v20 = vadd.f32 1.0, %v3464_v58  ;;  %v1551_v26 = vmul.f32 0.7978846, %v1423_v25  ;;  %v1555_v59 = vmul.f32 0.7978846, %v1427_v14  ;;  %v5595_v43 = vmul.f32 %v1196_v21, %v5526_v28 }
 0x26d   :  { %v3466_v38 = vpop.eup %3465  ;;  %v1931_v10 = vmul.f32 %v1803_v0, %v5506_v49  ;;  %v5598_v51 = vmul.f32 0.5, %v6366_v35  ;;  %v5601_v24 = vmul.f32 %v1195_v15, %v5556_v11  ;;  %v5604_v58 = vmul.f32 0.5, %v5224_v34  ;;  %v6371_v54 = vld [vmem:[#allocation93_spill] sm:$0xff]  ;;  %v6373_v14 = vld [vmem:[#allocation36_spill] sm:$0xff] }
 0x26e   :  { %v1805_v27 = vadd.f32 1.0, %v3466_v38  ;;  %3475 = vtanh.f32 %v1551_v26  ;;  %v1425_v18 = vadd.f32 %v6371_v54, %v6370_v8  ;;  %v1429_v49 = vadd.f32 %v5265_v22, %v5228_v47  ;;  %v6372_v35 = vld [vmem:[#allocation33_spill] sm:$0xff] }
 0x26f   :  { %v2011_v25 = vpack.c.bf16 %v1931_v10, %v1927_v1  ;;  %3477 = vtanh.f32 %v1555_v59  ;;  %v1929_v21 = vmul.f32 %v1801_v20, %v5518_v57  ;;  %v5613_v38 = vmul.f32 %v1197_v30, %v5560_v12  ;;  %v6374_v20 = vld [vmem:[#allocation37_spill] sm:$0xff]  ;;  %v6375_v30 = vld [vmem:[#allocation87_spill] sm:$0xff] }
 0x270   :  { %v1933_v0 = vmul.f32 %v1805_v27, %v5521_v62  ;;  %v1422_v34 = vadd.f32 %v6373_v14, %v6372_v35  ;;  %v5618_v26 = vmul.f32 0.5, %v6370_v8  ;;  %v1553_v10 = vmul.f32 0.7978846, %v1425_v18  ;;  %v6376_v8 = vld [vmem:[#allocation40_spill] sm:$0xff] }
 0x271   :  { %2406 = vmatprep.mubr.bf16.mxu0 %v2011_v25  ;;  %v1557_v15 = vmul.f32 0.7978846, %v1429_v49  ;;  %v1426_v59 = vadd.f32 %v5256_v9, %v5188_v52  ;;  %v3468_v22 = vpop.eup %3467  ;;  %v5623_v57 = vmul.f32 0.5, %v5228_v47  ;;  %v1424_v27 = vadd.f32 %v6375_v30, %v6374_v20 }
 0x272   :  { %v2013_v1 = vpack.c.bf16 %v1933_v0, %v1929_v21  ;;  %v1550_v62 = vmul.f32 0.7978846, %v1422_v34  ;;  %v3470_v54 = vpop.eup %3469  ;;  %v1798_v14 = vadd.f32 1.0, %v3468_v22  ;;  %3479 = vtanh.f32 %v1553_v10 }
 0x273   :  { %v1554_v25 = vmul.f32 0.7978846, %v1426_v59  ;;  %v1428_v18 = vadd.f32 %v6376_v8, %v5198_v55  ;;  %v3472_v49 = vpop.eup %3471  ;;  %v1802_v61 = vadd.f32 1.0, %v3470_v54  ;;  %3481 = vtanh.f32 %v1557_v15 }
 0x274   :  { %2567 = vmatprep.mubr.bf16.mxu1 %v2013_v1  ;;  %v5630_v9 = vmul.f32 0.5, %v6372_v35  ;;  %v1552_v47 = vmul.f32 0.7978846, %v1424_v27  ;;  %v3474_v21 = vpop.eup %3473  ;;  %v1800_v0 = vadd.f32 1.0, %v3472_v49  ;;  %v5633_v34 = vmul.f32 0.5, %v5188_v52  ;;  %v6377_v35 = vld [vmem:[#allocation91_spill] sm:$0xff] }
 0x275   :  { %3483 = vtanh.f32 %v1550_v62  ;;  %v1556_v22 = vmul.f32 0.7978846, %v1428_v18  ;;  %v1926_v10 = vmul.f32 %v1798_v14, %v5540_v13  ;;  %v1930_v59 = vmul.f32 %v1802_v61, %v5548_v31  ;;  %v6378_v49 = vld [vmem:[#allocation86_spill] sm:$0xff] }
 0x276   :  { %v1804_v30 = vadd.f32 1.0, %v3474_v21  ;;  %3485 = vtanh.f32 %v1554_v25  ;;  %v5638_v1 = vmul.f32 0.5, %v6374_v20  ;;  %v1431_v15 = vadd.f32 %v6377_v35, %v5253_v48 }
 0x277   :  { %3487 = vtanh.f32 %v1552_v47  ;;  %v1435_v27 = vadd.f32 %v5370_v2, %v5332_v37  ;;  %v2010_v54 = vpack.c.bf16 %v1930_v59, %v1926_v10  ;;  %v1928_v62 = vmul.f32 %v1800_v0, %v5568_v42  ;;  %v6379_v47 = vld [vmem:[#allocation92_spill] sm:$0xff] }
 0x278   :  { %v3476_v52 = vpop.eup %3475  ;;  %v1932_v13 = vmul.f32 %v1804_v30, %v5571_v56  ;;  %3489 = vtanh.f32 %v1556_v22  ;;  %v5647_v14 = vmul.f32 0.5, %v5198_v55  ;;  %v1559_v20 = vmul.f32 0.7978846, %v1431_v15  ;;  %v5653_v42 = vpop.f32.mrb[68].mxu0  ;;  %v6381_v15 = vld [vmem:[#allocation89_spill] sm:$0xff] }
 0x279   :  { %v3478_v61 = vpop.eup %3477  ;;  %v1807_v31 = vadd.f32 1.0, %v3476_v52  ;;  %v1563_v25 = vmul.f32 0.7978846, %v1435_v27  ;;  %2407 = vmatmul.mubr.bf16.gmra.mrb[108].mxu0 %v2010_v54  ;;  %v1433_v2 = vadd.f32 %v6379_v47, %v6378_v49  ;;  %v1437_v21 = vadd.f32 %v5373_v39, %v5336_v33  ;;  %v5662_v22 = vpop.f32.mrb[69].mxu0 }
 0x27a   :  { %v2012_v8 = vpack.c.bf16 %v1932_v13, %v1928_v62  ;;  %v1811_v18 = vadd.f32 1.0, %v3478_v61  ;;  %v5657_v0 = vmul.f32 0.5, %v5253_v48  ;;  %v5660_v55 = vmul.f32 0.5, %v5332_v37  ;;  %v5665_v39 = vpop.f32.mrb[70].mxu0  ;;  %v6380_v37 = vld [vmem:[#allocation50_spill] sm:$0xff] }
 0x27b   :  { %v1935_v56 = vmul.f32 %v1807_v31, %v5598_v51  ;;  %3491 = vtanh.f32 %v1559_v20  ;;  %v1561_v59 = vmul.f32 0.7978846, %v1433_v2  ;;  %v1565_v30 = vmul.f32 0.7978846, %v1437_v21  ;;  %v5677_v54 = vpop.f32.mrb[68].mxu1  ;;  %v6382_v31 = vld [vmem:[#allocation94_spill] sm:$0xff] }
 0x27c   :  { %2568 = vmatmul.mubr.bf16.gmra.mrb[108].mxu1 %v2012_v8  ;;  %v1939_v10 = vmul.f32 %v1811_v18, %v5604_v58  ;;  %3493 = vtanh.f32 %v1563_v25  ;;  %v3480_v35 = vpop.eup %3479  ;;  %v5668_v51 = vmul.f32 0.5, %v6378_v49  ;;  %v5671_v48 = vmul.f32 0.5, %v5336_v33  ;;  %v5679_v58 = vpop.f32.mrb[71].mxu0  ;;  %v6383_v20 = vld [vmem:[#allocation90_spill] sm:$0xff] }
 0x27d   :  { %v1430_v27 = vadd.f32 %v6381_v15, %v6380_v37  ;;  %v1434_v52 = vadd.f32 %v5364_v50, %v5296_v36  ;;  %v3482_v62 = vpop.eup %3481  ;;  %v1809_v61 = vadd.f32 1.0, %v3480_v35  ;;  %3495 = vtanh.f32 %v1561_v59  ;;  %v5683_v8 = vpop.f32.mrb[69].mxu1 }
 0x27e   :  { %v2015_v13 = vpack.c.bf16 %v1939_v10, %v1935_v56  ;;  %v1432_v25 = vadd.f32 %v6383_v20, %v6382_v31  ;;  %v1813_v18 = vadd.f32 1.0, %v3482_v62  ;;  %3497 = vtanh.f32 %v1565_v30  ;;  %v5685_v2 = vpop.f32.mrb[70].mxu1 }
 0x27f   :  { %v3484_v33 = vpop.eup %3483  ;;  %v1558_v49 = vmul.f32 0.7978846, %v1430_v27  ;;  %v1562_v47 = vmul.f32 0.7978846, %v1434_v52  ;;  %6384 = vst [vmem:[#allocation54_spill] sm:$0xff] %v5685_v2  ;;  %v5688_v15 = vmul.f32 0.5, %v6380_v37  ;;  %v1436_v56 = vadd.f32 %v5367_v5, %v5306_v41 }
 0x280   :  { %v3486_v50 = vpop.eup %3485  ;;  %2414 = vmatprep.mubr.bf16.mxu0 %v2015_v13  ;;  %v1806_v21 = vadd.f32 1.0, %v3484_v33  ;;  %v1560_v10 = vmul.f32 0.7978846, %v1432_v25  ;;  %v5692_v59 = vpop.f32.mrb[71].mxu1  ;;  %v1937_v62 = vmul.f32 %v1809_v61, %v5618_v26  ;;  %v1941_v30 = vmul.f32 %v1813_v18, %v5623_v57 }
 0x281   :  { %6385 = vst [vmem:[#allocation46_spill] sm:$0xff] %v5692_v59  ;;  %v3488_v35 = vpop.eup %3487  ;;  %v1810_v27 = vadd.f32 1.0, %v3486_v50  ;;  %3499 = vtanh.f32 %v1558_v49  ;;  %v1564_v37 = vmul.f32 0.7978846, %v1436_v56  ;;  %v922_v25 = vmul.f32 0.5, %v5296_v36 }
 0x282   :  { %v3490_v52 = vpop.eup %3489  ;;  %v1934_v13 = vmul.f32 %v1806_v21, %v5630_v9  ;;  %v1808_v20 = vadd.f32 1.0, %v3488_v35  ;;  %3501 = vtanh.f32 %v1562_v47  ;;  %v2017_v33 = vpack.c.bf16 %v1941_v30, %v1937_v62 }
 0x283   :  { %v1938_v2 = vmul.f32 %v1810_v27, %v5633_v34  ;;  %v1812_v5 = vadd.f32 1.0, %v3490_v52  ;;  %3503 = vtanh.f32 %v1560_v10  ;;  %v920_v59 = vmul.f32 0.5, %v6382_v31 }
 0x284   :  { %3505 = vtanh.f32 %v1564_v37  ;;  %v1439_v26 = vadd.f32 %v5417_v44, %v5361_v32  ;;  %2575 = vmatprep.mubr.bf16.mxu1 %v2017_v33  ;;  %v1936_v9 = vmul.f32 %v1808_v20, %v5638_v1  ;;  %v1443_v34 = vadd.f32 %v5478_v7, %v5440_v4 }
 0x285   :  { %v3492_v57 = vpop.eup %3491  ;;  %v2014_v61 = vpack.c.bf16 %v1938_v2, %v1934_v13  ;;  %v1940_v18 = vmul.f32 %v1812_v5, %v5647_v14  ;;  %v924_v36 = vmul.f32 0.5, %v5306_v41  ;;  %v1441_v31 = vadd.f32 %v5425_v40, %v5378_v46 }
 0x286   :  { %v3494_v49 = vpop.eup %3493  ;;  %v1815_v47 = vadd.f32 1.0, %v3492_v57  ;;  %v1567_v50 = vmul.f32 0.7978846, %v1439_v26  ;;  %v1571_v56 = vmul.f32 0.7978846, %v1443_v34  ;;  %v1445_v1 = vadd.f32 %v5481_v60, %v5444_v6 }
 0x287   :  { %2415 = vmatmul.mubr.bf16.gmra.mrb[112].mxu0 %v2014_v61  ;;  %v2016_v44 = vpack.c.bf16 %v1940_v18, %v1936_v9  ;;  %v1819_v21 = vadd.f32 1.0, %v3494_v49  ;;  %v3496_v2 = vpop.eup %3495  ;;  %v5713_v7 = vmul.f32 0.5, %v5361_v32  ;;  %v1569_v10 = vmul.f32 0.7978846, %v1441_v31 }
 0x288   :  { %v1943_v14 = vmul.f32 %v1815_v47, %v5657_v0  ;;  %3507 = vtanh.f32 %v1567_v50  ;;  %v3498_v41 = vpop.eup %3497  ;;  %v1817_v40 = vadd.f32 1.0, %v3496_v2  ;;  %v1573_v62 = vmul.f32 0.7978846, %v1445_v1  ;;  %v6388_v47 = vld [vmem:[#allocation56_spill] sm:$0xff] }
 0x289   :  { %2576 = vmatmul.mubr.bf16.gmra.mrb[112].mxu1 %v2016_v44  ;;  %v1947_v35 = vmul.f32 %v1819_v21, %v5660_v55  ;;  %3509 = vtanh.f32 %v1571_v56  ;;  %v1821_v30 = vadd.f32 1.0, %v3498_v41  ;;  %v5717_v27 = vmul.f32 0.5, %v5440_v4 }
 0x28a   :  { %3511 = vtanh.f32 %v1569_v10  ;;  %v1438_v60 = vadd.f32 %v5385_v16, %v5341_v3  ;;  %v5722_v52 = vmul.f32 0.5, %v5378_v46  ;;  %v1442_v55 = vadd.f32 %v5472_v19, %v5404_v17  ;;  %v6386_v46 = vld [vmem:[#allocation52_spill] sm:$0xff] }
 0x28b   :  { %v3500_v0 = vpop.eup %3499  ;;  %v2019_v32 = vpack.c.bf16 %v1947_v35, %v1943_v14  ;;  %3513 = vtanh.f32 %v1573_v62  ;;  %v1945_v20 = vmul.f32 %v1817_v40, %v5668_v51  ;;  %v1949_v37 = vmul.f32 %v1821_v30, %v5671_v48  ;;  %v6387_v48 = vld [vmem:[#allocation69_spill] sm:$0xff] }
 0x28c   :  { %v3502_v13 = vpop.eup %3501  ;;  %v1814_v4 = vadd.f32 1.0, %v3500_v0  ;;  %v1566_v33 = vmul.f32 0.7978846, %v1438_v60  ;;  %v933_v16 = vmul.f32 0.5, %v5444_v6  ;;  %v1570_v57 = vmul.f32 0.7978846, %v1442_v55 }
 0x28d   :  { %v3504_v5 = vpop.eup %3503  ;;  %2422 = vmatprep.mubr.bf16.mxu0 %v2019_v32  ;;  %v1818_v26 = vadd.f32 1.0, %v3502_v13  ;;  %v1440_v61 = vadd.f32 %v6386_v46, %v5345_v29  ;;  %v2021_v18 = vpack.c.bf16 %v1949_v37, %v1945_v20  ;;  %v1444_v50 = vadd.f32 %v6388_v47, %v6387_v48  ;;  %v6389_v55 = vld [vmem:[#allocation97_spill] sm:$0xff]  ;;  %v6390_v13 = vld [vmem:[#allocation48_spill] sm:$0xff] }
 0x28e   :  { %v3506_v9 = vpop.eup %3505  ;;  %v1942_v19 = vmul.f32 %v1814_v4, %v5688_v15  ;;  %v1816_v34 = vadd.f32 1.0, %v3504_v5  ;;  %3515 = vtanh.f32 %v1566_v33  ;;  %v926_v6 = vmul.f32 0.5, %v5341_v3  ;;  %v5738_v56 = vpop.f32.mrb[72].mxu0 }
 0x28f   :  { %v1946_v51 = vmul.f32 %v1818_v26, %v922_v25  ;;  %v1820_v49 = vadd.f32 1.0, %v3506_v9  ;;  %3517 = vtanh.f32 %v1570_v57  ;;  %2583 = vmatprep.mubr.bf16.mxu1 %v2021_v18  ;;  %v5736_v44 = vmul.f32 0.5, %v5404_v17  ;;  %v5742_v14 = vpop.f32.mrb[73].mxu0 }
 0x290   :  { %v1944_v31 = vmul.f32 %v1816_v34, %v920_v59  ;;  %v1568_v21 = vmul.f32 0.7978846, %v1440_v61  ;;  %v1572_v2 = vmul.f32 0.7978846, %v1444_v50  ;;  %v1447_v25 = vadd.f32 %v5529_v53, %v5469_v45  ;;  %v5752_v59 = vpop.f32.mrb[72].mxu1  ;;  %v6391_v34 = vld [vmem:[#allocation95_spill] sm:$0xff] }
 0x291   :  { %v2018_v1 = vpack.c.bf16 %v1946_v51, %v1942_v19  ;;  %v1948_v15 = vmul.f32 %v1820_v49, %v924_v36  ;;  %v5745_v41 = vmul.f32 0.5, %v5345_v29  ;;  %v5748_v3 = vmul.f32 0.5, %v6387_v48  ;;  %v5754_v36 = vpop.f32.mrb[74].mxu0  ;;  %v5756_v30 = vpop.f32.mrb[73].mxu1  ;;  %v6392_v51 = vld [vmem:[#allocation53_spill] sm:$0xff] }
 0x292   :  { %v3508_v10 = vpop.eup %3507  ;;  %3519 = vtanh.f32 %v1568_v21  ;;  %v1451_v17 = vadd.f32 %v5601_v24, %v5556_v11  ;;  %v1575_v62 = vmul.f32 0.7978846, %v1447_v25  ;;  %v5758_v29 = vpop.f32.mrb[75].mxu0  ;;  %v1449_v24 = vadd.f32 %v6390_v13, %v6389_v55  ;;  %v6393_v25 = vld [vmem:[#allocation57_spill] sm:$0xff] }
 0x293   :  { %v3510_v35 = vpop.eup %3509  ;;  %2423 = vmatmul.mubr.bf16.gmra.mrb[116].mxu0 %v2018_v1  ;;  %v2020_v53 = vpack.c.bf16 %v1948_v15, %v1944_v31  ;;  %v1823_v40 = vadd.f32 1.0, %v3508_v10  ;;  %3521 = vtanh.f32 %v1572_v2  ;;  %v1453_v20 = vadd.f32 %v5613_v38, %v5560_v12  ;;  %v5764_v37 = vpop.f32.mrb[74].mxu1 }
 0x294   :  { %v3512_v60 = vpop.eup %3511  ;;  %v1827_v0 = vadd.f32 1.0, %v3510_v35  ;;  %v1579_v32 = vmul.f32 0.7978846, %v1451_v17  ;;  %v5768_v26 = vmul.f32 0.5, %v5469_v45  ;;  %3523 = vtanh.f32 %v1575_v62  ;;  %v5770_v57 = vpop.f32.mrb[75].mxu1 }
 0x295   :  { %v3514_v4 = vpop.eup %3513  ;;  %2584 = vmatmul.mubr.bf16.gmra.mrb[116].mxu1 %v2020_v53  ;;  %v1951_v33 = vmul.f32 %v1823_v40, %v5713_v7  ;;  %v1825_v5 = vadd.f32 1.0, %v3512_v60  ;;  %v1577_v9 = vmul.f32 0.7978846, %v1449_v24  ;;  %v939_v18 = vmul.f32 0.5, %v5556_v11  ;;  %v6395_v53 = vld [vmem:[#allocation47_spill] sm:$0xff]  ;;  %v6396_v40 = vld [vmem:[#allocation49_spill] sm:$0xff] }
 0x296   :  { %v1955_v46 = vmul.f32 %v1827_v0, %v5717_v27  ;;  %v1829_v61 = vadd.f32 1.0, %v3514_v4  ;;  %3525 = vtanh.f32 %v1579_v32  ;;  %v1581_v19 = vmul.f32 0.7978846, %v1453_v20  ;;  %v6397_v60 = vld [vmem:[#allocation78_spill] sm:$0xff]  ;;  %v5790_v32 = vld [vmem:[#allocation11] ss:$0 sm:$0xff] }
 0x297   :  { %v1953_v38 = vmul.f32 %v1825_v5, %v5722_v52  ;;  %v1446_v7 = vadd.f32 %v6392_v51, %v6391_v34  ;;  %3527 = vtanh.f32 %v1577_v9  ;;  %v1450_v47 = vadd.f32 %v5586_v23, %v5512_v63  ;;  %v6398_v0 = vld [vmem:[#allocation62_spill] sm:$0xff]  ;;  %v6399_v20 = vld [vmem:[#allocation41_spill] sm:$0xff] }
 0x298   :  { %v3516_v49 = vpop.eup %3515  ;;  %v2023_v48 = vpack.c.bf16 %v1955_v46, %v1951_v33  ;;  %v1957_v45 = vmul.f32 %v1829_v61, %v933_v16  ;;  %v937_v31 = vmul.f32 0.5, %v6389_v55  ;;  %3529 = vtanh.f32 %v1581_v19  ;;  %v6394_v16 = vld [vmem:[#allocation38_spill] sm:$0xff]  ;;  %v6400_v4 = vld [vmem:[#allocation65_spill] sm:$0xff]  ;;  %v6402_v61 = vld [vmem:[#allocation43_spill] sm:$0xff] }
 0x299   :  { %v3518_v50 = vpop.eup %3517  ;;  %v1822_v27 = vadd.f32 1.0, %v3516_v49  ;;  %v1574_v21 = vmul.f32 0.7978846, %v1446_v7  ;;  %v941_v1 = vmul.f32 0.5, %v5560_v12  ;;  %v1578_v15 = vmul.f32 0.7978846, %v1450_v47 }
 0x29a   :  { %2430 = vmatprep.mubr.bf16.mxu0 %v2023_v48  ;;  %v2025_v52 = vpack.c.bf16 %v1957_v45, %v1953_v38  ;;  %v1826_v11 = vadd.f32 1.0, %v3518_v50  ;;  %v1448_v10 = vadd.f32 %v6394_v16, %v6393_v25  ;;  %v1452_v23 = vadd.f32 %v5595_v43, %v5526_v28 }
 0x29b   :  { %v1950_v2 = vmul.f32 %v1822_v27, %v926_v6  ;;  %3531 = vtanh.f32 %v1574_v21  ;;  %v2968_v62 = vadd.f32 %v6396_v40, %v6395_v53  ;;  %v3080_v12 = vadd.f32 %v6398_v0, %v6397_v60 }
 0x29c   :  { %v3520_v17 = vpop.eup %3519  ;;  %2591 = vmatprep.mubr.bf16.mxu1 %v2025_v52  ;;  %v1954_v35 = vmul.f32 %v1826_v11, %v5736_v44  ;;  %3533 = vtanh.f32 %v1578_v15  ;;  %v1576_v13 = vmul.f32 0.7978846, %v1448_v10  ;;  %v1580_v24 = vmul.f32 0.7978846, %v1452_v23  ;;  %v6401_v44 = vld [vmem:[#allocation96_spill] sm:$0xff] }
 0x29d   :  { %v3522_v6 = vpop.eup %3521  ;;  %v1824_v55 = vadd.f32 1.0, %v3520_v17  ;;  %v2971_v43 = vadd.f32 %v6400_v4, %v6399_v20  ;;  %v2482_v46 = vadd.f32 %v3080_v12, %v2968_v62  ;;  %v3083_v9 = vadd.f32 %v6402_v61, %v6401_v44 }
 0x29e   :  { %v2022_v33 = vpack.c.bf16 %v1954_v35, %v1950_v2  ;;  %v1828_v5 = vadd.f32 1.0, %v3522_v6  ;;  %v3524_v38 = vpop.eup %3523  ;;  %3535 = vtanh.f32 %v1576_v13  ;;  %v2974_v51 = vadd.f32 %v5662_v22, %v5653_v42  ;;  %v6403_v22 = vld [vmem:[#allocation54_spill] sm:$0xff] }
 0x29f   :  { %v1952_v19 = vmul.f32 %v1824_v55, %v5745_v41  ;;  %v3086_v7 = vadd.f32 %v5683_v8, %v5677_v54  ;;  %v1831_v45 = vadd.f32 1.0, %v3524_v38  ;;  %3537 = vtanh.f32 %v1580_v24  ;;  %v6404_v54 = vld [vmem:[#allocation46_spill] sm:$0xff] }
 0x2a0   :  { %v3526_v49 = vpop.eup %3525  ;;  %2431 = vmatmul.mubr.bf16.gmra.mrb[120].mxu0 %v2022_v33  ;;  %v1956_v48 = vmul.f32 %v1828_v5, %v5748_v3  ;;  %v2619_v47 = vadd.f32 %v5790_v32, %v2482_v46  ;;  %v2485_v27 = vadd.f32 %v3083_v9, %v2971_v43  ;;  %v2977_v41 = vadd.f32 %v5679_v58, %v5665_v39 }
 0x2a1   :  { %v1835_v50 = vadd.f32 1.0, %v3526_v49  ;;  %v2490_v21 = vadd.f32 %v3086_v7, %v2974_v51  ;;  %v3528_v52 = vpop.eup %3527  ;;  %v1959_v42 = vmul.f32 %v1831_v45, %v5768_v26  ;;  %v3089_v8 = vadd.f32 %v6404_v54, %v6403_v22 }
 0x2a2   :  { %v2024_v11 = vpack.c.bf16 %v1956_v48, %v1952_v19  ;;  %2818 = vst [vmem:[#allocation12] sm:$0xff] %v2619_v47  ;;  %v2980_v3 = vadd.f32 %v5742_v14, %v5738_v56  ;;  %v3530_v15 = vpop.eup %3529  ;;  %v1833_v16 = vadd.f32 1.0, %v3528_v52  ;;  %v2620_v10 = vadd.f32 %v5790_v32, %v2485_v27 }
 0x2a3   :  { %v1963_v2 = vmul.f32 %v1835_v50, %v939_v18  ;;  %v2621_v23 = vadd.f32 %v5790_v32, %v2490_v21  ;;  %v1837_v39 = vadd.f32 1.0, %v3530_v15  ;;  %v2493_v58 = vadd.f32 %v3089_v8, %v2977_v41  ;;  %v2984_v18 = vpop.f32.mrb[76].mxu0 }
 0x2a4   :  { %2592 = vmatmul.mubr.bf16.gmra.mrb[120].mxu1 %v2024_v11  ;;  %v3092_v26 = vadd.f32 %v5756_v30, %v5752_v59  ;;  %v2983_v17 = vadd.f32 %v5758_v29, %v5754_v36  ;;  %v1961_v40 = vmul.f32 %v1833_v16, %v937_v31  ;;  %v934_v56 = vmul.f32 0.5, %v6391_v34  ;;  %2819 = vst [vmem:[#allocation12 + $0x8] sm:$0xff] %v2620_v10  ;;  %v2985_v30 = vpop.f32.mrb[77].mxu0 }
 0x2a5   :  { %v3532_v35 = vpop.eup %3531  ;;  %v2027_v53 = vpack.c.bf16 %v1963_v2, %v1959_v42  ;;  %2820 = vst [vmem:[#allocation12 + $0x10] sm:$0xff] %v2621_v23  ;;  %v3095_v14 = vadd.f32 %v5770_v57, %v5764_v37  ;;  %v1965_v60 = vmul.f32 %v1837_v39, %v941_v1  ;;  %v2622_v12 = vadd.f32 %v5790_v32, %v2493_v58  ;;  %v3096_v6 = vpop.f32.mrb[76].mxu1 }
 0x2a6   :  { %v3534_v62 = vpop.eup %3533  ;;  %v1830_v0 = vadd.f32 1.0, %v3532_v35  ;;  %v2498_v59 = vadd.f32 %v3092_v26, %v2980_v3  ;;  %v938_v36 = vmul.f32 0.5, %v5512_v63  ;;  %v2986_v34 = vadd.f32 %v2985_v30, %v2984_v18  ;;  %v2987_v55 = vpop.f32.mrb[78].mxu0 }
 0x2a7   :  { %2438 = vmatprep.mubr.bf16.mxu0 %v2027_v53  ;;  %v1834_v29 = vadd.f32 1.0, %v3534_v62  ;;  %v2501_v31 = vadd.f32 %v3095_v14, %v2983_v17  ;;  %v2029_v13 = vpack.c.bf16 %v1965_v60, %v1961_v40  ;;  %2821 = vst [vmem:[#allocation12 + $0x18] sm:$0xff] %v2622_v12  ;;  %v3097_v57 = vpop.f32.mrb[77].mxu1  ;;  %v2988_v1 = vpop.f32.mrb[79].mxu0  ;;  %v936_v44 = vmul.f32 0.5, %v6393_v25 }
 0x2a8   :  { %v1958_v24 = vmul.f32 %v1830_v0, %v934_v56  ;;  %v2623_v37 = vadd.f32 %v5790_v32, %v2498_v59  ;;  %v3536_v20 = vpop.eup %3535  ;;  %v3098_v33 = vadd.f32 %v3097_v57, %v3096_v6  ;;  %v3099_v5 = vpop.f32.mrb[78].mxu1  ;;  %v2989_v46 = vadd.f32 %v2988_v1, %v2987_v55 }
 0x2a9   :  { %v1962_v4 = vmul.f32 %v1834_v29, %v938_v36  ;;  %v2624_v43 = vadd.f32 %v5790_v32, %v2501_v31  ;;  %v3538_v63 = vpop.eup %3537  ;;  %2599 = vmatprep.mubr.bf16.mxu1 %v2029_v13  ;;  %v940_v61 = vmul.f32 0.5, %v5526_v28  ;;  %v1832_v9 = vadd.f32 1.0, %v3536_v20  ;;  %v3100_v38 = vpop.f32.mrb[79].mxu1 }
 0x2aa   :  { %2822 = vst [vmem:[#allocation12 + $0x20] sm:$0xff] %v2623_v37  ;;  %v1836_v51 = vadd.f32 1.0, %v3538_v63  ;;  %v2506_v7 = vadd.f32 %v3098_v33, %v2986_v34  ;;  %v3101_v49 = vadd.f32 %v3100_v38, %v3099_v5 }
 0x2ab   :  { %v2026_v19 = vpack.c.bf16 %v1962_v4, %v1958_v24  ;;  %2823 = vst [vmem:[#allocation12 + $0x28] sm:$0xff] %v2624_v43  ;;  %v1960_v48 = vmul.f32 %v1832_v9, %v936_v44 }
 0x2ac   :  { %v1964_v45 = vmul.f32 %v1836_v51, %v940_v61  ;;  %v2625_v47 = vadd.f32 %v5790_v32, %v2506_v7  ;;  %v2509_v50 = vadd.f32 %v3101_v49, %v2989_v46 }
 0x2ad   :  { %2439 = vmatmul.mubr.bf16.gmra.mrb[124].mxu0 %v2026_v19 }
 0x2ae   :  { %v2028_v27 = vpack.c.bf16 %v1964_v45, %v1960_v48  ;;  %2824 = vst [vmem:[#allocation12 + $0x30] sm:$0xff] %v2625_v47  ;;  %v2626_v25 = vadd.f32 %v5790_v32, %v2509_v50 }
 0x2b0   :  { %2600 = vmatmul.mubr.bf16.gmra.mrb[124].mxu1 %v2028_v27  ;;  %2825 = vst [vmem:[#allocation12 + $0x38] sm:$0xff] %v2626_v25 }
 0x2b9   :  { %v2990_v28 = vpop.f32.mrb[80].mxu0 }
 0x2ba   :  { %v2991_v21 = vpop.f32.mrb[81].mxu0 }
 0x2bb   :  { %v3102_v41 = vpop.f32.mrb[80].mxu1  ;;  %v2992_v52 = vadd.f32 %v2991_v21, %v2990_v28  ;;  %v2993_v11 = vpop.f32.mrb[82].mxu0 }
 0x2bc   :  { %v3103_v42 = vpop.f32.mrb[81].mxu1  ;;  %v2994_v22 = vpop.f32.mrb[83].mxu0 }
 0x2bd   :  { %v3104_v54 = vadd.f32 %v3103_v42, %v3102_v41  ;;  %v3105_v8 = vpop.f32.mrb[82].mxu1  ;;  %v2995_v3 = vadd.f32 %v2994_v22, %v2993_v11 }
 0x2be   :  { %v3106_v15 = vpop.f32.mrb[83].mxu1 }
 0x2bf   :  { %v2514_v2 = vadd.f32 %v3104_v54, %v2992_v52  ;;  %v3107_v16 = vadd.f32 %v3106_v15, %v3105_v8 }
 0x2c1   :  { %v2627_v10 = vadd.f32 %v5790_v32, %v2514_v2  ;;  %v2517_v23 = vadd.f32 %v3107_v16, %v2995_v3 }
 0x2c3   :  { %2826 = vst [vmem:[#allocation12 + $0x40] sm:$0xff] %v2627_v10  ;;  %v2628_v39 = vadd.f32 %v5790_v32, %v2517_v23 }
 0x2c5   :  { %2827 = vst [vmem:[#allocation12 + $0x48] sm:$0xff] %v2628_v39 }
 0x2ce   :  { %v2996_v58 = vpop.f32.mrb[84].mxu0 }
 0x2cf   :  { %v2997_v26 = vpop.f32.mrb[85].mxu0 }
 0x2d0   :  { %v3108_v17 = vpop.f32.mrb[84].mxu1  ;;  %v2998_v35 = vadd.f32 %v2997_v26, %v2996_v58  ;;  %v2999_v53 = vpop.f32.mrb[86].mxu0 }
 0x2d1   :  { %v3109_v40 = vpop.f32.mrb[85].mxu1  ;;  %v3000_v56 = vpop.f32.mrb[87].mxu0 }
 0x2d2   :  { %v3110_v14 = vadd.f32 %v3109_v40, %v3108_v17  ;;  %v3111_v18 = vpop.f32.mrb[86].mxu1  ;;  %v3001_v62 = vadd.f32 %v3000_v56, %v2999_v53 }
 0x2d3   :  { %v3112_v60 = vpop.f32.mrb[87].mxu1 }
 0x2d4   :  { %v2522_v0 = vadd.f32 %v3110_v14, %v2998_v35  ;;  %v3113_v12 = vadd.f32 %v3112_v60, %v3111_v18 }
 0x2d6   :  { %v2629_v59 = vadd.f32 %v5790_v32, %v2522_v0  ;;  %v2525_v30 = vadd.f32 %v3113_v12, %v3001_v62 }
 0x2d8   :  { %2828 = vst [vmem:[#allocation12 + $0x50] sm:$0xff] %v2629_v59  ;;  %v2630_v36 = vadd.f32 %v5790_v32, %v2525_v30 }
 0x2da   :  { %2829 = vst [vmem:[#allocation12 + $0x58] sm:$0xff] %v2630_v36 }
 0x2e3   :  { %v3002_v29 = vpop.f32.mrb[88].mxu0 }
 0x2e4   :  { %v3003_v31 = vpop.f32.mrb[89].mxu0 }
 0x2e5   :  { %v3114_v6 = vpop.f32.mrb[88].mxu1  ;;  %v3004_v34 = vadd.f32 %v3003_v31, %v3002_v29  ;;  %v3005_v55 = vpop.f32.mrb[90].mxu0 }
 0x2e6   :  { %v3115_v13 = vpop.f32.mrb[89].mxu1  ;;  %v3006_v24 = vpop.f32.mrb[91].mxu0 }
 0x2e7   :  { %v3116_v37 = vadd.f32 %v3115_v13, %v3114_v6  ;;  %v3117_v57 = vpop.f32.mrb[90].mxu1  ;;  %v3007_v1 = vadd.f32 %v3006_v24, %v3005_v55 }
 0x2e8   :  { %v3118_v20 = vpop.f32.mrb[91].mxu1 }
 0x2e9   :  { %v2530_v4 = vadd.f32 %v3116_v37, %v3004_v34  ;;  %v3119_v43 = vadd.f32 %v3118_v20, %v3117_v57 }
 0x2eb   :  { %v2631_v33 = vadd.f32 %v5790_v32, %v2530_v4  ;;  %v2533_v5 = vadd.f32 %v3119_v43, %v3007_v1 }
 0x2ed   :  { %2830 = vst [vmem:[#allocation12 + $0x60] sm:$0xff] %v2631_v33  ;;  %v2632_v46 = vadd.f32 %v5790_v32, %v2533_v5 }
 0x2ef   :  { %2831 = vst [vmem:[#allocation12 + $0x68] sm:$0xff] %v2632_v46 }
 0x2f8   :  { %v3008_v63 = vpop.f32.mrb[92].mxu0 }
 0x2f9   :  { %v3009_v44 = vpop.f32.mrb[93].mxu0 }
 0x2fa   :  { %v3120_v61 = vpop.f32.mrb[92].mxu1  ;;  %v3010_v9 = vadd.f32 %v3009_v44, %v3008_v63  ;;  %v3011_v38 = vpop.f32.mrb[94].mxu0 }
 0x2fb   :  { %v3121_v19 = vpop.f32.mrb[93].mxu1  ;;  %v3012_v51 = vpop.f32.mrb[95].mxu0 }
 0x2fc   :  { %v3122_v7 = vadd.f32 %v3121_v19, %v3120_v61  ;;  %v3123_v49 = vpop.f32.mrb[94].mxu1  ;;  %v3013_v48 = vadd.f32 %v3012_v51, %v3011_v38 }
 0x2fd   :  { %v3124_v45 = vpop.f32.mrb[95].mxu1 }
 0x2fe   :  { %v2538_v47 = vadd.f32 %v3122_v7, %v3010_v9  ;;  %v3125_v50 = vadd.f32 %v3124_v45, %v3123_v49 }
 0x300   :  { %v2633_v27 = vadd.f32 %v5790_v32, %v2538_v47  ;;  %v2541_v25 = vadd.f32 %v3125_v50, %v3013_v48 }
 0x302   :  { %2832 = vst [vmem:[#allocation12 + $0x70] sm:$0xff] %v2633_v27  ;;  %v2634_v28 = vadd.f32 %v5790_v32, %v2541_v25 }
 0x304   :  { %2833 = vst [vmem:[#allocation12 + $0x78] sm:$0xff] %v2634_v28 }
 0x30d   :  { %v3014_v21 = vpop.f32.mrb[96].mxu0 }
 0x30e   :  { %v3015_v41 = vpop.f32.mrb[97].mxu0 }
 0x30f   :  { %v3126_v52 = vpop.f32.mrb[96].mxu1  ;;  %v3016_v11 = vadd.f32 %v3015_v41, %v3014_v21  ;;  %v3017_v42 = vpop.f32.mrb[98].mxu0 }
 0x310   :  { %v3127_v22 = vpop.f32.mrb[97].mxu1  ;;  %v3018_v54 = vpop.f32.mrb[99].mxu0 }
 0x311   :  { %v3128_v8 = vadd.f32 %v3127_v22, %v3126_v52  ;;  %v3129_v3 = vpop.f32.mrb[98].mxu1  ;;  %v3019_v15 = vadd.f32 %v3018_v54, %v3017_v42 }
 0x312   :  { %v3130_v2 = vpop.f32.mrb[99].mxu1 }
 0x313   :  { %v2546_v16 = vadd.f32 %v3128_v8, %v3016_v11  ;;  %v3131_v10 = vadd.f32 %v3130_v2, %v3129_v3 }
 0x315   :  { %v2635_v23 = vadd.f32 %v5790_v32, %v2546_v16  ;;  %v2549_v39 = vadd.f32 %v3131_v10, %v3019_v15 }
 0x317   :  { %2834 = vst [vmem:[#allocation12 + $0x80] sm:$0xff] %v2635_v23  ;;  %v2636_v58 = vadd.f32 %v5790_v32, %v2549_v39 }
 0x319   :  { %2835 = vst [vmem:[#allocation12 + $0x88] sm:$0xff] %v2636_v58 }
 0x322   :  { %v3020_v26 = vpop.f32.mrb[100].mxu0 }
 0x323   :  { %v3021_v17 = vpop.f32.mrb[101].mxu0 }
 0x324   :  { %v3132_v35 = vpop.f32.mrb[100].mxu1  ;;  %v3022_v53 = vadd.f32 %v3021_v17, %v3020_v26  ;;  %v3023_v40 = vpop.f32.mrb[102].mxu0 }
 0x325   :  { %v3133_v56 = vpop.f32.mrb[101].mxu1  ;;  %v3024_v14 = vpop.f32.mrb[103].mxu0 }
 0x326   :  { %v3134_v18 = vadd.f32 %v3133_v56, %v3132_v35  ;;  %v3135_v62 = vpop.f32.mrb[102].mxu1  ;;  %v3025_v60 = vadd.f32 %v3024_v14, %v3023_v40 }
 0x327   :  { %v3136_v0 = vpop.f32.mrb[103].mxu1 }
 0x328   :  { %v2554_v12 = vadd.f32 %v3134_v18, %v3022_v53  ;;  %v3137_v59 = vadd.f32 %v3136_v0, %v3135_v62 }
 0x32a   :  { %v2637_v30 = vadd.f32 %v5790_v32, %v2554_v12  ;;  %v2557_v36 = vadd.f32 %v3137_v59, %v3025_v60 }
 0x32c   :  { %2836 = vst [vmem:[#allocation12 + $0x90] sm:$0xff] %v2637_v30  ;;  %v2638_v29 = vadd.f32 %v5790_v32, %v2557_v36 }
 0x32e   :  { %2837 = vst [vmem:[#allocation12 + $0x98] sm:$0xff] %v2638_v29 }
 0x337   :  { %v3026_v31 = vpop.f32.mrb[104].mxu0 }
 0x338   :  { %v3027_v6 = vpop.f32.mrb[105].mxu0 }
 0x339   :  { %v3138_v34 = vpop.f32.mrb[104].mxu1  ;;  %v3028_v55 = vadd.f32 %v3027_v6, %v3026_v31  ;;  %v3029_v13 = vpop.f32.mrb[106].mxu0 }
 0x33a   :  { %v3139_v24 = vpop.f32.mrb[105].mxu1  ;;  %v3030_v37 = vpop.f32.mrb[107].mxu0 }
 0x33b   :  { %v3140_v57 = vadd.f32 %v3139_v24, %v3138_v34  ;;  %v3141_v1 = vpop.f32.mrb[106].mxu1  ;;  %v3031_v20 = vadd.f32 %v3030_v37, %v3029_v13 }
 0x33c   :  { %v3142_v4 = vpop.f32.mrb[107].mxu1 }
 0x33d   :  { %v2562_v43 = vadd.f32 %v3140_v57, %v3028_v55  ;;  %v3143_v33 = vadd.f32 %v3142_v4, %v3141_v1 }
 0x33f   :  { %v2639_v5 = vadd.f32 %v5790_v32, %v2562_v43  ;;  %v2565_v46 = vadd.f32 %v3143_v33, %v3031_v20 }
 0x341   :  { %2838 = vst [vmem:[#allocation12 + $0xa0] sm:$0xff] %v2639_v5  ;;  %v2640_v63 = vadd.f32 %v5790_v32, %v2565_v46 }
 0x343   :  { %2839 = vst [vmem:[#allocation12 + $0xa8] sm:$0xff] %v2640_v63 }
 0x34c   :  { %v3032_v44 = vpop.f32.mrb[108].mxu0 }
 0x34d   :  { %v3033_v61 = vpop.f32.mrb[109].mxu0 }
 0x34e   :  { %v3034_v38 = vadd.f32 %v3033_v61, %v3032_v44  ;;  %v3035_v19 = vpop.f32.mrb[110].mxu0 }
 0x34f   :  { %v3144_v9 = vpop.f32.mrb[108].mxu1  ;;  %v3036_v7 = vpop.f32.mrb[111].mxu0 }
 0x350   :  { %v3145_v51 = vpop.f32.mrb[109].mxu1  ;;  %v3037_v45 = vadd.f32 %v3036_v7, %v3035_v19 }
 0x351   :  { %v3146_v49 = vadd.f32 %v3145_v51, %v3144_v9  ;;  %v3147_v48 = vpop.f32.mrb[110].mxu1 }
 0x352   :  { %v3148_v47 = vpop.f32.mrb[111].mxu1 }
 0x353   :  { %v2570_v50 = vadd.f32 %v3146_v49, %v3034_v38  ;;  %v3149_v27 = vadd.f32 %v3148_v47, %v3147_v48 }
 0x355   :  { %v2641_v25 = vadd.f32 %v5790_v32, %v2570_v50  ;;  %v2573_v28 = vadd.f32 %v3149_v27, %v3037_v45 }
 0x357   :  { %2840 = vst [vmem:[#allocation12 + $0xb0] sm:$0xff] %v2641_v25  ;;  %v2642_v21 = vadd.f32 %v5790_v32, %v2573_v28 }
 0x359   :  { %2841 = vst [vmem:[#allocation12 + $0xb8] sm:$0xff] %v2642_v21 }
 0x35a   :  { %v3038_v41 = vpop.f32.mrb[112].mxu0 }
 0x35b   :  { %v3039_v52 = vpop.f32.mrb[113].mxu0 }
 0x35c   :  { %v3150_v11 = vpop.f32.mrb[112].mxu1  ;;  %v3040_v42 = vadd.f32 %v3039_v52, %v3038_v41  ;;  %v3041_v22 = vpop.f32.mrb[114].mxu0 }
 0x35d   :  { %v3151_v54 = vpop.f32.mrb[113].mxu1  ;;  %v3042_v8 = vpop.f32.mrb[115].mxu0 }
 0x35e   :  { %v3152_v3 = vadd.f32 %v3151_v54, %v3150_v11  ;;  %v3153_v15 = vpop.f32.mrb[114].mxu1  ;;  %v3043_v2 = vadd.f32 %v3042_v8, %v3041_v22 }
 0x35f   :  { %v3154_v16 = vpop.f32.mrb[115].mxu1 }
 0x360   :  { %v2578_v10 = vadd.f32 %v3152_v3, %v3040_v42  ;;  %v3155_v23 = vadd.f32 %v3154_v16, %v3153_v15 }
 0x362   :  { %v2643_v39 = vadd.f32 %v5790_v32, %v2578_v10  ;;  %v2581_v58 = vadd.f32 %v3155_v23, %v3043_v2 }
 0x364   :  { %2842 = vst [vmem:[#allocation12 + $0xc0] sm:$0xff] %v2643_v39  ;;  %v2644_v26 = vadd.f32 %v5790_v32, %v2581_v58 }
 0x366   :  { %2843 = vst [vmem:[#allocation12 + $0xc8] sm:$0xff] %v2644_v26  ;;  %v3044_v17 = vpop.f32.mrb[116].mxu0 }
 0x367   :  { %v3045_v35 = vpop.f32.mrb[117].mxu0 }
 0x368   :  { %v3156_v53 = vpop.f32.mrb[116].mxu1  ;;  %v3046_v40 = vadd.f32 %v3045_v35, %v3044_v17  ;;  %v3047_v56 = vpop.f32.mrb[118].mxu0 }
 0x369   :  { %v3157_v14 = vpop.f32.mrb[117].mxu1  ;;  %v3048_v18 = vpop.f32.mrb[119].mxu0 }
 0x36a   :  { %v3158_v62 = vadd.f32 %v3157_v14, %v3156_v53  ;;  %v3159_v60 = vpop.f32.mrb[118].mxu1  ;;  %v3049_v0 = vadd.f32 %v3048_v18, %v3047_v56 }
 0x36b   :  { %v3160_v12 = vpop.f32.mrb[119].mxu1 }
 0x36c   :  { %v2586_v59 = vadd.f32 %v3158_v62, %v3046_v40  ;;  %v3161_v30 = vadd.f32 %v3160_v12, %v3159_v60 }
 0x36e   :  { %v2645_v36 = vadd.f32 %v5790_v32, %v2586_v59  ;;  %v2589_v29 = vadd.f32 %v3161_v30, %v3049_v0 }
 0x370   :  { %2844 = vst [vmem:[#allocation12 + $0xd0] sm:$0xff] %v2645_v36  ;;  %v2646_v31 = vadd.f32 %v5790_v32, %v2589_v29 }
 0x372   :  { %2845 = vst [vmem:[#allocation12 + $0xd8] sm:$0xff] %v2646_v31 }
 0x373   :  { %v3050_v6 = vpop.f32.mrb[120].mxu0 }
 0x374   :  { %v3051_v34 = vpop.f32.mrb[121].mxu0 }
 0x375   :  { %v3052_v55 = vadd.f32 %v3051_v34, %v3050_v6  ;;  %v3053_v13 = vpop.f32.mrb[122].mxu0 }
 0x376   :  { %v3054_v24 = vpop.f32.mrb[123].mxu0 }
 0x377   :  { %v3162_v37 = vpop.f32.mrb[120].mxu1  ;;  %v3055_v57 = vadd.f32 %v3054_v24, %v3053_v13 }
 0x378   :  { %v3163_v1 = vpop.f32.mrb[121].mxu1 }
 0x379   :  { %v3164_v20 = vadd.f32 %v3163_v1, %v3162_v37  ;;  %v3165_v4 = vpop.f32.mrb[122].mxu1 }
 0x37a   :  { %v3166_v43 = vpop.f32.mrb[123].mxu1 }
 0x37b   :  { %v2594_v33 = vadd.f32 %v3164_v20, %v3052_v55  ;;  %v3167_v5 = vadd.f32 %v3166_v43, %v3165_v4 }
 0x37d   :  { %v2647_v46 = vadd.f32 %v5790_v32, %v2594_v33  ;;  %v2597_v63 = vadd.f32 %v3167_v5, %v3055_v57 }
 0x37f   :  { %2846 = vst [vmem:[#allocation12 + $0xe0] sm:$0xff] %v2647_v46  ;;  %v2648_v44 = vadd.f32 %v5790_v32, %v2597_v63 }
 0x380   :  { %v3056_v61 = vpop.f32.mrb[124].mxu0 }
 0x381   :  { %2847 = vst [vmem:[#allocation12 + $0xe8] sm:$0xff] %v2648_v44  ;;  %v3057_v9 = vpop.f32.mrb[125].mxu0 }
 0x382   :  { %v3058_v38 = vadd.f32 %v3057_v9, %v3056_v61  ;;  %v3059_v19 = vpop.f32.mrb[126].mxu0 }
 0x383   :  { %v3060_v51 = vpop.f32.mrb[127].mxu0  ;;  %v3168_v7 = vpop.f32.mrb[124].mxu1 }
 0x384   :  { %v3061_v49 = vadd.f32 %v3060_v51, %v3059_v19  ;;  %v3169_v48 = vpop.f32.mrb[125].mxu1 }
 0x385   :  { %v3170_v45 = vadd.f32 %v3169_v48, %v3168_v7  ;;  %v3171_v47 = vpop.f32.mrb[126].mxu1 }
 0x386   :  { %v3172_v50 = vpop.f32.mrb[127].mxu1 }
 0x387   :  { %v2602_v27 = vadd.f32 %v3170_v45, %v3058_v38  ;;  %v3173_v25 = vadd.f32 %v3172_v50, %v3171_v47 }
 0x389   :  { %v2649_v28 = vadd.f32 %v5790_v32, %v2602_v27  ;;  %v2605_v21 = vadd.f32 %v3173_v25, %v3061_v49 }
 0x38b   :  { %2848 = vst [vmem:[#allocation12 + $0xf0] sm:$0xff] %v2649_v28  ;;  %v2650_v41 = vadd.f32 %v5790_v32, %v2605_v21 }
 0x38d   :  { %2849 = vst [vmem:[#allocation12 + $0xf8] sm:$0xff] %v2650_v41 }
 0x38e   :  { %3660 = shalt.err (!%p3657_p2)
}
 0x38f   :  { %s3661_s6 = scalar_lea.hbm %s5868_s5, 4096 }
 0x390   :  { %p3662_p3 = scmp.ne.s32.totalorder %s5868_s5, %s3661_s6  ;;  %p3665_p4 = scmp.lt.u32.totalorder %s3661_s6, %s5868_s5 }
 0x392   :  { %p3667_p5 = pnand %p3665_p4, %p3662_p3 }
 0x394   :  { %3670 = shalt.err (!%p3667_p5)
}
 0x395   :  { %s3690_s12 = smov 128   ;;  %s3691_s13 = smov 8  }
 0x396   :  { %2861 = dma.vmem_to_hbm [thread:$0]  %s2856_s28, 4096, %s5868_s5, [#allocation5], %s3690_s12, %s3690_s12, %s3691_s13  }
 0x397   :  { %3677 = dma.done.wait [#allocation5], 4096  }
 0x398   :  { %3678 = vsyncadd [#allocation5], 4294963200 }
 0x399   :  { %2865 = vsyncpa [#allocation4], 1 }
 0x39a   :  { %2866 = vsyncpa [#allocation7], 1 }
 0x39b   :  { %2867 = vsyncpa [#allocation10], 1 }
 0x39c   :  { %2868 = vsyncpa [#allocation5], 1 }

</bundles_post_ra>
